<compile_context>
chip_gen: v5e
topology: v5e:2x2
jax: 0.10.0
libtpu: 0.0.40
codegen_flags: <defaults>
</compile_context>

<pallas_src>
import functools

import jax
import jax.numpy as jnp
import numpy as np
from jax.experimental import pallas as pl
from jax.experimental.pallas import tpu as pltpu

LN_EPS = 1e-5  # PyTorch nn.LayerNorm default eps


def _layernorm(h, g, b):
    # Single-pass statistics: E[x] and E[x^2] from one sweep over the data.
    mu = jnp.mean(h, axis=-1, keepdims=True)
    mu2 = jnp.mean(h * h, axis=-1, keepdims=True)
    var = jnp.maximum(mu2 - mu * mu, 0.0)
    return (h - mu) * jax.lax.rsqrt(var + LN_EPS) * g + b


def _mha(q, k, v, num_heads, cdt):
    """Head-batched multi-head attention on 2-D (tokens, dim) tiles.

    q is assumed pre-scaled by head_dim**-0.5.  All matmuls use `cdt`
    (bf16) operands with f32 accumulation; softmax math stays f32.
    """
    n, d = q.shape
    m = k.shape[0]
    dh = d // num_heads
    qh = q.astype(cdt).reshape(n, num_heads, dh).transpose(1, 0, 2)   # (H, N, dh)
    kh = k.astype(cdt).reshape(m, num_heads, dh).transpose(1, 0, 2)   # (H, M, dh)
    vh = v.astype(cdt).reshape(m, num_heads, dh).transpose(1, 0, 2)   # (H, M, dh)

    # scores: (H, N, M), batched over heads -> single fused MXU sequence.
    s = jax.lax.dot_general(qh, kh, (((2,), (2,)), ((0,), (0,))),
                            preferred_element_type=jnp.float32)
    mx = jnp.max(s, axis=-1, keepdims=True)
    e = jnp.exp(s - mx)
    denom = jnp.sum(e, axis=-1, keepdims=True)
    p = e * pl.reciprocal(denom, approx=True)        # divide -> EUP reciprocal

    o = jax.lax.dot_general(p.astype(cdt), vh, (((2,), (1,)), ((0,), (0,))),
                            preferred_element_type=jnp.float32)       # (H, N, dh)
    return o.transpose(1, 0, 2).reshape(n, d)


def csa_kernel(x_ref, kv_ref,
               g1_ref, b1_ref, gk_ref, bk_ref,
               wq_ref, bq_ref, wkv_ref, bkv_ref, wco_ref, bco_ref,
               g3_ref, b3_ref, wqkv_ref, bqkv_ref, wso_ref, bso_ref,
               g4_ref, b4_ref, w1_ref, bm1_ref, w2_ref, bm2_ref,
               out_ref, *, num_heads):
    x = x_ref[0].astype(jnp.float32)      # (N, D)
    kv = kv_ref[0].astype(jnp.float32)    # (M, D)
    d = x.shape[-1]
    dh = d // num_heads
    scale = dh ** -0.5
    cdt = wq_ref.dtype                    # MXU operand dtype (bf16)

    def proj(a, w_ref, b_ref):
        # bf16 operands, f32 accumulation, f32 bias add.
        return jnp.dot(a.astype(cdt), w_ref[...],
                       preferred_element_type=jnp.float32) + b_ref[...]

    # ---- x = x + cattn(norm1(x), norm_kv1(kvx)) ----
    h1 = _layernorm(x, g1_ref[...], b1_ref[...])
    hk = _layernorm(kv, gk_ref[...], bk_ref[...])
    q = proj(h1, wq_ref, bq_ref) * scale            # scale folded into q
    kvp = proj(hk, wkv_ref, bkv_ref)
    # TODO(synk): src_mask is None in this forward; attention masking not implemented.
    ca = _mha(q, kvp[:, :d], kvp[:, d:], num_heads, cdt)
    x = x + proj(ca, wco_ref, bco_ref)              # drop_path/dropout = identity

    # ---- x = x + attn(norm3(x)) ----
    h3 = _layernorm(x, g3_ref[...], b3_ref[...])
    qkv = proj(h3, wqkv_ref, bqkv_ref)
    sa = _mha(qkv[:, :d] * scale, qkv[:, d:2 * d], qkv[:, 2 * d:], num_heads, cdt)
    x = x + proj(sa, wso_ref, bso_ref)

    # ---- x = x + mlp2(norm4(x)) ----
    h4 = _layernorm(x, g4_ref[...], b4_ref[...])
    # TODO(synk): PyTorch nn.GELU defaults to exact erf; tanh approximation used for TPU EUP.
    hid = jax.nn.gelu(proj(h4, w1_ref, bm1_ref), approximate=True)
    x = x + proj(hid, w2_ref, bm2_ref)

    out_ref[0] = x.astype(out_ref.dtype)


# Indices (within the params tuple) of the large weight matrices that get cast
# to the bf16 compute dtype; biases / LayerNorm params stay f32.
_WEIGHT_IDX = frozenset({4, 6, 8, 12, 14, 18, 20})


def csa_block(x, kvx, params, num_heads, *, compute_dtype=jnp.bfloat16):
    B, N, D = x.shape
    M = kvx.shape[1]
    hidden = params[18].shape[1]  # fc1: (D, hidden)

    # Cast weight matrices once in the wrapper: halves HBM->VMEM weight DMA and
    # VMEM residency; everything added on the f32 path stays f32.
    params = tuple(
        p.astype(compute_dtype) if i in _WEIGHT_IDX else p.astype(jnp.float32)
        for i, p in enumerate(params))

    def tok_spec(nrows):
        return pl.BlockSpec((1, nrows, D), lambda b: (b, 0, 0))

    def param_spec(p, single_buffered):
        idx = lambda b, _n=p.ndim: (0,) * _n
        if single_buffered:
            # Constant index_map -> double-buffering buys nothing; halve the
            # weight VMEM footprint (matters on v7x's 64 MiB VMEM).
            return pl.BlockSpec(p.shape, idx, pipeline_mode=pl.Buffered(1))
        return pl.BlockSpec(p.shape, idx)

    kernel = functools.partial(csa_kernel, num_heads=num_heads)

    # Advisory cost hint so XLA can overlap surrounding work with the call.
    f_cross = 2 * N * D * D + 4 * M * D * D + 4 * N * M * D + 2 * N * D * D
    f_self = 6 * N * D * D + 4 * N * N * D + 2 * N * D * D
    f_mlp = 4 * N * D * hidden
    flops = B * (f_cross + f_self + f_mlp)
    transcendentals = B * (num_heads * (N * M + N * N) + N * hidden)
    bytes_accessed = int(
        2 * x.size * x.dtype.itemsize + kvx.size * kvx.dtype.itemsize
        + sum(int(p.size) * p.dtype.itemsize for p in params))
    cost = pl.CostEstimate(flops=int(flops),
                           transcendentals=int(transcendentals),
                           bytes_accessed=bytes_accessed)

    def build(single_buffered):
        return pl.pallas_call(
            kernel,
            out_shape=jax.ShapeDtypeStruct((B, N, D), x.dtype),
            grid=(B,),
            in_specs=[tok_spec(N), tok_spec(M)]
                     + [param_spec(p, single_buffered) for p in params],
            out_specs=tok_spec(N),
            compiler_params=pltpu.CompilerParams(
                dimension_semantics=("parallel",),
                vmem_limit_bytes=64 * 1024 * 1024),
            cost_estimate=cost,
        )

    try:
        return build(True)(x, kvx, *params)
    except Exception:
        # TODO(synk): pipeline_mode=pl.Buffered(1) not supported on this jax
        # build; fall back to default (double-buffered) weight specs.
        return build(False)(x, kvx, *params)


def init_params(key, dim, mlp_ratio=4.0):
    """Deterministic synthetic parameters matching CSABlock's shapes."""
    hidden = int(dim * mlp_ratio)
    ks = jax.random.split(key, 11)
    w = lambda k, shape: 0.02 * jax.random.normal(k, shape, dtype=jnp.float32)
    ones = lambda n: jnp.ones((1, n), jnp.float32)
    zeros = lambda n: jnp.zeros((1, n), jnp.float32)
    return (
        # norm1, norm_kv1
        ones(dim), zeros(dim),
        ones(dim), zeros(dim),
        # CrossAttention: q, kv, proj
        w(ks[0], (dim, dim)), zeros(dim),
        w(ks[1], (dim, 2 * dim)), zeros(2 * dim),
        w(ks[2], (dim, dim)), w(ks[3], (1, dim)),
        # norm3
        ones(dim), zeros(dim),
        # Attention: qkv, proj
        w(ks[4], (dim, 3 * dim)), zeros(3 * dim),
        w(ks[5], (dim, dim)), w(ks[6], (1, dim)),
        # norm4
        ones(dim), zeros(dim),
        # Mlp: fc1, fc2
        w(ks[7], (dim, hidden)), w(ks[8], (1, hidden)),
        w(ks[9], (hidden, dim)), w(ks[10], (1, dim)),
    )


def csa_reference(x, kvx, params, num_heads):
    """Pure-JAX f32 reference of the same forward pass (correctness check)."""
    (g1, b1, gk, bk, wq, bq, wkv, bkv, wco, bco,
     g3, b3, wqkv, bqkv, wso, bso, g4, b4, w1, bm1, w2, bm2) = params
    D = x.shape[-1]
    dh = D // num_heads
    scale = dh ** -0.5

    def mha(q, k, v):
        B, N, _ = q.shape
        Mk = k.shape[1]
        qh = q.reshape(B, N, num_heads, dh).transpose(0, 2, 1, 3)
        kh = k.reshape(B, Mk, num_heads, dh).transpose(0, 2, 1, 3)
        vh = v.reshape(B, Mk, num_heads, dh).transpose(0, 2, 1, 3)
        s = jnp.einsum("bhnd,bhmd->bhnm", qh, kh) * scale
        p = jax.nn.softmax(s, axis=-1)
        o = jnp.einsum("bhnm,bhmd->bhnd", p, vh)
        return o.transpose(0, 2, 1, 3).reshape(B, N, D)

    h1 = _layernorm(x, g1, b1)
    hk = _layernorm(kvx, gk, bk)
    q = h1 @ wq + bq
    kvp = hk @ wkv + bkv
    x = x + (mha(q, kvp[..., :D], kvp[..., D:]) @ wco + bco)
    h3 = _layernorm(x, g3, b3)
    qkv = h3 @ wqkv + bqkv
    x = x + (mha(qkv[..., :D], qkv[..., D:2 * D], qkv[..., 2 * D:]) @ wso + bso)
    h4 = _layernorm(x, g4, b4)
    x = x + (jax.nn.gelu(h4 @ w1 + bm1, approximate=True) @ w2 + bm2)
    return x


if __name__ == "__main__":
    B, N, M, DIM, HEADS = 2, 8, 8, 32, 4
    key = jax.random.PRNGKey(0)
    kx, kkv, kp = jax.random.split(key, 3)
    x = jax.random.normal(kx, (B, N, DIM), dtype=jnp.float32)
    kvx = jax.random.normal(kkv, (B, M, DIM), dtype=jnp.float32)
    params = init_params(kp, DIM, mlp_ratio=4.0)

    out = csa_block(x, kvx, params, HEADS)
    jax.block_until_ready(out)

    ref = csa_reference(x, kvx, params, HEADS)
    assert out.shape == (B, N, DIM)
    # Tolerance accounts for bf16 MXU operands (f32 accumulation) and the
    # approximate softmax reciprocal.
    np.testing.assert_allclose(np.asarray(out), np.asarray(ref), rtol=2e-2, atol=2e-2)
    print("KERNEL_OK")
</pallas_src>

<mosaic_0001>
module attributes {stable_mosaic.version = 11 : i64} {
  func.func @csa_kernel(%arg0: i32, %arg1: memref<1x8x32xf32, #tpu.memory_space<vmem>>, %arg2: memref<1x8x32xf32, #tpu.memory_space<vmem>>, %arg3: memref<1x32xf32, #tpu.memory_space<vmem>>, %arg4: memref<1x32xf32, #tpu.memory_space<vmem>>, %arg5: memref<1x32xf32, #tpu.memory_space<vmem>>, %arg6: memref<1x32xf32, #tpu.memory_space<vmem>>, %arg7: memref<32x32xbf16, #tpu.memory_space<vmem>>, %arg8: memref<1x32xf32, #tpu.memory_space<vmem>>, %arg9: memref<32x64xbf16, #tpu.memory_space<vmem>>, %arg10: memref<1x64xf32, #tpu.memory_space<vmem>>, %arg11: memref<32x32xbf16, #tpu.memory_space<vmem>>, %arg12: memref<1x32xf32, #tpu.memory_space<vmem>>, %arg13: memref<1x32xf32, #tpu.memory_space<vmem>>, %arg14: memref<1x32xf32, #tpu.memory_space<vmem>>, %arg15: memref<32x96xbf16, #tpu.memory_space<vmem>>, %arg16: memref<1x96xf32, #tpu.memory_space<vmem>>, %arg17: memref<32x32xbf16, #tpu.memory_space<vmem>>, %arg18: memref<1x32xf32, #tpu.memory_space<vmem>>, %arg19: memref<1x32xf32, #tpu.memory_space<vmem>>, %arg20: memref<1x32xf32, #tpu.memory_space<vmem>>, %arg21: memref<32x128xbf16, #tpu.memory_space<vmem>>, %arg22: memref<1x128xf32, #tpu.memory_space<vmem>>, %arg23: memref<128x32xbf16, #tpu.memory_space<vmem>>, %arg24: memref<1x32xf32, #tpu.memory_space<vmem>>, %arg25: memref<1x8x32xf32, #tpu.memory_space<vmem>>) attributes {dimension_semantics = [#tpu.dimension_semantics<parallel>], iteration_bounds = array<i64: 2>, scalar_prefetch = 0 : i64, scratch_operands = 0 : i64, tpu.core_type = #tpu.core_type<tc>, window_params = [{transform_indices = @transform_0, window_bounds = array<i64: 1, 8, 32>}, {transform_indices = @transform_1, window_bounds = array<i64: 1, 8, 32>}, {pipeline_mode = #tpu.pipeline_mode<synchronous>, transform_indices = @transform_2, window_bounds = array<i64: 1, 32>}, {pipeline_mode = #tpu.pipeline_mode<synchronous>, transform_indices = @transform_3, window_bounds = array<i64: 1, 32>}, {pipeline_mode = #tpu.pipeline_mode<synchronous>, transform_indices = @transform_4, window_bounds = array<i64: 1, 32>}, {pipeline_mode = #tpu.pipeline_mode<synchronous>, transform_indices = @transform_5, window_bounds = array<i64: 1, 32>}, {pipeline_mode = #tpu.pipeline_mode<synchronous>, transform_indices = @transform_6, window_bounds = array<i64: 32, 32>}, {pipeline_mode = #tpu.pipeline_mode<synchronous>, transform_indices = @transform_7, window_bounds = array<i64: 1, 32>}, {pipeline_mode = #tpu.pipeline_mode<synchronous>, transform_indices = @transform_8, window_bounds = array<i64: 32, 64>}, {pipeline_mode = #tpu.pipeline_mode<synchronous>, transform_indices = @transform_9, window_bounds = array<i64: 1, 64>}, {pipeline_mode = #tpu.pipeline_mode<synchronous>, transform_indices = @transform_10, window_bounds = array<i64: 32, 32>}, {pipeline_mode = #tpu.pipeline_mode<synchronous>, transform_indices = @transform_11, window_bounds = array<i64: 1, 32>}, {pipeline_mode = #tpu.pipeline_mode<synchronous>, transform_indices = @transform_12, window_bounds = array<i64: 1, 32>}, {pipeline_mode = #tpu.pipeline_mode<synchronous>, transform_indices = @transform_13, window_bounds = array<i64: 1, 32>}, {pipeline_mode = #tpu.pipeline_mode<synchronous>, transform_indices = @transform_14, window_bounds = array<i64: 32, 96>}, {pipeline_mode = #tpu.pipeline_mode<synchronous>, transform_indices = @transform_15, window_bounds = array<i64: 1, 96>}, {pipeline_mode = #tpu.pipeline_mode<synchronous>, transform_indices = @transform_16, window_bounds = array<i64: 32, 32>}, {pipeline_mode = #tpu.pipeline_mode<synchronous>, transform_indices = @transform_17, window_bounds = array<i64: 1, 32>}, {pipeline_mode = #tpu.pipeline_mode<synchronous>, transform_indices = @transform_18, window_bounds = array<i64: 1, 32>}, {pipeline_mode = #tpu.pipeline_mode<synchronous>, transform_indices = @transform_19, window_bounds = array<i64: 1, 32>}, {pipeline_mode = #tpu.pipeline_mode<synchronous>, transform_indices = @transform_20, window_bounds = array<i64: 32, 128>}, {pipeline_mode = #tpu.pipeline_mode<synchronous>, transform_indices = @transform_21, window_bounds = array<i64: 1, 128>}, {pipeline_mode = #tpu.pipeline_mode<synchronous>, transform_indices = @transform_22, window_bounds = array<i64: 128, 32>}, {pipeline_mode = #tpu.pipeline_mode<synchronous>, transform_indices = @transform_23, window_bounds = array<i64: 1, 32>}, {transform_indices = @transform_24, window_bounds = array<i64: 1, 8, 32>}]} {
    %c0 = arith.constant 0 : index
    %c0_0 = arith.constant 0 : index
    %c0_1 = arith.constant 0 : index
    %0 = vector.load %arg1[%c0, %c0_0, %c0_1] : memref<1x8x32xf32, #tpu.memory_space<vmem>>, vector<1x8x32xf32>
    %1 = vector.shape_cast %0 : vector<1x8x32xf32> to vector<8x32xf32>
    %c0_2 = arith.constant 0 : index
    %c0_3 = arith.constant 0 : index
    %c0_4 = arith.constant 0 : index
    %2 = vector.load %arg2[%c0_2, %c0_3, %c0_4] : memref<1x8x32xf32, #tpu.memory_space<vmem>>, vector<1x8x32xf32>
    %3 = vector.shape_cast %2 : vector<1x8x32xf32> to vector<8x32xf32>
    %c0_5 = arith.constant 0 : index
    %c0_6 = arith.constant 0 : index
    %4 = vector.load %arg3[%c0_5, %c0_6] : memref<1x32xf32, #tpu.memory_space<vmem>>, vector<1x32xf32>
    %c0_7 = arith.constant 0 : index
    %c0_8 = arith.constant 0 : index
    %5 = vector.load %arg4[%c0_7, %c0_8] : memref<1x32xf32, #tpu.memory_space<vmem>>, vector<1x32xf32>
    %cst = arith.constant dense<0.000000e+00> : vector<8xf32>
    %6 = vector.multi_reduction <add>, %1, %cst [1] : vector<8x32xf32> to vector<8xf32>
    %7 = vector.shape_cast %6 : vector<8xf32> to vector<8x1xf32>
    %cst_9 = arith.constant 3.200000e+01 : f32
    %8 = vector.broadcast %cst_9 : f32 to vector<8x1xf32>
    %9 = arith.divf %7, %8 : vector<8x1xf32>
    %10 = arith.mulf %1, %1 : vector<8x32xf32>
    %cst_10 = arith.constant dense<0.000000e+00> : vector<8xf32>
    %11 = vector.multi_reduction <add>, %10, %cst_10 [1] : vector<8x32xf32> to vector<8xf32>
    %12 = vector.shape_cast %11 : vector<8xf32> to vector<8x1xf32>
    %cst_11 = arith.constant 3.200000e+01 : f32
    %13 = vector.broadcast %cst_11 : f32 to vector<8x1xf32>
    %14 = arith.divf %12, %13 : vector<8x1xf32>
    %15 = arith.mulf %9, %9 : vector<8x1xf32>
    %16 = arith.subf %14, %15 : vector<8x1xf32>
    %cst_12 = arith.constant 0.000000e+00 : f32
    %17 = vector.broadcast %cst_12 : f32 to vector<8x1xf32>
    %18 = arith.maximumf %16, %17 : vector<8x1xf32>
    %19 = vector.broadcast %9 : vector<8x1xf32> to vector<8x32xf32>
    %20 = arith.subf %1, %19 : vector<8x32xf32>
    %cst_13 = arith.constant 9.99999974E-6 : f32
    %21 = vector.broadcast %cst_13 : f32 to vector<8x1xf32>
    %22 = arith.addf %18, %21 : vector<8x1xf32>
    %23 = math.rsqrt %22 : vector<8x1xf32>
    %24 = vector.broadcast %23 : vector<8x1xf32> to vector<8x32xf32>
    %25 = arith.mulf %20, %24 : vector<8x32xf32>
    %26 = vector.broadcast %4 : vector<1x32xf32> to vector<8x32xf32>
    %27 = arith.mulf %25, %26 : vector<8x32xf32>
    %28 = vector.broadcast %5 : vector<1x32xf32> to vector<8x32xf32>
    %29 = arith.addf %27, %28 : vector<8x32xf32>
    %c0_14 = arith.constant 0 : index
    %c0_15 = arith.constant 0 : index
    %30 = vector.load %arg5[%c0_14, %c0_15] : memref<1x32xf32, #tpu.memory_space<vmem>>, vector<1x32xf32>
    %c0_16 = arith.constant 0 : index
    %c0_17 = arith.constant 0 : index
    %31 = vector.load %arg6[%c0_16, %c0_17] : memref<1x32xf32, #tpu.memory_space<vmem>>, vector<1x32xf32>
    %cst_18 = arith.constant dense<0.000000e+00> : vector<8xf32>
    %32 = vector.multi_reduction <add>, %3, %cst_18 [1] : vector<8x32xf32> to vector<8xf32>
    %33 = vector.shape_cast %32 : vector<8xf32> to vector<8x1xf32>
    %cst_19 = arith.constant 3.200000e+01 : f32
    %34 = vector.broadcast %cst_19 : f32 to vector<8x1xf32>
    %35 = arith.divf %33, %34 : vector<8x1xf32>
    %36 = arith.mulf %3, %3 : vector<8x32xf32>
    %cst_20 = arith.constant dense<0.000000e+00> : vector<8xf32>
    %37 = vector.multi_reduction <add>, %36, %cst_20 [1] : vector<8x32xf32> to vector<8xf32>
    %38 = vector.shape_cast %37 : vector<8xf32> to vector<8x1xf32>
    %cst_21 = arith.constant 3.200000e+01 : f32
    %39 = vector.broadcast %cst_21 : f32 to vector<8x1xf32>
    %40 = arith.divf %38, %39 : vector<8x1xf32>
    %41 = arith.mulf %35, %35 : vector<8x1xf32>
    %42 = arith.subf %40, %41 : vector<8x1xf32>
    %cst_22 = arith.constant 0.000000e+00 : f32
    %43 = vector.broadcast %cst_22 : f32 to vector<8x1xf32>
    %44 = arith.maximumf %42, %43 : vector<8x1xf32>
    %45 = vector.broadcast %35 : vector<8x1xf32> to vector<8x32xf32>
    %46 = arith.subf %3, %45 : vector<8x32xf32>
    %cst_23 = arith.constant 9.99999974E-6 : f32
    %47 = vector.broadcast %cst_23 : f32 to vector<8x1xf32>
    %48 = arith.addf %44, %47 : vector<8x1xf32>
    %49 = math.rsqrt %48 : vector<8x1xf32>
    %50 = vector.broadcast %49 : vector<8x1xf32> to vector<8x32xf32>
    %51 = arith.mulf %46, %50 : vector<8x32xf32>
    %52 = vector.broadcast %30 : vector<1x32xf32> to vector<8x32xf32>
    %53 = arith.mulf %51, %52 : vector<8x32xf32>
    %54 = vector.broadcast %31 : vector<1x32xf32> to vector<8x32xf32>
    %55 = arith.addf %53, %54 : vector<8x32xf32>
    %56 = arith.truncf %29 : vector<8x32xf32> to vector<8x32xbf16>
    %c0_24 = arith.constant 0 : index
    %c0_25 = arith.constant 0 : index
    %57 = vector.load %arg7[%c0_24, %c0_25] : memref<32x32xbf16, #tpu.memory_space<vmem>>, vector<32x32xbf16>
    %cst_26 = arith.constant dense<0.000000e+00> : vector<8x32xf32>
    %58 = tpu.matmul %56, %57, %cst_26 {dimension_numbers = #tpu.dot_dimension_numbers<[1], [0], [0], [1], [0, 0, 1, 1], [], []>} : vector<8x32xbf16>, vector<32x32xbf16>, vector<8x32xf32> -> vector<8x32xf32>
    %c0_27 = arith.constant 0 : index
    %c0_28 = arith.constant 0 : index
    %59 = vector.load %arg8[%c0_27, %c0_28] : memref<1x32xf32, #tpu.memory_space<vmem>>, vector<1x32xf32>
    %60 = vector.broadcast %59 : vector<1x32xf32> to vector<8x32xf32>
    %61 = arith.addf %58, %60 : vector<8x32xf32>
    %cst_29 = arith.constant 0.353553385 : f32
    %62 = vector.broadcast %cst_29 : f32 to vector<8x32xf32>
    %63 = arith.mulf %61, %62 : vector<8x32xf32>
    %64 = arith.truncf %55 : vector<8x32xf32> to vector<8x32xbf16>
    %c0_30 = arith.constant 0 : index
    %c0_31 = arith.constant 0 : index
    %65 = vector.load %arg9[%c0_30, %c0_31] : memref<32x64xbf16, #tpu.memory_space<vmem>>, vector<32x64xbf16>
    %cst_32 = arith.constant dense<0.000000e+00> : vector<8x64xf32>
    %66 = tpu.matmul %64, %65, %cst_32 {dimension_numbers = #tpu.dot_dimension_numbers<[1], [0], [0], [1], [0, 0, 1, 1], [], []>} : vector<8x32xbf16>, vector<32x64xbf16>, vector<8x64xf32> -> vector<8x64xf32>
    %c0_33 = arith.constant 0 : index
    %c0_34 = arith.constant 0 : index
    %67 = vector.load %arg10[%c0_33, %c0_34] : memref<1x64xf32, #tpu.memory_space<vmem>>, vector<1x64xf32>
    %68 = vector.broadcast %67 : vector<1x64xf32> to vector<8x64xf32>
    %69 = arith.addf %66, %68 : vector<8x64xf32>
    %70 = vector.extract_strided_slice %69 {offsets = [0, 0], sizes = [8, 32], strides = [1, 1]} : vector<8x64xf32> to vector<8x32xf32>
    %71 = vector.extract_strided_slice %69 {offsets = [0, 32], sizes = [8, 32], strides = [1, 1]} : vector<8x64xf32> to vector<8x32xf32>
    %72 = arith.truncf %63 : vector<8x32xf32> to vector<8x32xbf16>
    %73 = vector.shape_cast %72 : vector<8x32xbf16> to vector<8x4x8xbf16>
    %74 = tpu.transpose %73, [1, 0, 2] : vector<8x4x8xbf16> -> vector<4x8x8xbf16>
    %75 = arith.truncf %70 : vector<8x32xf32> to vector<8x32xbf16>
    %76 = vector.shape_cast %75 : vector<8x32xbf16> to vector<8x4x8xbf16>
    %77 = tpu.transpose %76, [1, 0, 2] : vector<8x4x8xbf16> -> vector<4x8x8xbf16>
    %78 = arith.truncf %71 : vector<8x32xf32> to vector<8x32xbf16>
    %79 = vector.shape_cast %78 : vector<8x32xbf16> to vector<8x4x8xbf16>
    %80 = tpu.transpose %79, [1, 0, 2] : vector<8x4x8xbf16> -> vector<4x8x8xbf16>
    %cst_35 = arith.constant dense<0.000000e+00> : vector<4x8x8xf32>
    %81 = tpu.matmul %74, %77, %cst_35 {dimension_numbers = #tpu.dot_dimension_numbers<[2], [2], [1], [1], [0, 0, 0, 1, 1, 1], [0], [0]>} : vector<4x8x8xbf16>, vector<4x8x8xbf16>, vector<4x8x8xf32> -> vector<4x8x8xf32>
    %cst_36 = arith.constant dense<0xFF800000> : vector<4x8xf32>
    %82 = vector.multi_reduction <maximumf>, %81, %cst_36 [2] : vector<4x8x8xf32> to vector<4x8xf32>
    %83 = vector.shape_cast %82 : vector<4x8xf32> to vector<4x8x1xf32>
    %84 = vector.broadcast %83 : vector<4x8x1xf32> to vector<4x8x8xf32>
    %85 = arith.subf %81, %84 : vector<4x8x8xf32>
    %86 = math.exp %85 : vector<4x8x8xf32>
    %cst_37 = arith.constant dense<0.000000e+00> : vector<4x8xf32>
    %87 = vector.multi_reduction <add>, %86, %cst_37 [2] : vector<4x8x8xf32> to vector<4x8xf32>
    %88 = vector.shape_cast %87 : vector<4x8xf32> to vector<4x8x1xf32>
    %89 = tpu.reciprocal %88 {approx = true} : vector<4x8x1xf32> -> vector<4x8x1xf32>
    %90 = vector.broadcast %89 : vector<4x8x1xf32> to vector<4x8x8xf32>
    %91 = arith.mulf %86, %90 : vector<4x8x8xf32>
    %92 = arith.truncf %91 : vector<4x8x8xf32> to vector<4x8x8xbf16>
    %cst_38 = arith.constant dense<0.000000e+00> : vector<4x8x8xf32>
    %93 = tpu.matmul %92, %80, %cst_38 {dimension_numbers = #tpu.dot_dimension_numbers<[2], [1], [1], [2], [0, 0, 0, 1, 1, 2], [0], [0]>} : vector<4x8x8xbf16>, vector<4x8x8xbf16>, vector<4x8x8xf32> -> vector<4x8x8xf32>
    %94 = tpu.transpose %93, [1, 0, 2] : vector<4x8x8xf32> -> vector<8x4x8xf32>
    %95 = vector.shape_cast %94 : vector<8x4x8xf32> to vector<8x32xf32>
    %96 = arith.truncf %95 : vector<8x32xf32> to vector<8x32xbf16>
    %c0_39 = arith.constant 0 : index
    %c0_40 = arith.constant 0 : index
    %97 = vector.load %arg11[%c0_39, %c0_40] : memref<32x32xbf16, #tpu.memory_space<vmem>>, vector<32x32xbf16>
    %cst_41 = arith.constant dense<0.000000e+00> : vector<8x32xf32>
    %98 = tpu.matmul %96, %97, %cst_41 {dimension_numbers = #tpu.dot_dimension_numbers<[1], [0], [0], [1], [0, 0, 1, 1], [], []>} : vector<8x32xbf16>, vector<32x32xbf16>, vector<8x32xf32> -> vector<8x32xf32>
    %c0_42 = arith.constant 0 : index
    %c0_43 = arith.constant 0 : index
    %99 = vector.load %arg12[%c0_42, %c0_43] : memref<1x32xf32, #tpu.memory_space<vmem>>, vector<1x32xf32>
    %100 = vector.broadcast %99 : vector<1x32xf32> to vector<8x32xf32>
    %101 = arith.addf %98, %100 : vector<8x32xf32>
    %102 = arith.addf %1, %101 : vector<8x32xf32>
    %c0_44 = arith.constant 0 : index
    %c0_45 = arith.constant 0 : index
    %103 = vector.load %arg13[%c0_44, %c0_45] : memref<1x32xf32, #tpu.memory_space<vmem>>, vector<1x32xf32>
    %c0_46 = arith.constant 0 : index
    %c0_47 = arith.constant 0 : index
    %104 = vector.load %arg14[%c0_46, %c0_47] : memref<1x32xf32, #tpu.memory_space<vmem>>, vector<1x32xf32>
    %cst_48 = arith.constant dense<0.000000e+00> : vector<8xf32>
    %105 = vector.multi_reduction <add>, %102, %cst_48 [1] : vector<8x32xf32> to vector<8xf32>
    %106 = vector.shape_cast %105 : vector<8xf32> to vector<8x1xf32>
    %cst_49 = arith.constant 3.200000e+01 : f32
    %107 = vector.broadcast %cst_49 : f32 to vector<8x1xf32>
    %108 = arith.divf %106, %107 : vector<8x1xf32>
    %109 = arith.mulf %102, %102 : vector<8x32xf32>
    %cst_50 = arith.constant dense<0.000000e+00> : vector<8xf32>
    %110 = vector.multi_reduction <add>, %109, %cst_50 [1] : vector<8x32xf32> to vector<8xf32>
    %111 = vector.shape_cast %110 : vector<8xf32> to vector<8x1xf32>
    %cst_51 = arith.constant 3.200000e+01 : f32
    %112 = vector.broadcast %cst_51 : f32 to vector<8x1xf32>
    %113 = arith.divf %111, %112 : vector<8x1xf32>
    %114 = arith.mulf %108, %108 : vector<8x1xf32>
    %115 = arith.subf %113, %114 : vector<8x1xf32>
    %cst_52 = arith.constant 0.000000e+00 : f32
    %116 = vector.broadcast %cst_52 : f32 to vector<8x1xf32>
    %117 = arith.maximumf %115, %116 : vector<8x1xf32>
    %118 = vector.broadcast %108 : vector<8x1xf32> to vector<8x32xf32>
    %119 = arith.subf %102, %118 : vector<8x32xf32>
    %cst_53 = arith.constant 9.99999974E-6 : f32
    %120 = vector.broadcast %cst_53 : f32 to vector<8x1xf32>
    %121 = arith.addf %117, %120 : vector<8x1xf32>
    %122 = math.rsqrt %121 : vector<8x1xf32>
    %123 = vector.broadcast %122 : vector<8x1xf32> to vector<8x32xf32>
    %124 = arith.mulf %119, %123 : vector<8x32xf32>
    %125 = vector.broadcast %103 : vector<1x32xf32> to vector<8x32xf32>
    %126 = arith.mulf %124, %125 : vector<8x32xf32>
    %127 = vector.broadcast %104 : vector<1x32xf32> to vector<8x32xf32>
    %128 = arith.addf %126, %127 : vector<8x32xf32>
    %129 = arith.truncf %128 : vector<8x32xf32> to vector<8x32xbf16>
    %c0_54 = arith.constant 0 : index
    %c0_55 = arith.constant 0 : index
    %130 = vector.load %arg15[%c0_54, %c0_55] : memref<32x96xbf16, #tpu.memory_space<vmem>>, vector<32x96xbf16>
    %cst_56 = arith.constant dense<0.000000e+00> : vector<8x96xf32>
    %131 = tpu.matmul %129, %130, %cst_56 {dimension_numbers = #tpu.dot_dimension_numbers<[1], [0], [0], [1], [0, 0, 1, 1], [], []>} : vector<8x32xbf16>, vector<32x96xbf16>, vector<8x96xf32> -> vector<8x96xf32>
    %c0_57 = arith.constant 0 : index
    %c0_58 = arith.constant 0 : index
    %132 = vector.load %arg16[%c0_57, %c0_58] : memref<1x96xf32, #tpu.memory_space<vmem>>, vector<1x96xf32>
    %133 = vector.broadcast %132 : vector<1x96xf32> to vector<8x96xf32>
    %134 = arith.addf %131, %133 : vector<8x96xf32>
    %135 = vector.extract_strided_slice %134 {offsets = [0, 0], sizes = [8, 32], strides = [1, 1]} : vector<8x96xf32> to vector<8x32xf32>
    %cst_59 = arith.constant 0.353553385 : f32
    %136 = vector.broadcast %cst_59 : f32 to vector<8x32xf32>
    %137 = arith.mulf %135, %136 : vector<8x32xf32>
    %138 = vector.extract_strided_slice %134 {offsets = [0, 32], sizes = [8, 32], strides = [1, 1]} : vector<8x96xf32> to vector<8x32xf32>
    %139 = vector.extract_strided_slice %134 {offsets = [0, 64], sizes = [8, 32], strides = [1, 1]} : vector<8x96xf32> to vector<8x32xf32>
    %140 = arith.truncf %137 : vector<8x32xf32> to vector<8x32xbf16>
    %141 = vector.shape_cast %140 : vector<8x32xbf16> to vector<8x4x8xbf16>
    %142 = tpu.transpose %141, [1, 0, 2] : vector<8x4x8xbf16> -> vector<4x8x8xbf16>
    %143 = arith.truncf %138 : vector<8x32xf32> to vector<8x32xbf16>
    %144 = vector.shape_cast %143 : vector<8x32xbf16> to vector<8x4x8xbf16>
    %145 = tpu.transpose %144, [1, 0, 2] : vector<8x4x8xbf16> -> vector<4x8x8xbf16>
    %146 = arith.truncf %139 : vector<8x32xf32> to vector<8x32xbf16>
    %147 = vector.shape_cast %146 : vector<8x32xbf16> to vector<8x4x8xbf16>
    %148 = tpu.transpose %147, [1, 0, 2] : vector<8x4x8xbf16> -> vector<4x8x8xbf16>
    %cst_60 = arith.constant dense<0.000000e+00> : vector<4x8x8xf32>
    %149 = tpu.matmul %142, %145, %cst_60 {dimension_numbers = #tpu.dot_dimension_numbers<[2], [2], [1], [1], [0, 0, 0, 1, 1, 1], [0], [0]>} : vector<4x8x8xbf16>, vector<4x8x8xbf16>, vector<4x8x8xf32> -> vector<4x8x8xf32>
    %cst_61 = arith.constant dense<0xFF800000> : vector<4x8xf32>
    %150 = vector.multi_reduction <maximumf>, %149, %cst_61 [2] : vector<4x8x8xf32> to vector<4x8xf32>
    %151 = vector.shape_cast %150 : vector<4x8xf32> to vector<4x8x1xf32>
    %152 = vector.broadcast %151 : vector<4x8x1xf32> to vector<4x8x8xf32>
    %153 = arith.subf %149, %152 : vector<4x8x8xf32>
    %154 = math.exp %153 : vector<4x8x8xf32>
    %cst_62 = arith.constant dense<0.000000e+00> : vector<4x8xf32>
    %155 = vector.multi_reduction <add>, %154, %cst_62 [2] : vector<4x8x8xf32> to vector<4x8xf32>
    %156 = vector.shape_cast %155 : vector<4x8xf32> to vector<4x8x1xf32>
    %157 = tpu.reciprocal %156 {approx = true} : vector<4x8x1xf32> -> vector<4x8x1xf32>
    %158 = vector.broadcast %157 : vector<4x8x1xf32> to vector<4x8x8xf32>
    %159 = arith.mulf %154, %158 : vector<4x8x8xf32>
    %160 = arith.truncf %159 : vector<4x8x8xf32> to vector<4x8x8xbf16>
    %cst_63 = arith.constant dense<0.000000e+00> : vector<4x8x8xf32>
    %161 = tpu.matmul %160, %148, %cst_63 {dimension_numbers = #tpu.dot_dimension_numbers<[2], [1], [1], [2], [0, 0, 0, 1, 1, 2], [0], [0]>} : vector<4x8x8xbf16>, vector<4x8x8xbf16>, vector<4x8x8xf32> -> vector<4x8x8xf32>
    %162 = tpu.transpose %161, [1, 0, 2] : vector<4x8x8xf32> -> vector<8x4x8xf32>
    %163 = vector.shape_cast %162 : vector<8x4x8xf32> to vector<8x32xf32>
    %164 = arith.truncf %163 : vector<8x32xf32> to vector<8x32xbf16>
    %c0_64 = arith.constant 0 : index
    %c0_65 = arith.constant 0 : index
    %165 = vector.load %arg17[%c0_64, %c0_65] : memref<32x32xbf16, #tpu.memory_space<vmem>>, vector<32x32xbf16>
    %cst_66 = arith.constant dense<0.000000e+00> : vector<8x32xf32>
    %166 = tpu.matmul %164, %165, %cst_66 {dimension_numbers = #tpu.dot_dimension_numbers<[1], [0], [0], [1], [0, 0, 1, 1], [], []>} : vector<8x32xbf16>, vector<32x32xbf16>, vector<8x32xf32> -> vector<8x32xf32>
    %c0_67 = arith.constant 0 : index
    %c0_68 = arith.constant 0 : index
    %167 = vector.load %arg18[%c0_67, %c0_68] : memref<1x32xf32, #tpu.memory_space<vmem>>, vector<1x32xf32>
    %168 = vector.broadcast %167 : vector<1x32xf32> to vector<8x32xf32>
    %169 = arith.addf %166, %168 : vector<8x32xf32>
    %170 = arith.addf %102, %169 : vector<8x32xf32>
    %c0_69 = arith.constant 0 : index
    %c0_70 = arith.constant 0 : index
    %171 = vector.load %arg19[%c0_69, %c0_70] : memref<1x32xf32, #tpu.memory_space<vmem>>, vector<1x32xf32>
    %c0_71 = arith.constant 0 : index
    %c0_72 = arith.constant 0 : index
    %172 = vector.load %arg20[%c0_71, %c0_72] : memref<1x32xf32, #tpu.memory_space<vmem>>, vector<1x32xf32>
    %cst_73 = arith.constant dense<0.000000e+00> : vector<8xf32>
    %173 = vector.multi_reduction <add>, %170, %cst_73 [1] : vector<8x32xf32> to vector<8xf32>
    %174 = vector.shape_cast %173 : vector<8xf32> to vector<8x1xf32>
    %cst_74 = arith.constant 3.200000e+01 : f32
    %175 = vector.broadcast %cst_74 : f32 to vector<8x1xf32>
    %176 = arith.divf %174, %175 : vector<8x1xf32>
    %177 = arith.mulf %170, %170 : vector<8x32xf32>
    %cst_75 = arith.constant dense<0.000000e+00> : vector<8xf32>
    %178 = vector.multi_reduction <add>, %177, %cst_75 [1] : vector<8x32xf32> to vector<8xf32>
    %179 = vector.shape_cast %178 : vector<8xf32> to vector<8x1xf32>
    %cst_76 = arith.constant 3.200000e+01 : f32
    %180 = vector.broadcast %cst_76 : f32 to vector<8x1xf32>
    %181 = arith.divf %179, %180 : vector<8x1xf32>
    %182 = arith.mulf %176, %176 : vector<8x1xf32>
    %183 = arith.subf %181, %182 : vector<8x1xf32>
    %cst_77 = arith.constant 0.000000e+00 : f32
    %184 = vector.broadcast %cst_77 : f32 to vector<8x1xf32>
    %185 = arith.maximumf %183, %184 : vector<8x1xf32>
    %186 = vector.broadcast %176 : vector<8x1xf32> to vector<8x32xf32>
    %187 = arith.subf %170, %186 : vector<8x32xf32>
    %cst_78 = arith.constant 9.99999974E-6 : f32
    %188 = vector.broadcast %cst_78 : f32 to vector<8x1xf32>
    %189 = arith.addf %185, %188 : vector<8x1xf32>
    %190 = math.rsqrt %189 : vector<8x1xf32>
    %191 = vector.broadcast %190 : vector<8x1xf32> to vector<8x32xf32>
    %192 = arith.mulf %187, %191 : vector<8x32xf32>
    %193 = vector.broadcast %171 : vector<1x32xf32> to vector<8x32xf32>
    %194 = arith.mulf %192, %193 : vector<8x32xf32>
    %195 = vector.broadcast %172 : vector<1x32xf32> to vector<8x32xf32>
    %196 = arith.addf %194, %195 : vector<8x32xf32>
    %197 = arith.truncf %196 : vector<8x32xf32> to vector<8x32xbf16>
    %c0_79 = arith.constant 0 : index
    %c0_80 = arith.constant 0 : index
    %198 = vector.load %arg21[%c0_79, %c0_80] : memref<32x128xbf16, #tpu.memory_space<vmem>>, vector<32x128xbf16>
    %cst_81 = arith.constant dense<0.000000e+00> : vector<8x128xf32>
    %199 = tpu.matmul %197, %198, %cst_81 {dimension_numbers = #tpu.dot_dimension_numbers<[1], [0], [0], [1], [0, 0, 1, 1], [], []>} : vector<8x32xbf16>, vector<32x128xbf16>, vector<8x128xf32> -> vector<8x128xf32>
    %c0_82 = arith.constant 0 : index
    %c0_83 = arith.constant 0 : index
    %200 = vector.load %arg22[%c0_82, %c0_83] : memref<1x128xf32, #tpu.memory_space<vmem>>, vector<1x128xf32>
    %201 = vector.broadcast %200 : vector<1x128xf32> to vector<8x128xf32>
    %202 = arith.addf %199, %201 : vector<8x128xf32>
    %203 = arith.mulf %202, %202 : vector<8x128xf32>
    %204 = arith.mulf %202, %203 : vector<8x128xf32>
    %cst_84 = arith.constant 4.471500e-02 : f32
    %205 = vector.broadcast %cst_84 : f32 to vector<8x128xf32>
    %206 = arith.mulf %205, %204 : vector<8x128xf32>
    %207 = arith.addf %202, %206 : vector<8x128xf32>
    %cst_85 = arith.constant 0.797884583 : f32
    %208 = vector.broadcast %cst_85 : f32 to vector<8x128xf32>
    %209 = arith.mulf %208, %207 : vector<8x128xf32>
    %210 = math.tanh %209 : vector<8x128xf32>
    %cst_86 = arith.constant 1.000000e+00 : f32
    %211 = vector.broadcast %cst_86 : f32 to vector<8x128xf32>
    %212 = arith.addf %211, %210 : vector<8x128xf32>
    %cst_87 = arith.constant 5.000000e-01 : f32
    %213 = vector.broadcast %cst_87 : f32 to vector<8x128xf32>
    %214 = arith.mulf %213, %212 : vector<8x128xf32>
    %215 = arith.mulf %202, %214 : vector<8x128xf32>
    %216 = arith.truncf %215 : vector<8x128xf32> to vector<8x128xbf16>
    %c0_88 = arith.constant 0 : index
    %c0_89 = arith.constant 0 : index
    %217 = vector.load %arg23[%c0_88, %c0_89] : memref<128x32xbf16, #tpu.memory_space<vmem>>, vector<128x32xbf16>
    %cst_90 = arith.constant dense<0.000000e+00> : vector<8x32xf32>
    %218 = tpu.matmul %216, %217, %cst_90 {dimension_numbers = #tpu.dot_dimension_numbers<[1], [0], [0], [1], [0, 0, 1, 1], [], []>} : vector<8x128xbf16>, vector<128x32xbf16>, vector<8x32xf32> -> vector<8x32xf32>
    %c0_91 = arith.constant 0 : index
    %c0_92 = arith.constant 0 : index
    %219 = vector.load %arg24[%c0_91, %c0_92] : memref<1x32xf32, #tpu.memory_space<vmem>>, vector<1x32xf32>
    %220 = vector.broadcast %219 : vector<1x32xf32> to vector<8x32xf32>
    %221 = arith.addf %218, %220 : vector<8x32xf32>
    %222 = arith.addf %170, %221 : vector<8x32xf32>
    %c0_93 = arith.constant 0 : index
    %c0_94 = arith.constant 0 : index
    %c0_95 = arith.constant 0 : index
    %223 = vector.load %arg25[%c0_93, %c0_94, %c0_95] : memref<1x8x32xf32, #tpu.memory_space<vmem>>, vector<1x8x32xf32>
    %224 = vector.shape_cast %223 : vector<1x8x32xf32> to vector<8x32xf32>
    %225 = vector.shape_cast %222 : vector<8x32xf32> to vector<1x8x32xf32>
    tpu.vector_store %arg25[%c0_93, %c0_94, %c0_95], %225 {strides = array<i32>} : memref<1x8x32xf32, #tpu.memory_space<vmem>>, vector<1x8x32xf32>,
    return
  }
  func.func @transform_0(%arg0: i32) -> (i32, i32, i32) {
    %c0_i32 = arith.constant 0 : i32
    %c0_i32_0 = arith.constant 0 : i32
    %c0_i32_1 = arith.constant 0 : i32
    return %arg0, %c0_i32, %c0_i32_0 : i32, i32, i32
  }
  func.func @transform_1(%arg0: i32) -> (i32, i32, i32) {
    %c0_i32 = arith.constant 0 : i32
    %c0_i32_0 = arith.constant 0 : i32
    %c0_i32_1 = arith.constant 0 : i32
    return %arg0, %c0_i32, %c0_i32_0 : i32, i32, i32
  }
  func.func @transform_2(%arg0: i32) -> (i32, i32) {
    %c0_i32 = arith.constant 0 : i32
    %c0_i32_0 = arith.constant 0 : i32
    %c0_i32_1 = arith.constant 0 : i32
    return %c0_i32, %c0_i32_0 : i32, i32
  }
  func.func @transform_3(%arg0: i32) -> (i32, i32) {
    %c0_i32 = arith.constant 0 : i32
    %c0_i32_0 = arith.constant 0 : i32
    %c0_i32_1 = arith.constant 0 : i32
    return %c0_i32, %c0_i32_0 : i32, i32
  }
  func.func @transform_4(%arg0: i32) -> (i32, i32) {
    %c0_i32 = arith.constant 0 : i32
    %c0_i32_0 = arith.constant 0 : i32
    %c0_i32_1 = arith.constant 0 : i32
    return %c0_i32, %c0_i32_0 : i32, i32
  }
  func.func @transform_5(%arg0: i32) -> (i32, i32) {
    %c0_i32 = arith.constant 0 : i32
    %c0_i32_0 = arith.constant 0 : i32
    %c0_i32_1 = arith.constant 0 : i32
    return %c0_i32, %c0_i32_0 : i32, i32
  }
  func.func @transform_6(%arg0: i32) -> (i32, i32) {
    %c0_i32 = arith.constant 0 : i32
    %c0_i32_0 = arith.constant 0 : i32
    %c0_i32_1 = arith.constant 0 : i32
    return %c0_i32, %c0_i32_0 : i32, i32
  }
  func.func @transform_7(%arg0: i32) -> (i32, i32) {
    %c0_i32 = arith.constant 0 : i32
    %c0_i32_0 = arith.constant 0 : i32
    %c0_i32_1 = arith.constant 0 : i32
    return %c0_i32, %c0_i32_0 : i32, i32
  }
  func.func @transform_8(%arg0: i32) -> (i32, i32) {
    %c0_i32 = arith.constant 0 : i32
    %c0_i32_0 = arith.constant 0 : i32
    %c0_i32_1 = arith.constant 0 : i32
    return %c0_i32, %c0_i32_0 : i32, i32
  }
  func.func @transform_9(%arg0: i32) -> (i32, i32) {
    %c0_i32 = arith.constant 0 : i32
    %c0_i32_0 = arith.constant 0 : i32
    %c0_i32_1 = arith.constant 0 : i32
    return %c0_i32, %c0_i32_0 : i32, i32
  }
  func.func @transform_10(%arg0: i32) -> (i32, i32) {
    %c0_i32 = arith.constant 0 : i32
    %c0_i32_0 = arith.constant 0 : i32
    %c0_i32_1 = arith.constant 0 : i32
    return %c0_i32, %c0_i32_0 : i32, i32
  }
  func.func @transform_11(%arg0: i32) -> (i32, i32) {
    %c0_i32 = arith.constant 0 : i32
    %c0_i32_0 = arith.constant 0 : i32
    %c0_i32_1 = arith.constant 0 : i32
    return %c0_i32, %c0_i32_0 : i32, i32
  }
  func.func @transform_12(%arg0: i32) -> (i32, i32) {
    %c0_i32 = arith.constant 0 : i32
    %c0_i32_0 = arith.constant 0 : i32
    %c0_i32_1 = arith.constant 0 : i32
    return %c0_i32, %c0_i32_0 : i32, i32
  }
  func.func @transform_13(%arg0: i32) -> (i32, i32) {
    %c0_i32 = arith.constant 0 : i32
    %c0_i32_0 = arith.constant 0 : i32
    %c0_i32_1 = arith.constant 0 : i32
    return %c0_i32, %c0_i32_0 : i32, i32
  }
  func.func @transform_14(%arg0: i32) -> (i32, i32) {
    %c0_i32 = arith.constant 0 : i32
    %c0_i32_0 = arith.constant 0 : i32
    %c0_i32_1 = arith.constant 0 : i32
    return %c0_i32, %c0_i32_0 : i32, i32
  }
  func.func @transform_15(%arg0: i32) -> (i32, i32) {
    %c0_i32 = arith.constant 0 : i32
    %c0_i32_0 = arith.constant 0 : i32
    %c0_i32_1 = arith.constant 0 : i32
    return %c0_i32, %c0_i32_0 : i32, i32
  }
  func.func @transform_16(%arg0: i32) -> (i32, i32) {
    %c0_i32 = arith.constant 0 : i32
    %c0_i32_0 = arith.constant 0 : i32
    %c0_i32_1 = arith.constant 0 : i32
    return %c0_i32, %c0_i32_0 : i32, i32
  }
  func.func @transform_17(%arg0: i32) -> (i32, i32) {
    %c0_i32 = arith.constant 0 : i32
    %c0_i32_0 = arith.constant 0 : i32
    %c0_i32_1 = arith.constant 0 : i32
    return %c0_i32, %c0_i32_0 : i32, i32
  }
  func.func @transform_18(%arg0: i32) -> (i32, i32) {
    %c0_i32 = arith.constant 0 : i32
    %c0_i32_0 = arith.constant 0 : i32
    %c0_i32_1 = arith.constant 0 : i32
    return %c0_i32, %c0_i32_0 : i32, i32
  }
  func.func @transform_19(%arg0: i32) -> (i32, i32) {
    %c0_i32 = arith.constant 0 : i32
    %c0_i32_0 = arith.constant 0 : i32
    %c0_i32_1 = arith.constant 0 : i32
    return %c0_i32, %c0_i32_0 : i32, i32
  }
  func.func @transform_20(%arg0: i32) -> (i32, i32) {
    %c0_i32 = arith.constant 0 : i32
    %c0_i32_0 = arith.constant 0 : i32
    %c0_i32_1 = arith.constant 0 : i32
    return %c0_i32, %c0_i32_0 : i32, i32
  }
  func.func @transform_21(%arg0: i32) -> (i32, i32) {
    %c0_i32 = arith.constant 0 : i32
    %c0_i32_0 = arith.constant 0 : i32
    %c0_i32_1 = arith.constant 0 : i32
    return %c0_i32, %c0_i32_0 : i32, i32
  }
  func.func @transform_22(%arg0: i32) -> (i32, i32) {
    %c0_i32 = arith.constant 0 : i32
    %c0_i32_0 = arith.constant 0 : i32
    %c0_i32_1 = arith.constant 0 : i32
    return %c0_i32, %c0_i32_0 : i32, i32
  }
  func.func @transform_23(%arg0: i32) -> (i32, i32) {
    %c0_i32 = arith.constant 0 : i32
    %c0_i32_0 = arith.constant 0 : i32
    %c0_i32_1 = arith.constant 0 : i32
    return %c0_i32, %c0_i32_0 : i32, i32
  }
  func.func @transform_24(%arg0: i32) -> (i32, i32, i32) {
    %c0_i32 = arith.constant 0 : i32
    %c0_i32_0 = arith.constant 0 : i32
    %c0_i32_1 = arith.constant 0 : i32
    return %arg0, %c0_i32, %c0_i32_0 : i32, i32, i32
  }
}

module attributes {stable_mosaic.version = 11 : i64} {
  func.func @csa_kernel(%arg0: i32, %arg1: memref<1x8x32xf32, #tpu.memory_space<vmem>>, %arg2: memref<1x8x32xf32, #tpu.memory_space<vmem>>, %arg3: memref<1x32xf32, #tpu.memory_space<vmem>>, %arg4: memref<1x32xf32, #tpu.memory_space<vmem>>, %arg5: memref<1x32xf32, #tpu.memory_space<vmem>>, %arg6: memref<1x32xf32, #tpu.memory_space<vmem>>, %arg7: memref<32x32xbf16, #tpu.memory_space<vmem>>, %arg8: memref<1x32xf32, #tpu.memory_space<vmem>>, %arg9: memref<32x64xbf16, #tpu.memory_space<vmem>>, %arg10: memref<1x64xf32, #tpu.memory_space<vmem>>, %arg11: memref<32x32xbf16, #tpu.memory_space<vmem>>, %arg12: memref<1x32xf32, #tpu.memory_space<vmem>>, %arg13: memref<1x32xf32, #tpu.memory_space<vmem>>, %arg14: memref<1x32xf32, #tpu.memory_space<vmem>>, %arg15: memref<32x96xbf16, #tpu.memory_space<vmem>>, %arg16: memref<1x96xf32, #tpu.memory_space<vmem>>, %arg17: memref<32x32xbf16, #tpu.memory_space<vmem>>, %arg18: memref<1x32xf32, #tpu.memory_space<vmem>>, %arg19: memref<1x32xf32, #tpu.memory_space<vmem>>, %arg20: memref<1x32xf32, #tpu.memory_space<vmem>>, %arg21: memref<32x128xbf16, #tpu.memory_space<vmem>>, %arg22: memref<1x128xf32, #tpu.memory_space<vmem>>, %arg23: memref<128x32xbf16, #tpu.memory_space<vmem>>, %arg24: memref<1x32xf32, #tpu.memory_space<vmem>>, %arg25: memref<1x8x32xf32, #tpu.memory_space<vmem>>) attributes {dimension_semantics = [#tpu.dimension_semantics<parallel>], iteration_bounds = array<i64: 2>, scalar_prefetch = 0 : i64, scratch_operands = 0 : i64, tpu.core_type = #tpu.core_type<tc>, window_params = [{transform_indices = @transform_0, window_bounds = array<i64: 1, 8, 32>}, {transform_indices = @transform_1, window_bounds = array<i64: 1, 8, 32>}, {pipeline_mode = #tpu.pipeline_mode<synchronous>, transform_indices = @transform_2, window_bounds = array<i64: 1, 32>}, {pipeline_mode = #tpu.pipeline_mode<synchronous>, transform_indices = @transform_3, window_bounds = array<i64: 1, 32>}, {pipeline_mode = #tpu.pipeline_mode<synchronous>, transform_indices = @transform_4, window_bounds = array<i64: 1, 32>}, {pipeline_mode = #tpu.pipeline_mode<synchronous>, transform_indices = @transform_5, window_bounds = array<i64: 1, 32>}, {pipeline_mode = #tpu.pipeline_mode<synchronous>, transform_indices = @transform_6, window_bounds = array<i64: 32, 32>}, {pipeline_mode = #tpu.pipeline_mode<synchronous>, transform_indices = @transform_7, window_bounds = array<i64: 1, 32>}, {pipeline_mode = #tpu.pipeline_mode<synchronous>, transform_indices = @transform_8, window_bounds = array<i64: 32, 64>}, {pipeline_mode = #tpu.pipeline_mode<synchronous>, transform_indices = @transform_9, window_bounds = array<i64: 1, 64>}, {pipeline_mode = #tpu.pipeline_mode<synchronous>, transform_indices = @transform_10, window_bounds = array<i64: 32, 32>}, {pipeline_mode = #tpu.pipeline_mode<synchronous>, transform_indices = @transform_11, window_bounds = array<i64: 1, 32>}, {pipeline_mode = #tpu.pipeline_mode<synchronous>, transform_indices = @transform_12, window_bounds = array<i64: 1, 32>}, {pipeline_mode = #tpu.pipeline_mode<synchronous>, transform_indices = @transform_13, window_bounds = array<i64: 1, 32>}, {pipeline_mode = #tpu.pipeline_mode<synchronous>, transform_indices = @transform_14, window_bounds = array<i64: 32, 96>}, {pipeline_mode = #tpu.pipeline_mode<synchronous>, transform_indices = @transform_15, window_bounds = array<i64: 1, 96>}, {pipeline_mode = #tpu.pipeline_mode<synchronous>, transform_indices = @transform_16, window_bounds = array<i64: 32, 32>}, {pipeline_mode = #tpu.pipeline_mode<synchronous>, transform_indices = @transform_17, window_bounds = array<i64: 1, 32>}, {pipeline_mode = #tpu.pipeline_mode<synchronous>, transform_indices = @transform_18, window_bounds = array<i64: 1, 32>}, {pipeline_mode = #tpu.pipeline_mode<synchronous>, transform_indices = @transform_19, window_bounds = array<i64: 1, 32>}, {pipeline_mode = #tpu.pipeline_mode<synchronous>, transform_indices = @transform_20, window_bounds = array<i64: 32, 128>}, {pipeline_mode = #tpu.pipeline_mode<synchronous>, transform_indices = @transform_21, window_bounds = array<i64: 1, 128>}, {pipeline_mode = #tpu.pipeline_mode<synchronous>, transform_indices = @transform_22, window_bounds = array<i64: 128, 32>}, {pipeline_mode = #tpu.pipeline_mode<synchronous>, transform_indices = @transform_23, window_bounds = array<i64: 1, 32>}, {transform_indices = @transform_24, window_bounds = array<i64: 1, 8, 32>}]} {
    %c0 = arith.constant 0 : index
    %c0_0 = arith.constant 0 : index
    %c0_1 = arith.constant 0 : index
    %0 = vector.load %arg1[%c0, %c0_0, %c0_1] : memref<1x8x32xf32, #tpu.memory_space<vmem>>, vector<1x8x32xf32>
    %1 = vector.shape_cast %0 : vector<1x8x32xf32> to vector<8x32xf32>
    %c0_2 = arith.constant 0 : index
    %c0_3 = arith.constant 0 : index
    %c0_4 = arith.constant 0 : index
    %2 = vector.load %arg2[%c0_2, %c0_3, %c0_4] : memref<1x8x32xf32, #tpu.memory_space<vmem>>, vector<1x8x32xf32>
    %3 = vector.shape_cast %2 : vector<1x8x32xf32> to vector<8x32xf32>
    %c0_5 = arith.constant 0 : index
    %c0_6 = arith.constant 0 : index
    %4 = vector.load %arg3[%c0_5, %c0_6] : memref<1x32xf32, #tpu.memory_space<vmem>>, vector<1x32xf32>
    %c0_7 = arith.constant 0 : index
    %c0_8 = arith.constant 0 : index
    %5 = vector.load %arg4[%c0_7, %c0_8] : memref<1x32xf32, #tpu.memory_space<vmem>>, vector<1x32xf32>
    %cst = arith.constant dense<0.000000e+00> : vector<8xf32>
    %6 = vector.multi_reduction <add>, %1, %cst [1] : vector<8x32xf32> to vector<8xf32>
    %7 = vector.shape_cast %6 : vector<8xf32> to vector<8x1xf32>
    %cst_9 = arith.constant 3.200000e+01 : f32
    %8 = vector.broadcast %cst_9 : f32 to vector<8x1xf32>
    %9 = arith.divf %7, %8 : vector<8x1xf32>
    %10 = arith.mulf %1, %1 : vector<8x32xf32>
    %cst_10 = arith.constant dense<0.000000e+00> : vector<8xf32>
    %11 = vector.multi_reduction <add>, %10, %cst_10 [1] : vector<8x32xf32> to vector<8xf32>
    %12 = vector.shape_cast %11 : vector<8xf32> to vector<8x1xf32>
    %cst_11 = arith.constant 3.200000e+01 : f32
    %13 = vector.broadcast %cst_11 : f32 to vector<8x1xf32>
    %14 = arith.divf %12, %13 : vector<8x1xf32>
    %15 = arith.mulf %9, %9 : vector<8x1xf32>
    %16 = arith.subf %14, %15 : vector<8x1xf32>
    %cst_12 = arith.constant 0.000000e+00 : f32
    %17 = vector.broadcast %cst_12 : f32 to vector<8x1xf32>
    %18 = arith.maximumf %16, %17 : vector<8x1xf32>
    %19 = vector.broadcast %9 : vector<8x1xf32> to vector<8x32xf32>
    %20 = arith.subf %1, %19 : vector<8x32xf32>
    %cst_13 = arith.constant 9.99999974E-6 : f32
    %21 = vector.broadcast %cst_13 : f32 to vector<8x1xf32>
    %22 = arith.addf %18, %21 : vector<8x1xf32>
    %23 = math.rsqrt %22 : vector<8x1xf32>
    %24 = vector.broadcast %23 : vector<8x1xf32> to vector<8x32xf32>
    %25 = arith.mulf %20, %24 : vector<8x32xf32>
    %26 = vector.broadcast %4 : vector<1x32xf32> to vector<8x32xf32>
    %27 = arith.mulf %25, %26 : vector<8x32xf32>
    %28 = vector.broadcast %5 : vector<1x32xf32> to vector<8x32xf32>
    %29 = arith.addf %27, %28 : vector<8x32xf32>
    %c0_14 = arith.constant 0 : index
    %c0_15 = arith.constant 0 : index
    %30 = vector.load %arg5[%c0_14, %c0_15] : memref<1x32xf32, #tpu.memory_space<vmem>>, vector<1x32xf32>
    %c0_16 = arith.constant 0 : index
    %c0_17 = arith.constant 0 : index
    %31 = vector.load %arg6[%c0_16, %c0_17] : memref<1x32xf32, #tpu.memory_space<vmem>>, vector<1x32xf32>
    %cst_18 = arith.constant dense<0.000000e+00> : vector<8xf32>
    %32 = vector.multi_reduction <add>, %3, %cst_18 [1] : vector<8x32xf32> to vector<8xf32>
    %33 = vector.shape_cast %32 : vector<8xf32> to vector<8x1xf32>
    %cst_19 = arith.constant 3.200000e+01 : f32
    %34 = vector.broadcast %cst_19 : f32 to vector<8x1xf32>
    %35 = arith.divf %33, %34 : vector<8x1xf32>
    %36 = arith.mulf %3, %3 : vector<8x32xf32>
    %cst_20 = arith.constant dense<0.000000e+00> : vector<8xf32>
    %37 = vector.multi_reduction <add>, %36, %cst_20 [1] : vector<8x32xf32> to vector<8xf32>
    %38 = vector.shape_cast %37 : vector<8xf32> to vector<8x1xf32>
    %cst_21 = arith.constant 3.200000e+01 : f32
    %39 = vector.broadcast %cst_21 : f32 to vector<8x1xf32>
    %40 = arith.divf %38, %39 : vector<8x1xf32>
    %41 = arith.mulf %35, %35 : vector<8x1xf32>
    %42 = arith.subf %40, %41 : vector<8x1xf32>
    %cst_22 = arith.constant 0.000000e+00 : f32
    %43 = vector.broadcast %cst_22 : f32 to vector<8x1xf32>
    %44 = arith.maximumf %42, %43 : vector<8x1xf32>
    %45 = vector.broadcast %35 : vector<8x1xf32> to vector<8x32xf32>
    %46 = arith.subf %3, %45 : vector<8x32xf32>
    %cst_23 = arith.constant 9.99999974E-6 : f32
    %47 = vector.broadcast %cst_23 : f32 to vector<8x1xf32>
    %48 = arith.addf %44, %47 : vector<8x1xf32>
    %49 = math.rsqrt %48 : vector<8x1xf32>
    %50 = vector.broadcast %49 : vector<8x1xf32> to vector<8x32xf32>
    %51 = arith.mulf %46, %50 : vector<8x32xf32>
    %52 = vector.broadcast %30 : vector<1x32xf32> to vector<8x32xf32>
    %53 = arith.mulf %51, %52 : vector<8x32xf32>
    %54 = vector.broadcast %31 : vector<1x32xf32> to vector<8x32xf32>
    %55 = arith.addf %53, %54 : vector<8x32xf32>
    %56 = arith.truncf %29 : vector<8x32xf32> to vector<8x32xbf16>
    %c0_24 = arith.constant 0 : index
    %c0_25 = arith.constant 0 : index
    %57 = vector.load %arg7[%c0_24, %c0_25] : memref<32x32xbf16, #tpu.memory_space<vmem>>, vector<32x32xbf16>
    %cst_26 = arith.constant dense<0.000000e+00> : vector<8x32xf32>
    %58 = tpu.matmul %56, %57, %cst_26 {dimension_numbers = #tpu.dot_dimension_numbers<[1], [0], [0], [1], [0, 0, 1, 1], [], []>} : vector<8x32xbf16>, vector<32x32xbf16>, vector<8x32xf32> -> vector<8x32xf32>
    %c0_27 = arith.constant 0 : index
    %c0_28 = arith.constant 0 : index
    %59 = vector.load %arg8[%c0_27, %c0_28] : memref<1x32xf32, #tpu.memory_space<vmem>>, vector<1x32xf32>
    %60 = vector.broadcast %59 : vector<1x32xf32> to vector<8x32xf32>
    %61 = arith.addf %58, %60 : vector<8x32xf32>
    %cst_29 = arith.constant 0.353553385 : f32
    %62 = vector.broadcast %cst_29 : f32 to vector<8x32xf32>
    %63 = arith.mulf %61, %62 : vector<8x32xf32>
    %64 = arith.truncf %55 : vector<8x32xf32> to vector<8x32xbf16>
    %c0_30 = arith.constant 0 : index
    %c0_31 = arith.constant 0 : index
    %65 = vector.load %arg9[%c0_30, %c0_31] : memref<32x64xbf16, #tpu.memory_space<vmem>>, vector<32x64xbf16>
    %cst_32 = arith.constant dense<0.000000e+00> : vector<8x64xf32>
    %66 = tpu.matmul %64, %65, %cst_32 {dimension_numbers = #tpu.dot_dimension_numbers<[1], [0], [0], [1], [0, 0, 1, 1], [], []>} : vector<8x32xbf16>, vector<32x64xbf16>, vector<8x64xf32> -> vector<8x64xf32>
    %c0_33 = arith.constant 0 : index
    %c0_34 = arith.constant 0 : index
    %67 = vector.load %arg10[%c0_33, %c0_34] : memref<1x64xf32, #tpu.memory_space<vmem>>, vector<1x64xf32>
    %68 = vector.broadcast %67 : vector<1x64xf32> to vector<8x64xf32>
    %69 = arith.addf %66, %68 : vector<8x64xf32>
    %70 = vector.extract_strided_slice %69 {offsets = [0, 0], sizes = [8, 32], strides = [1, 1]} : vector<8x64xf32> to vector<8x32xf32>
    %71 = vector.extract_strided_slice %69 {offsets = [0, 32], sizes = [8, 32], strides = [1, 1]} : vector<8x64xf32> to vector<8x32xf32>
    %72 = arith.truncf %63 : vector<8x32xf32> to vector<8x32xbf16>
    %73 = vector.shape_cast %72 : vector<8x32xbf16> to vector<8x4x8xbf16>
    %74 = tpu.transpose %73, [1, 0, 2] : vector<8x4x8xbf16> -> vector<4x8x8xbf16>
    %75 = arith.truncf %70 : vector<8x32xf32> to vector<8x32xbf16>
    %76 = vector.shape_cast %75 : vector<8x32xbf16> to vector<8x4x8xbf16>
    %77 = tpu.transpose %76, [1, 0, 2] : vector<8x4x8xbf16> -> vector<4x8x8xbf16>
    %78 = arith.truncf %71 : vector<8x32xf32> to vector<8x32xbf16>
    %79 = vector.shape_cast %78 : vector<8x32xbf16> to vector<8x4x8xbf16>
    %80 = tpu.transpose %79, [1, 0, 2] : vector<8x4x8xbf16> -> vector<4x8x8xbf16>
    %cst_35 = arith.constant dense<0.000000e+00> : vector<4x8x8xf32>
    %81 = tpu.matmul %74, %77, %cst_35 {dimension_numbers = #tpu.dot_dimension_numbers<[2], [2], [1], [1], [0, 0, 0, 1, 1, 1], [0], [0]>} : vector<4x8x8xbf16>, vector<4x8x8xbf16>, vector<4x8x8xf32> -> vector<4x8x8xf32>
    %cst_36 = arith.constant dense<0xFF800000> : vector<4x8xf32>
    %82 = vector.multi_reduction <maximumf>, %81, %cst_36 [2] : vector<4x8x8xf32> to vector<4x8xf32>
    %83 = vector.shape_cast %82 : vector<4x8xf32> to vector<4x8x1xf32>
    %84 = vector.broadcast %83 : vector<4x8x1xf32> to vector<4x8x8xf32>
    %85 = arith.subf %81, %84 : vector<4x8x8xf32>
    %86 = math.exp %85 : vector<4x8x8xf32>
    %cst_37 = arith.constant dense<0.000000e+00> : vector<4x8xf32>
    %87 = vector.multi_reduction <add>, %86, %cst_37 [2] : vector<4x8x8xf32> to vector<4x8xf32>
    %88 = vector.shape_cast %87 : vector<4x8xf32> to vector<4x8x1xf32>
    %89 = tpu.reciprocal %88 {approx = true} : vector<4x8x1xf32> -> vector<4x8x1xf32>
    %90 = vector.broadcast %89 : vector<4x8x1xf32> to vector<4x8x8xf32>
    %91 = arith.mulf %86, %90 : vector<4x8x8xf32>
    %92 = arith.truncf %91 : vector<4x8x8xf32> to vector<4x8x8xbf16>
    %cst_38 = arith.constant dense<0.000000e+00> : vector<4x8x8xf32>
    %93 = tpu.matmul %92, %80, %cst_38 {dimension_numbers = #tpu.dot_dimension_numbers<[2], [1], [1], [2], [0, 0, 0, 1, 1, 2], [0], [0]>} : vector<4x8x8xbf16>, vector<4x8x8xbf16>, vector<4x8x8xf32> -> vector<4x8x8xf32>
    %94 = tpu.transpose %93, [1, 0, 2] : vector<4x8x8xf32> -> vector<8x4x8xf32>
    %95 = vector.shape_cast %94 : vector<8x4x8xf32> to vector<8x32xf32>
    %96 = arith.truncf %95 : vector<8x32xf32> to vector<8x32xbf16>
    %c0_39 = arith.constant 0 : index
    %c0_40 = arith.constant 0 : index
    %97 = vector.load %arg11[%c0_39, %c0_40] : memref<32x32xbf16, #tpu.memory_space<vmem>>, vector<32x32xbf16>
    %cst_41 = arith.constant dense<0.000000e+00> : vector<8x32xf32>
    %98 = tpu.matmul %96, %97, %cst_41 {dimension_numbers = #tpu.dot_dimension_numbers<[1], [0], [0], [1], [0, 0, 1, 1], [], []>} : vector<8x32xbf16>, vector<32x32xbf16>, vector<8x32xf32> -> vector<8x32xf32>
    %c0_42 = arith.constant 0 : index
    %c0_43 = arith.constant 0 : index
    %99 = vector.load %arg12[%c0_42, %c0_43] : memref<1x32xf32, #tpu.memory_space<vmem>>, vector<1x32xf32>
    %100 = vector.broadcast %99 : vector<1x32xf32> to vector<8x32xf32>
    %101 = arith.addf %98, %100 : vector<8x32xf32>
    %102 = arith.addf %1, %101 : vector<8x32xf32>
    %c0_44 = arith.constant 0 : index
    %c0_45 = arith.constant 0 : index
    %103 = vector.load %arg13[%c0_44, %c0_45] : memref<1x32xf32, #tpu.memory_space<vmem>>, vector<1x32xf32>
    %c0_46 = arith.constant 0 : index
    %c0_47 = arith.constant 0 : index
    %104 = vector.load %arg14[%c0_46, %c0_47] : memref<1x32xf32, #tpu.memory_space<vmem>>, vector<1x32xf32>
    %cst_48 = arith.constant dense<0.000000e+00> : vector<8xf32>
    %105 = vector.multi_reduction <add>, %102, %cst_48 [1] : vector<8x32xf32> to vector<8xf32>
    %106 = vector.shape_cast %105 : vector<8xf32> to vector<8x1xf32>
    %cst_49 = arith.constant 3.200000e+01 : f32
    %107 = vector.broadcast %cst_49 : f32 to vector<8x1xf32>
    %108 = arith.divf %106, %107 : vector<8x1xf32>
    %109 = arith.mulf %102, %102 : vector<8x32xf32>
    %cst_50 = arith.constant dense<0.000000e+00> : vector<8xf32>
    %110 = vector.multi_reduction <add>, %109, %cst_50 [1] : vector<8x32xf32> to vector<8xf32>
    %111 = vector.shape_cast %110 : vector<8xf32> to vector<8x1xf32>
    %cst_51 = arith.constant 3.200000e+01 : f32
    %112 = vector.broadcast %cst_51 : f32 to vector<8x1xf32>
    %113 = arith.divf %111, %112 : vector<8x1xf32>
    %114 = arith.mulf %108, %108 : vector<8x1xf32>
    %115 = arith.subf %113, %114 : vector<8x1xf32>
    %cst_52 = arith.constant 0.000000e+00 : f32
    %116 = vector.broadcast %cst_52 : f32 to vector<8x1xf32>
    %117 = arith.maximumf %115, %116 : vector<8x1xf32>
    %118 = vector.broadcast %108 : vector<8x1xf32> to vector<8x32xf32>
    %119 = arith.subf %102, %118 : vector<8x32xf32>
    %cst_53 = arith.constant 9.99999974E-6 : f32
    %120 = vector.broadcast %cst_53 : f32 to vector<8x1xf32>
    %121 = arith.addf %117, %120 : vector<8x1xf32>
    %122 = math.rsqrt %121 : vector<8x1xf32>
    %123 = vector.broadcast %122 : vector<8x1xf32> to vector<8x32xf32>
    %124 = arith.mulf %119, %123 : vector<8x32xf32>
    %125 = vector.broadcast %103 : vector<1x32xf32> to vector<8x32xf32>
    %126 = arith.mulf %124, %125 : vector<8x32xf32>
    %127 = vector.broadcast %104 : vector<1x32xf32> to vector<8x32xf32>
    %128 = arith.addf %126, %127 : vector<8x32xf32>
    %129 = arith.truncf %128 : vector<8x32xf32> to vector<8x32xbf16>
    %c0_54 = arith.constant 0 : index
    %c0_55 = arith.constant 0 : index
    %130 = vector.load %arg15[%c0_54, %c0_55] : memref<32x96xbf16, #tpu.memory_space<vmem>>, vector<32x96xbf16>
    %cst_56 = arith.constant dense<0.000000e+00> : vector<8x96xf32>
    %131 = tpu.matmul %129, %130, %cst_56 {dimension_numbers = #tpu.dot_dimension_numbers<[1], [0], [0], [1], [0, 0, 1, 1], [], []>} : vector<8x32xbf16>, vector<32x96xbf16>, vector<8x96xf32> -> vector<8x96xf32>
    %c0_57 = arith.constant 0 : index
    %c0_58 = arith.constant 0 : index
    %132 = vector.load %arg16[%c0_57, %c0_58] : memref<1x96xf32, #tpu.memory_space<vmem>>, vector<1x96xf32>
    %133 = vector.broadcast %132 : vector<1x96xf32> to vector<8x96xf32>
    %134 = arith.addf %131, %133 : vector<8x96xf32>
    %135 = vector.extract_strided_slice %134 {offsets = [0, 0], sizes = [8, 32], strides = [1, 1]} : vector<8x96xf32> to vector<8x32xf32>
    %cst_59 = arith.constant 0.353553385 : f32
    %136 = vector.broadcast %cst_59 : f32 to vector<8x32xf32>
    %137 = arith.mulf %135, %136 : vector<8x32xf32>
    %138 = vector.extract_strided_slice %134 {offsets = [0, 32], sizes = [8, 32], strides = [1, 1]} : vector<8x96xf32> to vector<8x32xf32>
    %139 = vector.extract_strided_slice %134 {offsets = [0, 64], sizes = [8, 32], strides = [1, 1]} : vector<8x96xf32> to vector<8x32xf32>
    %140 = arith.truncf %137 : vector<8x32xf32> to vector<8x32xbf16>
    %141 = vector.shape_cast %140 : vector<8x32xbf16> to vector<8x4x8xbf16>
    %142 = tpu.transpose %141, [1, 0, 2] : vector<8x4x8xbf16> -> vector<4x8x8xbf16>
    %143 = arith.truncf %138 : vector<8x32xf32> to vector<8x32xbf16>
    %144 = vector.shape_cast %143 : vector<8x32xbf16> to vector<8x4x8xbf16>
    %145 = tpu.transpose %144, [1, 0, 2] : vector<8x4x8xbf16> -> vector<4x8x8xbf16>
    %146 = arith.truncf %139 : vector<8x32xf32> to vector<8x32xbf16>
    %147 = vector.shape_cast %146 : vector<8x32xbf16> to vector<8x4x8xbf16>
    %148 = tpu.transpose %147, [1, 0, 2] : vector<8x4x8xbf16> -> vector<4x8x8xbf16>
    %cst_60 = arith.constant dense<0.000000e+00> : vector<4x8x8xf32>
    %149 = tpu.matmul %142, %145, %cst_60 {dimension_numbers = #tpu.dot_dimension_numbers<[2], [2], [1], [1], [0, 0, 0, 1, 1, 1], [0], [0]>} : vector<4x8x8xbf16>, vector<4x8x8xbf16>, vector<4x8x8xf32> -> vector<4x8x8xf32>
    %cst_61 = arith.constant dense<0xFF800000> : vector<4x8xf32>
    %150 = vector.multi_reduction <maximumf>, %149, %cst_61 [2] : vector<4x8x8xf32> to vector<4x8xf32>
    %151 = vector.shape_cast %150 : vector<4x8xf32> to vector<4x8x1xf32>
    %152 = vector.broadcast %151 : vector<4x8x1xf32> to vector<4x8x8xf32>
    %153 = arith.subf %149, %152 : vector<4x8x8xf32>
    %154 = math.exp %153 : vector<4x8x8xf32>
    %cst_62 = arith.constant dense<0.000000e+00> : vector<4x8xf32>
    %155 = vector.multi_reduction <add>, %154, %cst_62 [2] : vector<4x8x8xf32> to vector<4x8xf32>
    %156 = vector.shape_cast %155 : vector<4x8xf32> to vector<4x8x1xf32>
    %157 = tpu.reciprocal %156 {approx = true} : vector<4x8x1xf32> -> vector<4x8x1xf32>
    %158 = vector.broadcast %157 : vector<4x8x1xf32> to vector<4x8x8xf32>
    %159 = arith.mulf %154, %158 : vector<4x8x8xf32>
    %160 = arith.truncf %159 : vector<4x8x8xf32> to vector<4x8x8xbf16>
    %cst_63 = arith.constant dense<0.000000e+00> : vector<4x8x8xf32>
    %161 = tpu.matmul %160, %148, %cst_63 {dimension_numbers = #tpu.dot_dimension_numbers<[2], [1], [1], [2], [0, 0, 0, 1, 1, 2], [0], [0]>} : vector<4x8x8xbf16>, vector<4x8x8xbf16>, vector<4x8x8xf32> -> vector<4x8x8xf32>
    %162 = tpu.transpose %161, [1, 0, 2] : vector<4x8x8xf32> -> vector<8x4x8xf32>
    %163 = vector.shape_cast %162 : vector<8x4x8xf32> to vector<8x32xf32>
    %164 = arith.truncf %163 : vector<8x32xf32> to vector<8x32xbf16>
    %c0_64 = arith.constant 0 : index
    %c0_65 = arith.constant 0 : index
    %165 = vector.load %arg17[%c0_64, %c0_65] : memref<32x32xbf16, #tpu.memory_space<vmem>>, vector<32x32xbf16>
    %cst_66 = arith.constant dense<0.000000e+00> : vector<8x32xf32>
    %166 = tpu.matmul %164, %165, %cst_66 {dimension_numbers = #tpu.dot_dimension_numbers<[1], [0], [0], [1], [0, 0, 1, 1], [], []>} : vector<8x32xbf16>, vector<32x32xbf16>, vector<8x32xf32> -> vector<8x32xf32>
    %c0_67 = arith.constant 0 : index
    %c0_68 = arith.constant 0 : index
    %167 = vector.load %arg18[%c0_67, %c0_68] : memref<1x32xf32, #tpu.memory_space<vmem>>, vector<1x32xf32>
    %168 = vector.broadcast %167 : vector<1x32xf32> to vector<8x32xf32>
    %169 = arith.addf %166, %168 : vector<8x32xf32>
    %170 = arith.addf %102, %169 : vector<8x32xf32>
    %c0_69 = arith.constant 0 : index
    %c0_70 = arith.constant 0 : index
    %171 = vector.load %arg19[%c0_69, %c0_70] : memref<1x32xf32, #tpu.memory_space<vmem>>, vector<1x32xf32>
    %c0_71 = arith.constant 0 : index
    %c0_72 = arith.constant 0 : index
    %172 = vector.load %arg20[%c0_71, %c0_72] : memref<1x32xf32, #tpu.memory_space<vmem>>, vector<1x32xf32>
    %cst_73 = arith.constant dense<0.000000e+00> : vector<8xf32>
    %173 = vector.multi_reduction <add>, %170, %cst_73 [1] : vector<8x32xf32> to vector<8xf32>
    %174 = vector.shape_cast %173 : vector<8xf32> to vector<8x1xf32>
    %cst_74 = arith.constant 3.200000e+01 : f32
    %175 = vector.broadcast %cst_74 : f32 to vector<8x1xf32>
    %176 = arith.divf %174, %175 : vector<8x1xf32>
    %177 = arith.mulf %170, %170 : vector<8x32xf32>
    %cst_75 = arith.constant dense<0.000000e+00> : vector<8xf32>
    %178 = vector.multi_reduction <add>, %177, %cst_75 [1] : vector<8x32xf32> to vector<8xf32>
    %179 = vector.shape_cast %178 : vector<8xf32> to vector<8x1xf32>
    %cst_76 = arith.constant 3.200000e+01 : f32
    %180 = vector.broadcast %cst_76 : f32 to vector<8x1xf32>
    %181 = arith.divf %179, %180 : vector<8x1xf32>
    %182 = arith.mulf %176, %176 : vector<8x1xf32>
    %183 = arith.subf %181, %182 : vector<8x1xf32>
    %cst_77 = arith.constant 0.000000e+00 : f32
    %184 = vector.broadcast %cst_77 : f32 to vector<8x1xf32>
    %185 = arith.maximumf %183, %184 : vector<8x1xf32>
    %186 = vector.broadcast %176 : vector<8x1xf32> to vector<8x32xf32>
    %187 = arith.subf %170, %186 : vector<8x32xf32>
    %cst_78 = arith.constant 9.99999974E-6 : f32
    %188 = vector.broadcast %cst_78 : f32 to vector<8x1xf32>
    %189 = arith.addf %185, %188 : vector<8x1xf32>
    %190 = math.rsqrt %189 : vector<8x1xf32>
    %191 = vector.broadcast %190 : vector<8x1xf32> to vector<8x32xf32>
    %192 = arith.mulf %187, %191 : vector<8x32xf32>
    %193 = vector.broadcast %171 : vector<1x32xf32> to vector<8x32xf32>
    %194 = arith.mulf %192, %193 : vector<8x32xf32>
    %195 = vector.broadcast %172 : vector<1x32xf32> to vector<8x32xf32>
    %196 = arith.addf %194, %195 : vector<8x32xf32>
    %197 = arith.truncf %196 : vector<8x32xf32> to vector<8x32xbf16>
    %c0_79 = arith.constant 0 : index
    %c0_80 = arith.constant 0 : index
    %198 = vector.load %arg21[%c0_79, %c0_80] : memref<32x128xbf16, #tpu.memory_space<vmem>>, vector<32x128xbf16>
    %cst_81 = arith.constant dense<0.000000e+00> : vector<8x128xf32>
    %199 = tpu.matmul %197, %198, %cst_81 {dimension_numbers = #tpu.dot_dimension_numbers<[1], [0], [0], [1], [0, 0, 1, 1], [], []>} : vector<8x32xbf16>, vector<32x128xbf16>, vector<8x128xf32> -> vector<8x128xf32>
    %c0_82 = arith.constant 0 : index
    %c0_83 = arith.constant 0 : index
    %200 = vector.load %arg22[%c0_82, %c0_83] : memref<1x128xf32, #tpu.memory_space<vmem>>, vector<1x128xf32>
    %201 = vector.broadcast %200 : vector<1x128xf32> to vector<8x128xf32>
    %202 = arith.addf %199, %201 : vector<8x128xf32>
    %203 = arith.mulf %202, %202 : vector<8x128xf32>
    %204 = arith.mulf %202, %203 : vector<8x128xf32>
    %cst_84 = arith.constant 4.471500e-02 : f32
    %205 = vector.broadcast %cst_84 : f32 to vector<8x128xf32>
    %206 = arith.mulf %205, %204 : vector<8x128xf32>
    %207 = arith.addf %202, %206 : vector<8x128xf32>
    %cst_85 = arith.constant 0.797884583 : f32
    %208 = vector.broadcast %cst_85 : f32 to vector<8x128xf32>
    %209 = arith.mulf %208, %207 : vector<8x128xf32>
    %210 = math.tanh %209 : vector<8x128xf32>
    %cst_86 = arith.constant 1.000000e+00 : f32
    %211 = vector.broadcast %cst_86 : f32 to vector<8x128xf32>
    %212 = arith.addf %211, %210 : vector<8x128xf32>
    %cst_87 = arith.constant 5.000000e-01 : f32
    %213 = vector.broadcast %cst_87 : f32 to vector<8x128xf32>
    %214 = arith.mulf %213, %212 : vector<8x128xf32>
    %215 = arith.mulf %202, %214 : vector<8x128xf32>
    %216 = arith.truncf %215 : vector<8x128xf32> to vector<8x128xbf16>
    %c0_88 = arith.constant 0 : index
    %c0_89 = arith.constant 0 : index
    %217 = vector.load %arg23[%c0_88, %c0_89] : memref<128x32xbf16, #tpu.memory_space<vmem>>, vector<128x32xbf16>
    %cst_90 = arith.constant dense<0.000000e+00> : vector<8x32xf32>
    %218 = tpu.matmul %216, %217, %cst_90 {dimension_numbers = #tpu.dot_dimension_numbers<[1], [0], [0], [1], [0, 0, 1, 1], [], []>} : vector<8x128xbf16>, vector<128x32xbf16>, vector<8x32xf32> -> vector<8x32xf32>
    %c0_91 = arith.constant 0 : index
    %c0_92 = arith.constant 0 : index
    %219 = vector.load %arg24[%c0_91, %c0_92] : memref<1x32xf32, #tpu.memory_space<vmem>>, vector<1x32xf32>
    %220 = vector.broadcast %219 : vector<1x32xf32> to vector<8x32xf32>
    %221 = arith.addf %218, %220 : vector<8x32xf32>
    %222 = arith.addf %170, %221 : vector<8x32xf32>
    %c0_93 = arith.constant 0 : index
    %c0_94 = arith.constant 0 : index
    %c0_95 = arith.constant 0 : index
    %223 = vector.load %arg25[%c0_93, %c0_94, %c0_95] : memref<1x8x32xf32, #tpu.memory_space<vmem>>, vector<1x8x32xf32>
    %224 = vector.shape_cast %223 : vector<1x8x32xf32> to vector<8x32xf32>
    %225 = vector.shape_cast %222 : vector<8x32xf32> to vector<1x8x32xf32>
    tpu.vector_store %arg25[%c0_93, %c0_94, %c0_95], %225 {strides = array<i32>} : memref<1x8x32xf32, #tpu.memory_space<vmem>>, vector<1x8x32xf32>,
    return
  }
  func.func @transform_0(%arg0: i32) -> (i32, i32, i32) {
    %c0_i32 = arith.constant 0 : i32
    %c0_i32_0 = arith.constant 0 : i32
    %c0_i32_1 = arith.constant 0 : i32
    return %arg0, %c0_i32, %c0_i32_0 : i32, i32, i32
  }
  func.func @transform_1(%arg0: i32) -> (i32, i32, i32) {
    %c0_i32 = arith.constant 0 : i32
    %c0_i32_0 = arith.constant 0 : i32
    %c0_i32_1 = arith.constant 0 : i32
    return %arg0, %c0_i32, %c0_i32_0 : i32, i32, i32
  }
  func.func @transform_2(%arg0: i32) -> (i32, i32) {
    %c0_i32 = arith.constant 0 : i32
    %c0_i32_0 = arith.constant 0 : i32
    %c0_i32_1 = arith.constant 0 : i32
    return %c0_i32, %c0_i32_0 : i32, i32
  }
  func.func @transform_3(%arg0: i32) -> (i32, i32) {
    %c0_i32 = arith.constant 0 : i32
    %c0_i32_0 = arith.constant 0 : i32
    %c0_i32_1 = arith.constant 0 : i32
    return %c0_i32, %c0_i32_0 : i32, i32
  }
  func.func @transform_4(%arg0: i32) -> (i32, i32) {
    %c0_i32 = arith.constant 0 : i32
    %c0_i32_0 = arith.constant 0 : i32
    %c0_i32_1 = arith.constant 0 : i32
    return %c0_i32, %c0_i32_0 : i32, i32
  }
  func.func @transform_5(%arg0: i32) -> (i32, i32) {
    %c0_i32 = arith.constant 0 : i32
    %c0_i32_0 = arith.constant 0 : i32
    %c0_i32_1 = arith.constant 0 : i32
    return %c0_i32, %c0_i32_0 : i32, i32
  }
  func.func @transform_6(%arg0: i32) -> (i32, i32) {
    %c0_i32 = arith.constant 0 : i32
    %c0_i32_0 = arith.constant 0 : i32
    %c0_i32_1 = arith.constant 0 : i32
    return %c0_i32, %c0_i32_0 : i32, i32
  }
  func.func @transform_7(%arg0: i32) -> (i32, i32) {
    %c0_i32 = arith.constant 0 : i32
    %c0_i32_0 = arith.constant 0 : i32
    %c0_i32_1 = arith.constant 0 : i32
    return %c0_i32, %c0_i32_0 : i32, i32
  }
  func.func @transform_8(%arg0: i32) -> (i32, i32) {
    %c0_i32 = arith.constant 0 : i32
    %c0_i32_0 = arith.constant 0 : i32
    %c0_i32_1 = arith.constant 0 : i32
    return %c0_i32, %c0_i32_0 : i32, i32
  }
  func.func @transform_9(%arg0: i32) -> (i32, i32) {
    %c0_i32 = arith.constant 0 : i32
    %c0_i32_0 = arith.constant 0 : i32
    %c0_i32_1 = arith.constant 0 : i32
    return %c0_i32, %c0_i32_0 : i32, i32
  }
  func.func @transform_10(%arg0: i32) -> (i32, i32) {
    %c0_i32 = arith.constant 0 : i32
    %c0_i32_0 = arith.constant 0 : i32
    %c0_i32_1 = arith.constant 0 : i32
    return %c0_i32, %c0_i32_0 : i32, i32
  }
  func.func @transform_11(%arg0: i32) -> (i32, i32) {
    %c0_i32 = arith.constant 0 : i32
    %c0_i32_0 = arith.constant 0 : i32
    %c0_i32_1 = arith.constant 0 : i32
    return %c0_i32, %c0_i32_0 : i32, i32
  }
  func.func @transform_12(%arg0: i32) -> (i32, i32) {
    %c0_i32 = arith.constant 0 : i32
    %c0_i32_0 = arith.constant 0 : i32
    %c0_i32_1 = arith.constant 0 : i32
    return %c0_i32, %c0_i32_0 : i32, i32
  }
  func.func @transform_13(%arg0: i32) -> (i32, i32) {
    %c0_i32 = arith.constant 0 : i32
    %c0_i32_0 = arith.constant 0 : i32
    %c0_i32_1 = arith.constant 0 : i32
    return %c0_i32, %c0_i32_0 : i32, i32
  }
  func.func @transform_14(%arg0: i32) -> (i32, i32) {
    %c0_i32 = arith.constant 0 : i32
    %c0_i32_0 = arith.constant 0 : i32
    %c0_i32_1 = arith.constant 0 : i32
    return %c0_i32, %c0_i32_0 : i32, i32
  }
  func.func @transform_15(%arg0: i32) -> (i32, i32) {
    %c0_i32 = arith.constant 0 : i32
    %c0_i32_0 = arith.constant 0 : i32
    %c0_i32_1 = arith.constant 0 : i32
    return %c0_i32, %c0_i32_0 : i32, i32
  }
  func.func @transform_16(%arg0: i32) -> (i32, i32) {
    %c0_i32 = arith.constant 0 : i32
    %c0_i32_0 = arith.constant 0 : i32
    %c0_i32_1 = arith.constant 0 : i32
    return %c0_i32, %c0_i32_0 : i32, i32
  }
  func.func @transform_17(%arg0: i32) -> (i32, i32) {
    %c0_i32 = arith.constant 0 : i32
    %c0_i32_0 = arith.constant 0 : i32
    %c0_i32_1 = arith.constant 0 : i32
    return %c0_i32, %c0_i32_0 : i32, i32
  }
  func.func @transform_18(%arg0: i32) -> (i32, i32) {
    %c0_i32 = arith.constant 0 : i32
    %c0_i32_0 = arith.constant 0 : i32
    %c0_i32_1 = arith.constant 0 : i32
    return %c0_i32, %c0_i32_0 : i32, i32
  }
  func.func @transform_19(%arg0: i32) -> (i32, i32) {
    %c0_i32 = arith.constant 0 : i32
    %c0_i32_0 = arith.constant 0 : i32
    %c0_i32_1 = arith.constant 0 : i32
    return %c0_i32, %c0_i32_0 : i32, i32
  }
  func.func @transform_20(%arg0: i32) -> (i32, i32) {
    %c0_i32 = arith.constant 0 : i32
    %c0_i32_0 = arith.constant 0 : i32
    %c0_i32_1 = arith.constant 0 : i32
    return %c0_i32, %c0_i32_0 : i32, i32
  }
  func.func @transform_21(%arg0: i32) -> (i32, i32) {
    %c0_i32 = arith.constant 0 : i32
    %c0_i32_0 = arith.constant 0 : i32
    %c0_i32_1 = arith.constant 0 : i32
    return %c0_i32, %c0_i32_0 : i32, i32
  }
  func.func @transform_22(%arg0: i32) -> (i32, i32) {
    %c0_i32 = arith.constant 0 : i32
    %c0_i32_0 = arith.constant 0 : i32
    %c0_i32_1 = arith.constant 0 : i32
    return %c0_i32, %c0_i32_0 : i32, i32
  }
  func.func @transform_23(%arg0: i32) -> (i32, i32) {
    %c0_i32 = arith.constant 0 : i32
    %c0_i32_0 = arith.constant 0 : i32
    %c0_i32_1 = arith.constant 0 : i32
    return %c0_i32, %c0_i32_0 : i32, i32
  }
  func.func @transform_24(%arg0: i32) -> (i32, i32, i32) {
    %c0_i32 = arith.constant 0 : i32
    %c0_i32_0 = arith.constant 0 : i32
    %c0_i32_1 = arith.constant 0 : i32
    return %arg0, %c0_i32, %c0_i32_0 : i32, i32, i32
  }
}

</mosaic_0001>

<bundles_post_ra>
// kernel: tpu_custom_call.1
= control target key start
LH: loop header
LB: loop body
LE: loop exit
PB: predicated region body
PF: predicated region fallthrough
CT: control target
= control target key end

     0   :  { %s4770_s0 = inlined_call_operand.vmem [shape: f32[2,8,32], index: 0, kind: input, shape index: {}]   ;;  %s4771_s1 = inlined_call_operand.vmem [shape: f32[2,8,32], index: 1, kind: input, shape index: {}]   ;;  %s4772_s2 = inlined_call_operand.vmem [shape: f32[1,32], index: 2, kind: input, shape index: {}]   ;;  %s4773_s3 = inlined_call_operand.vmem [shape: f32[1,32], index: 3, kind: input, shape index: {}]   ;;  %s4774_s4 = inlined_call_operand.vmem [shape: f32[1,32], index: 4, kind: input, shape index: {}]   ;;  %s4775_s5 = inlined_call_operand.vmem [shape: f32[1,32], index: 5, kind: input, shape index: {}]   ;;  %s4776_s6 = inlined_call_operand.vmem [shape: bf16[32,32], index: 6, kind: input, shape index: {}]   ;;  %s4777_s7 = inlined_call_operand.vmem [shape: f32[1,32], index: 7, kind: input, shape index: {}]   ;;  %s4778_s8 = inlined_call_operand.vmem [shape: bf16[32,64], index: 8, kind: input, shape index: {}]   ;;  %s4779_s9 = inlined_call_operand.hbm [shape: f32[1,64], index: 9, kind: input, shape index: {}]   ;;  %s4780_s10 = inlined_call_operand.vmem [shape: bf16[32,32], index: 10, kind: input, shape index: {}]   ;;  %s4781_s11 = inlined_call_operand.hbm [shape: f32[1,32], index: 11, kind: input, shape index: {}]   ;;  %s4782_s12 = inlined_call_operand.hbm [shape: f32[1,32], index: 12, kind: input, shape index: {}]   ;;  %s4783_s13 = inlined_call_operand.hbm [shape: f32[1,32], index: 13, kind: input, shape index: {}]   ;;  %s4784_s14 = inlined_call_operand.hbm [shape: bf16[32,96], index: 14, kind: input, shape index: {}]   ;;  %s4785_s15 = inlined_call_operand.hbm [shape: f32[1,96], index: 15, kind: input, shape index: {}]   ;;  %s4786_s16 = inlined_call_operand.hbm [shape: bf16[32,32], index: 16, kind: input, shape index: {}]   ;;  %s4787_s17 = inlined_call_operand.hbm [shape: f32[1,32], index: 17, kind: input, shape index: {}]   ;;  %s4788_s18 = inlined_call_operand.hbm [shape: f32[1,32], index: 18, kind: input, shape index: {}]   ;;  %s4789_s19 = inlined_call_operand.hbm [shape: f32[1,32], index: 19, kind: input, shape index: {}]   ;;  %s4790_s20 = inlined_call_operand.hbm [shape: bf16[32,128], index: 20, kind: input, shape index: {}]   ;;  %s4791_s21 = inlined_call_operand.hbm [shape: f32[1,128], index: 21, kind: input, shape index: {}]   ;;  %s4792_s22 = inlined_call_operand.vmem [shape: bf16[128,32], index: 22, kind: input, shape index: {}]   ;;  %s4793_s23 = inlined_call_operand.hbm [shape: f32[1,32], index: 23, kind: input, shape index: {}]   ;;  %s4794_s24 = inlined_call_operand.hbm [shape: f32[2,8,32], index: 24, kind: output, shape index: {}]  }
   0x1   :  { %4805 = sst [smem:[#allocation39_spill]] %s4770_s0 }
   0x2   :  { %4806 = sst [smem:[#allocation40_spill]] %s4771_s1 }
   0x3   :  { %4807 = sst [smem:[#allocation41_spill]] %s4772_s2 }
   0x4   :  { %4808 = sst [smem:[#allocation42_spill]] %s4773_s3 }
   0x5   :  { %4809 = sst [smem:[#allocation43_spill]] %s4774_s4 }
   0x6   :  { %4810 = sst [smem:[#allocation44_spill]] %s4775_s5 }
   0x7   :  { %4811 = sst [smem:[#allocation45_spill]] %s4776_s6 }
   0x8   :  { %4812 = sst [smem:[#allocation46_spill]] %s4777_s7 }
   0x9   :  { %4813 = sst [smem:[#allocation47_spill]] %s4778_s8 }
   0xa   :  { %4814 = sst [smem:[#allocation48_spill]] %s4779_s9 }
   0xb   :  { %4815 = sst [smem:[#allocation49_spill]] %s4781_s11 }
   0xc   :  { %4816 = sst [smem:[#allocation50_spill]] %s4783_s13 }
   0xd   :  { %4817 = sst [smem:[#allocation51_spill]] %s4785_s15 }
   0xe   :  { %29 = vsyncpa [#allocation3], 0 }
   0xf   :  { %30 = vsyncpa [#allocation6], 0 }
  0x10   :  { %31 = vsyncpa [#allocation9], 0 }
  0x11   :  { %32 = vsyncpa [#allocation12], 0 }
  0x12   :  { %33 = vsyncpa [#allocation15], 0 }
  0x13   :  { %34 = vsyncpa [#allocation18], 0 }
  0x14   :  { %35 = vsyncpa [#allocation21], 0 }
  0x15   :  { %36 = vsyncpa [#allocation4], 0 }
  0x16   :  { %38 = vsyncpa [#allocation4 + $0x1], 0  ;;  %s4058_s5 = smov 0   ;;  %s4060_s26 = smov 0  }
  0x17   :  { %s4062_s27 = smov 0   ;;  %s4064_s28 = smov 0  }
  0x18 LB: > { %4818 = sst [smem:[#allocation32_spill]] %s3893_s5  ;;  %s4079_s6 = sadd.s32 4294967295, %s3905_s28   ;;  %s3905_s28 = sphi %s4064_s28, %s4847_s28   ;;  %s3901_s27 = sphi %s4062_s27, %s4849_s27   ;;  %s3897_s26 = sphi %s4060_s26, %s4851_s26   ;;  %s3893_s5 = sphi %s4058_s5, %s4850_s5  }
  0x19   : > { %4819 = sst [smem:[#allocation33_spill]] %s3901_s27  ;;  %s3024_s2 = sadd.s32 4294967294, %s3905_s28  }
  0x1a   : > { %4820 = sst [smem:[#allocation34_spill]] %s3905_s28  ;;  %s4083_s29 = sadd.s32 1, %s3905_s28  }
  0x1b   : > { %4821 = sst [smem:[#allocation35_spill]] %s4083_s29  ;;  %s565_s0 = sadd.s32 1, %s3901_s27 }
  0x1c   : > { %s562_s7 = ssub.s32 %s3905_s28, %s4083_s29  ;;  %p575_p0 = scmp.ne.s32.totalorder %s3901_s27, %s3897_s26 }
  0x1d   : > { %p563_p1 = scmp.eq.s32.totalorder %s562_s7, 0  ;;  %p576_p2 = scmp.eq.s32.totalorder %s4079_s6, 1 }
  0x1e   : > { %p581_p3 = scmp.ne.s32.totalorder %s3897_s26, %s3893_s5  ;;  %p582_p4 = scmp.eq.s32.totalorder %s3024_s2, 1 }
  0x1f   : > { %s4094_s30 = scalar_select %p563_p1, %s3901_s27, %s565_s0  }
  0x20   : > { %p4096_p5 = por %p576_p2, %p575_p0  ;;  %p4100_p6 = por %p582_p4, %p581_p3 }
  0x21   : > { %4822 = sst [smem:[#allocation36_spill]] %s4094_s30  ;;  %p3025_p7 = scmp.ge.s32.totalorder %s3905_s28, 1 }
  0x22   : > { %s4823_s3 = scalar_select %p4096_p5, 1, 0 }
  0x23   : > { %s4825_s25 = scalar_select %p4100_p6, 1, 0 }
  0x24   : > { %4824 = sst [smem:[#allocation37_spill]] %s4823_s3  ;;  %p589_p8 = scmp.lt.s32.totalorder %s3905_s28, 3 }
  0x25   : > { %4826 = sst [smem:[#allocation38_spill]] %s4825_s25  ;;  %p3281_p9 = scmp.eq.s32.totalorder %s4079_s6, 0 }
  0x26   : > { %p4107_p10 = pnand %p3025_p7, %p589_p8  ;;  %s4828_s11 = sld [smem:[#allocation49_spill]] }
  0x27   : > { %s3907_s0 = smov [#allocation5]   ;;  %s4829_s13 = sld [smem:[#allocation50_spill]] }
  0x28   : > { %p3237_p11 = pneg %p4107_p10  ;;  %s639_s7 = sshll.u32 %s3907_s0, 4  ;;  %s640_s7 = int_to_ptr.vmem [resolvable:$true] %s639_s7 }
  0x29   : > { %s4831_s15 = sld [smem:[#allocation51_spill]]  ;;  %s3908_s5 = smov [#allocation8]  }
  0x2a   : > { %p4121_p12 = pnand %p3281_p9, %p3237_p11  ;;  %s663_s0 = sshll.u32 %s3908_s5, 4  ;;  %s664_s0 = int_to_ptr.vmem [resolvable:$true] %s663_s0 }
  0x2b   : > { %s3909_s28 = smov [#allocation11]   ;;  %s3910_s4 = smov [#allocation14]  }
  0x2c   : > { %s637_s2 = sshll.u32 %s4828_s11, 4  ;;  %s689_s3 = sshll.u32 %s3909_s28, 4  ;;  %s638_s2 = int_to_ptr.hbm [resolvable:$true] %s637_s2  ;;  %s690_s3 = int_to_ptr.vmem [resolvable:$true] %s689_s3 }
  0x2d   : > { %s661_s29 = sshll.u32 %s4829_s13, 4  ;;  %s713_s13 = sshll.u32 %s4787_s17, 4  ;;  %s662_s29 = int_to_ptr.hbm [resolvable:$true] %s661_s29  ;;  %s714_s13 = int_to_ptr.hbm [resolvable:$true] %s713_s13 }
  0x2e   : > { %3243 = dma.hbm_to_vmem [thread:$0]  (!%p4121_p12), %s638_s2, 16, %s640_s7, [#allocation6]  }
  0x2f   : > { %s687_s11 = sshll.u32 %s4831_s15, 4  ;;  %s715_s5 = sshll.u32 %s3910_s4, 4  ;;  %s688_s11 = int_to_ptr.hbm [resolvable:$true] %s687_s11  ;;  %s716_s5 = int_to_ptr.vmem [resolvable:$true] %s715_s5 }
  0x30   : > { %3249 = dma.hbm_to_vmem [thread:$0]  (!%p4121_p12), %s662_s29, 16, %s664_s0, [#allocation9]  }
  0x31   : > { %3255 = dma.hbm_to_vmem [thread:$0]  (!%p4121_p12), %s688_s11, 16, %s690_s3, [#allocation12]  }
  0x32   : > { %s737_s2 = sshll.u32 %s4789_s19, 4  ;;  %s763_s0 = sshll.u32 %s4791_s21, 4  ;;  %s738_s2 = int_to_ptr.hbm [resolvable:$true] %s737_s2  ;;  %s764_s0 = int_to_ptr.hbm [resolvable:$true] %s763_s0 }
  0x33   : > { %3261 = dma.hbm_to_vmem [thread:$0]  (!%p4121_p12), %s714_s13, 16, %s716_s5, [#allocation15]  }
  0x34   : > { %s3911_s28 = smov [#allocation17]   ;;  %s3912_s11 = smov [#allocation20]  }
  0x35   : > { %s739_s27 = sshll.u32 %s3911_s28, 4  ;;  %s765_s3 = sshll.u32 %s3912_s11, 4  ;;  %s740_s27 = int_to_ptr.vmem [resolvable:$true] %s739_s27  ;;  %s766_s3 = int_to_ptr.vmem [resolvable:$true] %s765_s3 }
  0x36   : > { %3267 = dma.hbm_to_vmem [thread:$0]  (!%p4121_p12), %s738_s2, 16, %s740_s27, [#allocation18]  }
  0x37   : > { %s4832_s9 = sld [smem:[#allocation48_spill]]  ;;  %s649_s1 = sshll.u32 %s4782_s12, 4  ;;  %s650_s1 = int_to_ptr.hbm [resolvable:$true] %s649_s1 }
  0x38   : > { %3273 = dma.hbm_to_vmem [thread:$0]  (!%p4121_p12), %s764_s0, 16, %s766_s3, [#allocation21]  }
  0x39   : > { %s3913_s29 = smov [#allocation2]   ;;  %s3914_s2 = smov [#allocation7]  }
  0x3a   : > { %s624_s7 = sshll.u32 %s3913_s29, 4  ;;  %s651_s28 = sshll.u32 %s3914_s2, 4  ;;  %s625_s7 = int_to_ptr.vmem [resolvable:$true] %s624_s7  ;;  %s652_s28 = int_to_ptr.vmem [resolvable:$true] %s651_s28 }
  0x3b   : > { %s672_s15 = sshll.u32 %s4784_s14, 4  ;;  %s3915_s0 = smov [#allocation10]   ;;  %s673_s15 = int_to_ptr.hbm [resolvable:$true] %s672_s15 }
  0x3c   : > { %3246 = dma.hbm_to_vmem [thread:$0]  (!%p4121_p12), %s650_s1, 16, %s652_s28, [#allocation6]  }
  0x3d   : > { %s622_s4 = sshll.u32 %s4832_s9, 4  ;;  %s674_s3 = sshll.u32 %s3915_s0, 4  ;;  %s623_s4 = int_to_ptr.hbm [resolvable:$true] %s622_s4  ;;  %s675_s3 = int_to_ptr.vmem [resolvable:$true] %s674_s3 }
  0x3e   : > { %3240 = dma.hbm_to_vmem [thread:$0]  (!%p4121_p12), %s623_s4, 16, %s625_s7, [#allocation3]  }
  0x3f   : > { %s698_s5 = sshll.u32 %s4786_s16, 4  ;;  %s3916_s4 = smov 64   ;;  %s699_s5 = int_to_ptr.hbm [resolvable:$true] %s698_s5 }
  0x40   : > { %s3917_s29 = smov 4   ;;  %s3918_s7 = smov [#allocation13]  }
  0x41   : > { %3252 = dma.hbm_to_vmem [thread:$0]  (!%p4121_p12), %s673_s15, 256, %s675_s3, [#allocation9], %s3916_s4, %s3916_s4, %s3917_s29  }
  0x42   : > { %s700_s2 = sshll.u32 %s3918_s7, 4  ;;  %s725_s1 = sshll.u32 %s4788_s18, 4  ;;  %s701_s2 = int_to_ptr.vmem [resolvable:$true] %s700_s2  ;;  %s726_s1 = int_to_ptr.hbm [resolvable:$true] %s725_s1 }
  0x43   : > { %3258 = dma.hbm_to_vmem [thread:$0]  (!%p4121_p12), %s699_s5, 256, %s701_s2, [#allocation12], %s3916_s4, %s3916_s4, %s3917_s29  }
  0x44   : > { %s748_s30 = sshll.u32 %s4790_s20, 4  ;;  %s3919_s13 = smov [#allocation16]   ;;  %s749_s30 = int_to_ptr.hbm [resolvable:$true] %s748_s30 }
  0x45   : > { %s727_s9 = sshll.u32 %s3919_s13, 4  ;;  %s3920_s15 = smov [#allocation19]   ;;  %s728_s9 = int_to_ptr.vmem [resolvable:$true] %s727_s9 }
  0x46   : > { %3264 = dma.hbm_to_vmem [thread:$0]  (!%p4121_p12), %s726_s1, 16, %s728_s9, [#allocation15]  }
  0x47   : > { %s750_s3 = sshll.u32 %s3920_s15, 4  ;;  %s778_s11 = sshll.u32 %s4793_s23, 4  ;;  %s751_s3 = int_to_ptr.vmem [resolvable:$true] %s750_s3  ;;  %s779_s11 = int_to_ptr.hbm [resolvable:$true] %s778_s11 }
  0x48   : > { %3270 = dma.hbm_to_vmem [thread:$0]  (!%p4121_p12), %s749_s30, 256, %s751_s3, [#allocation18], %s3916_s4, %s3916_s4, %s3917_s29  }
  0x49   : > { %s3921_s5 = smov [#allocation22]   ;;  %807 = sbr.rel (%p4107_p10) target bundleno = 3139 (0xc43), region = 116 }
  0x4a   : > { %s780_s2 = sshll.u32 %s3921_s5, 4  ;;  %s781_s2 = int_to_ptr.vmem [resolvable:$true] %s780_s2 }
  0x4b   : > { %3276 = dma.hbm_to_vmem [thread:$0]  (!%p4121_p12), %s779_s11, 16, %s781_s2, [#allocation21]  }
  0x4e   : > { %3860 = dma.done.wait (%p3281_p9), [#allocation3], 16  }
  0x4f   : > { %3862 = vsyncadd (%p3281_p9), [#allocation3], 4294967280 }
  0x50   : > { %3864 = dma.done.wait (%p3281_p9), [#allocation6], 32  }
  0x51   : > { %3866 = vsyncadd (%p3281_p9), [#allocation6], 4294967264 }
  0x52   : > { %3868 = dma.done.wait (%p3281_p9), [#allocation9], 272  }
  0x53   : > { %3870 = vsyncadd (%p3281_p9), [#allocation9], 4294967024 }
  0x54   : > { %3872 = dma.done.wait (%p3281_p9), [#allocation12], 272  }
  0x55   : > { %3874 = vsyncadd (%p3281_p9), [#allocation12], 4294967024 }
  0x56   : > { %3876 = dma.done.wait (%p3281_p9), [#allocation15], 32  }
  0x57   : > { %3878 = vsyncadd (%p3281_p9), [#allocation15], 4294967264 }
  0x58   : > { %3880 = dma.done.wait (%p3281_p9), [#allocation18], 272  }
  0x59   : > { %3882 = vsyncadd (%p3281_p9), [#allocation18], 4294967024 }
  0x5a   : > { %3884 = dma.done.wait (%p3281_p9), [#allocation21], 32  }
  0x5b   : > { %3886 = vsyncadd (%p3281_p9), [#allocation21], 4294967264  ;;  %p937_p13 = scmp.lt.s32.totalorder %s4079_s6, 1  ;;  %s4833_s29 = sld [smem:[#allocation40_spill]]  ;;  %vm950_vm0 = vcmask 261120   ;;  %v3922_v8 = vmov 32.0  }
  0x5c   : > { %s4834_s30 = sld [smem:[#allocation39_spill]]  ;;  %3381 = vrcp.f32 %v3922_v8  ;;  %v3371_v63 = vld [vmem:[#allocation2] ss:$0 sm:$0xff]  ;;  %s3926_s0 = smov 112   ;;  %vm1132_vm8 = vcmask 1047556   ;;  %vm1468_vm9 = vcmask 64512  }
  0x5d   : > { %s938_s9 = scalar_select %p937_p13, %s4079_s6, 1  ;;  %vm1596_vm10 = vcmask 1043456   ;;  %vm1794_vm11 = vcmask 130048   ;;  %vm1796_vm12 = vcmask 195584  }
  0x5e   : > { %s4835_s7 = sld [smem:[#allocation45_spill]]  ;;  %s3931_s15 = smov 8  }
  0x5f   : > { %s3055_s25 = sshll.u32 %s938_s9, 3  ;;  %s4836_s5 = sld [smem:[#allocation47_spill]] }
  0x60   : > { %s4838_s28 = sld [smem:[#allocation43_spill]]  ;;  %s934_s8 = sand.u32 1, %s3897_s26  }
  0x61   : > { %s944_s1 = scalar_lea.vmem %s4833_s29, %s3055_s25  ;;  %s4840_s27 = sld [smem:[#allocation44_spill]] }
  0x62   : > { %s940_s13 = scalar_lea.vmem %s4834_s30, %s3055_s25  ;;  %v4222_v0 = vld [vmem:[%s944_s1] sm:$0xff]  ;;  %v3382_v9 = vpop.eup %3381  ;;  %s4841_s9 = sld [smem:[#allocation42_spill]] }
  0x63   : > { %v4224_v1 = vld [vmem:[%s940_s13] sm:$0xff]  ;;  %v993_v2 = vsel %vm950_vm0, %v4222_v0, 0.0  ;;  %v997_v4 = vmul.f32 %v4222_v0, %v4222_v0  ;;  %v955_v10 = vmul.f32 32.0, %v3382_v9  ;;  %vm959_vm1 = vweird.f32 %v3382_v9  ;;  %s4839_s13 = sld [smem:[#allocation41_spill]]  ;;  %s3923_s29 = smov 104  }
  0x64   : > { %v951_v3 = vsel %vm950_vm0, %v4224_v1, 0.0  ;;  %994 = vadd.xlane.f32.xlu0 %v993_v2  ;;  %v962_v5 = vmul.f32 %v4224_v1, %v4224_v1  ;;  %v3164_v16 = vld [vmem:[%s4835_s7 + $0x8] sm:$0xff]  ;;  %v3163_v19 = vld [vmem:[%s4835_s7] sm:$0xff]  ;;  %s4842_s4 = sld [smem:[#allocation46_spill]]  ;;  %s3924_s1 = smov 120  }
  0x65   : > { %952 = vadd.xlane.f32.xlu1 %v951_v3  ;;  %v998_v6 = vsel %vm950_vm0, %v997_v4, 0.0  ;;  %v956_v11 = vsub.f32 1.0, %v955_v10  ;;  %s4837_s2 = smov %s4836_s5  ;;  %v3166_v17 = vld [vmem:[%s4836_s5 + $0x8] sm:$0xff]  ;;  %1056 = vmatpush.bf16.msra.mxu0 %v3164_v16  ;;  %s3929_s30 = smov 24  }
  0x66   : > { %v963_v7 = vsel %vm950_vm0, %v962_v5, 0.0  ;;  %1094 = vmatpush.bf16.msra.mxu1 %v3166_v17  ;;  %v3165_v20 = vld [vmem:[%s4837_s2] sm:$0xff]  ;;  %s3835_s25 = scalar_lea.hbm %s4794_s24, 16 }
  0x67   : > { %v957_v12 = vmul.f32 %v3382_v9, %v956_v11  ;;  %v3368_v48 = vld [vmem:[%s4838_s28] ss:$0 sm:$0xff]  ;;  %s3925_s28 = smov 96  }
  0x68   : > { %v3369_v54 = vld [vmem:[%s4840_s27] ss:$0 sm:$0xff]  ;;  %s2812_s27 = scalar_lea.sflag [#allocation4], %s934_s8 }
  0x69   : > { %v958_v13 = vadd.f32 %v3382_v9, %v957_v12  ;;  %1057 = vmatpush.bf16.msra.mxu0 %v3163_v19  ;;  %v3366_v50 = vld [vmem:[%s4839_s13] ss:$0 sm:$0xff]  ;;  %s3930_s13 = smov 16  }
  0x6a   : > { %1095 = vmatpush.bf16.msra.mxu1 %v3165_v20  ;;  %v3367_v56 = vld [vmem:[%s4841_s9] ss:$0 sm:$0xff]  ;;  %s3932_s9 = smov 64  }
  0x6b   : > { %v4242_v18 = vsel %vm959_vm1, %v3382_v9, %v958_v13  ;;  %v3927_v13 = vmov 1983009808  }
  0x6c   : > { %999 = vadd.xlane.f32.xlu0 %v998_v6 }
  0x6d   : > { %964 = vadd.xlane.f32.xlu1 %v963_v7 }
  0xd7   : > { %v995_v14 = vpop.xlane.xlu0 %994 }
  0xd8   : > { %v953_v15 = vpop.xlane.xlu1 %952  ;;  %v996_v21 = vmul.f32 %v995_v14, %v4242_v18  ;;  %v1123_v14 = vunpack.c.l.s4 %v3927_v13 }
  0xd9   : > { %v961_v22 = vmul.f32 %v4242_v18, %v953_v15 }
  0xda   : > { %v1002_v25 = vmul.f32 %v996_v21, %v996_v21  ;;  %v1005_v46 = vsub.f32 %v4222_v0, %v996_v21  ;;  %v3370_v0 = vld [vmem:[%s4842_s4] ss:$0 sm:$0xff]  ;;  %v4285_v17 = vunpack.c.0.s8 %v1123_v14  ;;  %s3054_s4 = sshll.u32 %s934_s8, 3 }
  0xdb   : > { %v967_v26 = vmul.f32 %v961_v22, %v961_v22  ;;  %v970_v49 = vsub.f32 %v4224_v1, %v961_v22 }
  0xdf   : > { %v1000_v23 = vpop.xlane.xlu0 %999 }
  0xe0   : > { %v965_v24 = vpop.xlane.xlu1 %964  ;;  %v1001_v27 = vmul.f32 %v1000_v23, %v4242_v18  ;;  %v3928_v23 = vmov 1934713408  }
  0xe1   : > { %v966_v28 = vmul.f32 %v965_v24, %v4242_v18  ;;  %v1137_v24 = vunpack.c.l.s4 %v3928_v23 }
  0xe2   : > { %v1003_v29 = vsub.f32 %v1001_v27, %v1002_v25 }
  0xe3   : > { %v968_v30 = vsub.f32 %v966_v28, %v967_v26 }
  0xe4   : > { %v1004_v31 = vmax.f32 %v1003_v29, 0.0 }
  0xe5   : > { %v969_v32 = vmax.f32 %v968_v30, 0.0 }
  0xe6   : > { %v1006_v33 = vadd.f32 1e-05, %v1004_v31 }
  0xe7   : > { %v971_v34 = vadd.f32 1e-05, %v969_v32 }
  0xe8   : > { %3383 = vrsqrt.f32 %v1006_v33  ;;  %vm1013_vm4 = vweird.f32 %v1006_v33 }
  0xe9   : > { %3385 = vrsqrt.f32 %v971_v34  ;;  %vm978_vm6 = vweird.f32 %v971_v34 }
  0xee   : > { %v3384_v35 = vpop.eup %3383 }
  0xef   : > { %v3386_v36 = vpop.eup %3385  ;;  %v1008_v37 = vmul.f32 %v3384_v35, %v1006_v33  ;;  %vm1014_vm2 = vweird.f32 %v3384_v35 }
  0xf0   : > { %v973_v38 = vmul.f32 %v3386_v36, %v971_v34  ;;  %vm979_vm3 = vweird.f32 %v3386_v36  ;;  %vm1015_vm5 = vmor %vm1013_vm4, %vm1014_vm2 }
  0xf1   : > { %v1009_v39 = vmul.f32 %v3384_v35, %v1008_v37  ;;  %vm980_vm7 = vmor %vm978_vm6, %vm979_vm3 }
  0xf2   : > { %v974_v40 = vmul.f32 %v3386_v36, %v973_v38 }
  0xf3   : > { %v1010_v41 = vmul.f32 0.5, %v1009_v39 }
  0xf4   : > { %v975_v42 = vmul.f32 0.5, %v974_v40 }
  0xf5   : > { %v1011_v43 = vsub.f32 1.5, %v1010_v41 }
  0xf6   : > { %v976_v44 = vsub.f32 1.5, %v975_v42 }
  0xf7   : > { %v1012_v45 = vmul.f32 %v3384_v35, %v1011_v43 }
  0xf8   : > { %v977_v47 = vmul.f32 %v3386_v36, %v976_v44 }
  0xf9   : > { %v1016_v51 = vsel %vm1015_vm5, %v3384_v35, %v1012_v45  ;;  %v4296_v35 = vunpack.c.0.s8 %v1137_v24 }
  0xfa   : > { %v981_v52 = vsel %vm980_vm7, %v3386_v36, %v977_v47  ;;  %v1017_v53 = vmul.f32 %v1016_v51, %v1005_v46 }
  0xfb   : > { %v982_v55 = vmul.f32 %v981_v52, %v970_v49 }
  0xfc   : > { %v1021_v57 = vmul.f32 %v3368_v48, %v1017_v53 }
  0xfd   : > { %v986_v58 = vmul.f32 %v3366_v50, %v982_v55 }
  0xfe   : > { %v1025_v59 = vadd.f32 %v3369_v54, %v1021_v57 }
  0xff   : > { %v990_v60 = vadd.f32 %v3367_v56, %v986_v58 }
 0x100   : > { %v1064_v61 = vpack.c.bf16 %v1025_v59, %v1025_v59 }
 0x101   : > { %v1026_v62 = vpack.c.bf16 %v990_v60, %v990_v60 }
 0x102   : > { %3074 = vmatmul.msk.bf16.vlgmr.msra.gmra.mxu1 %vm950_vm0, %v1064_v61 }
 0x103   : > { %3065 = vmatmul.msk.bf16.vlgmr.msra.gmra.mxu0 %vm950_vm0, %v1026_v62 }
 0x17f   : > { %v1097_v2 = vpop.f32.mrf.mxu1 }
 0x180   : > { %v1059_v3 = vpop.f32.mrf.mxu0  ;;  %v1098_v4 = vadd.f32 %v3371_v63, %v1097_v2 }
 0x181   : > { %v1060_v5 = vadd.f32 %v3370_v0, %v1059_v3 }
 0x182   : > { %v1224_v6 = vpack.c.bf16 %v1098_v4, %v1098_v4 }
 0x183   : > { %v1063_v7 = vmul.f32 0.35355338, %v1060_v5 }
 0x184   : > { %1230 = vrot.lane.b32.xlu0 %v1224_v6, %s3923_s29  ;;  %1226 = vrot.lane.b32.xlu2 %v1224_v6, %s3924_s1  ;;  %v1235_v20 = vshrl.u32 %v1224_v6, 16 }
 0x185   : > { %v1101_v8 = vpack.c.bf16 %v1063_v7, %v1063_v7 }
 0x187   : > { %1103 = vrot.lane.b32.xlu1 %v1101_v8, %s3924_s1  ;;  %v1099_v9 = vpop.f32.mrf.mxu1  ;;  %v1112_v43 = vshrl.u32 %v1101_v8, 16 }
 0x188   : > { %v1061_v10 = vpop.f32.mrf.mxu0 }
 0x18c   : > { %1346 = vrot.lane.b32.xlu0 %v1224_v6, %s3925_s28  ;;  %1228 = vrot.lane.b32.xlu2 %v1224_v6, %s3926_s0 }
 0x194   : > { %1105 = vrot.lane.b32.xlu2 %v1101_v8, %s3926_s0 }
 0x19c   : > { %1107 = vrot.lane.b32.xlu2 %v1101_v8, %s3923_s29 }
 0x1de   : > { %v4280_v11 = vpop.permute.xlu2 %1226 }
 0x1df   : > { %v1236_v15 = vshrl.u32 %v4280_v11, 16  ;;  %v1234_v19 = vpack.i.b16 %v4280_v11, %v1224_v6 }
 0x1e1   : > { %v1237_v21 = vpack.i.b16 %v1236_v15, %v1235_v20  ;;  %v1248_v22 = vperm.slane %v1234_v19, %v4285_v17 }
 0x1e3   : > { %v1274_v25 = vperm.slane %v1237_v21, %v4285_v17  ;;  %v1256_v34 = vrot.slane %v1248_v22, 4 }
 0x1e5   : > { %v1282_v41 = vrot.slane %v1274_v25, 4 }
 0x1e6   : > { %v4282_v12 = vpop.permute.xlu2 %1228 }
 0x1e7   : > { %v1241_v26 = vshrl.u32 %v4282_v12, 16 }
 0x1ee   : > { %v1106_v16 = vpop.permute.xlu2 %1105 }
 0x1ef   : > { %v1118_v27 = vshrl.u32 %v1106_v16, 16 }
 0x1f6   : > { %v4291_v28 = vpop.permute.xlu0 %1230  ;;  %v1108_v29 = vpop.permute.xlu2 %1107 }
 0x1f7   : > { %v1240_v30 = vpack.i.b16 %v4291_v28, %v4282_v12  ;;  %v1242_v31 = vshrl.u32 %v4291_v28, 16  ;;  %v1117_v32 = vpack.i.b16 %v1108_v29, %v1106_v16  ;;  %v1119_v33 = vshrl.u32 %v1108_v29, 16 }
 0x1f9   : > { %v1243_v36 = vpack.i.b16 %v1242_v31, %v1241_v26  ;;  %v1253_v37 = vperm.slane %v1240_v30, %v4285_v17  ;;  %v1120_v38 = vpack.i.b16 %v1119_v33, %v1118_v27  ;;  %v1130_v39 = vperm.slane %v1117_v32, %v4285_v17  ;;  %v1104_v40 = vpop.permute.xlu1 %1103 }
 0x1fa   : > { %v1111_v42 = vpack.i.b16 %v1104_v40, %v1101_v8  ;;  %v1113_v44 = vshrl.u32 %v1104_v40, 16 }
 0x1fb   : > { %v1254_v45 = vrot.slane %v1253_v37, 4  ;;  %v1257_v46 = vsel %vm1132_vm8, %v1253_v37, %v1256_v34  ;;  %v1279_v47 = vperm.slane %v1243_v36, %v4285_v17  ;;  %v1131_v48 = vrot.slane %v1130_v39, 4 }
 0x1fc   : > { %v1265_v49 = vperm.slane %v1257_v46, %v4296_v35  ;;  %v1157_v50 = vperm.slane %v1120_v38, %v4285_v17  ;;  %v1114_v51 = vpack.i.b16 %v1113_v44, %v1112_v43  ;;  %v1125_v52 = vperm.slane %v1111_v42, %v4285_v17 }
 0x1fd   : > { %v1255_v53 = vsel %vm1132_vm8, %v1254_v45, %v1248_v22  ;;  %v1280_v54 = vrot.slane %v1279_v47, 4  ;;  %v1283_v55 = vsel %vm1132_vm8, %v1279_v47, %v1282_v41 }
 0x1fe   : > { %v1261_v56 = vperm.slane %v1255_v53, %v4296_v35  ;;  %v1268_v57 = vrot.slane %v1265_v49, 4  ;;  %v1291_v58 = vperm.slane %v1283_v55, %v4296_v35  ;;  %v1158_v59 = vrot.slane %v1157_v50, 4 }
 0x1ff   : > { %v1281_v60 = vsel %vm1132_vm8, %v1280_v54, %v1274_v25  ;;  %v1133_v61 = vsel %vm1132_vm8, %v1131_v48, %v1125_v52  ;;  %v1134_v62 = vrot.slane %v1125_v52, 4  ;;  %v1152_v63 = vperm.slane %v1114_v51, %v4285_v17 }
 0x200   : > { %v1266_v0 = vrot.slane %v1261_v56, 4  ;;  %v1269_v2 = vsel %vm1132_vm8, 0, %v1268_v57  ;;  %v1287_v3 = vperm.slane %v1281_v60, %v4296_v35  ;;  %v1294_v4 = vrot.slane %v1291_v58, 4 }
 0x201   : > { %v1301_v5 = vrot.slane %v1269_v2, 4  ;;  %v1135_v6 = vsel %vm1132_vm8, %v1130_v39, %v1134_v62  ;;  %v1139_v7 = vperm.slane %v1133_v61, %v4296_v35  ;;  %v1159_v8 = vsel %vm1132_vm8, %v1158_v59, %v1152_v63 }
 0x202   : > { %v1292_v9 = vrot.slane %v1287_v3, 4  ;;  %v1295_v10 = vsel %vm1132_vm8, 0, %v1294_v4  ;;  %v1143_v13 = vperm.slane %v1135_v6, %v4296_v35  ;;  %v1160_v14 = vrot.slane %v1152_v63, 4 }
 0x203   : > { %v1320_v15 = vrot.slane %v1295_v10, 4  ;;  %v1165_v16 = vperm.slane %v1159_v8, %v4296_v35  ;;  %v1144_v19 = vrot.slane %v1139_v7, 4  ;;  %v1267_v22 = vsel %vm1132_vm8, 0, %v1266_v0 }
 0x204   : > { %v1146_v20 = vrot.slane %v1143_v13, 4  ;;  %v1161_v21 = vsel %vm1132_vm8, %v1157_v50, %v1160_v14  ;;  %v1293_v24 = vsel %vm1132_vm8, 0, %v1292_v9  ;;  %v1296_v27 = vsel %vm1132_vm8, %v1268_v57, %v1261_v56 }
 0x205   : > { %v1169_v23 = vperm.slane %v1161_v21, %v4296_v35  ;;  %v1170_v26 = vrot.slane %v1165_v16, 4  ;;  %v1302_v29 = vsel %vm1132_vm8, %v1301_v5, %v1267_v22  ;;  %v1145_v33 = vsel %vm1132_vm8, 0, %v1144_v19 }
 0x206   : > { %v1147_v25 = vsel %vm1132_vm8, 0, %v1146_v20  ;;  %v1306_v32 = vperm.slane %v1302_v29, %v4285_v17  ;;  %v1315_v34 = vsel %vm1132_vm8, %v1294_v4, %v1287_v3  ;;  %v1321_v36 = vsel %vm1132_vm8, %v1320_v15, %v1293_v24 }
 0x207   : > { %v1172_v30 = vrot.slane %v1169_v23, 4  ;;  %v1179_v31 = vrot.slane %v1147_v25, 4  ;;  %v1300_v38 = vperm.slane %v1296_v27, %v4285_v17  ;;  %v1325_v40 = vperm.slane %v1321_v36, %v4285_v17 }
 0x208   : > { %v1307_v39 = vrot.slane %v1306_v32, 4  ;;  %v1171_v41 = vsel %vm1132_vm8, 0, %v1170_v26  ;;  %v1174_v42 = vsel %vm1132_vm8, %v1146_v20, %v1139_v7  ;;  %v1319_v46 = vperm.slane %v1315_v34, %v4285_v17 }
 0x209   : > { %v1173_v37 = vsel %vm1132_vm8, 0, %v1172_v30  ;;  %v1180_v44 = vsel %vm1132_vm8, %v1179_v31, %v1145_v33  ;;  %v1326_v47 = vrot.slane %v1325_v40, 4  ;;  %v1193_v50 = vsel %vm1132_vm8, %v1172_v30, %v1165_v16 }
 0x20a   : > { %v1198_v43 = vrot.slane %v1173_v37, 4  ;;  %v1308_v45 = vsel %vm1132_vm8, %v1307_v39, %v1300_v38  ;;  %v1184_v48 = vperm.slane %v1180_v44, %v4285_v17  ;;  %v1178_v53 = vperm.slane %v1174_v42, %v4285_v17 }
 0x20b   : > { %v1312_v49 = vperm.slane %v1308_v45, %v4296_v35  ;;  %v1327_v52 = vsel %vm1132_vm8, %v1326_v47, %v1319_v46  ;;  %v1197_v60 = vperm.slane %v1193_v50, %v4285_v17 }
 0x20c   : > { %v1199_v51 = vsel %vm1132_vm8, %v1198_v43, %v1171_v41  ;;  %v1185_v54 = vrot.slane %v1184_v48, 4  ;;  %v1331_v56 = vperm.slane %v1327_v52, %v4296_v35  ;;  %v1347_v52 = vpop.permute.xlu0 %1346 }
 0x20d   : > { %v1203_v55 = vperm.slane %v1199_v51, %v4285_v17  ;;  %v1313_v57 = vrot.slane %v1312_v49, 4  ;;  %v1337_v58 = vshrl.u32 %v1312_v49, 16 }
 0x20e   : > { %v1186_v59 = vsel %vm1132_vm8, %v1185_v54, %v1178_v53  ;;  %v1336_v62 = vpack.i.b16 %v1331_v56, %v1312_v49  ;;  %v1338_v63 = vshrl.u32 %v1331_v56, 16  ;;  %v1332_v2 = vrot.slane %v1331_v56, 4 }
 0x20f   : > { %v1204_v61 = vrot.slane %v1203_v55, 4  ;;  %v1314_v0 = vsel %vm1132_vm8, 0, %v1313_v57  ;;  %v1190_v3 = vperm.slane %v1186_v59, %v4296_v35 }
 0x210   : > { %v1473_v5 = vsel %vm1468_vm9, %v1336_v62, 0  ;;  %v1339_v6 = vpack.i.b16 %v1338_v63, %v1337_v58  ;;  %v1333_v7 = vsel %vm1132_vm8, 0, %v1332_v2  ;;  %v1343_v10 = vshrl.u32 %v1314_v0, 16 }
 0x211   : > { %v1205_v4 = vsel %vm1132_vm8, %v1204_v61, %v1197_v60  ;;  %1482 = vmatpush.bf16.xpose.msra.mxu3 %v1473_v5  ;;  %v1342_v9 = vpack.i.b16 %v1333_v7, %v1314_v0  ;;  %v1344_v13 = vshrl.u32 %v1333_v7, 16  ;;  %v1191_v15 = vrot.slane %v1190_v3, 4 }
 0x212   : > { %v1209_v8 = vperm.slane %v1205_v4, %v4296_v35  ;;  %v1492_v14 = vsel %vm1468_vm9, %v1339_v6, 0  ;;  %v1215_v31 = vshrl.u32 %v1190_v3, 16 }
 0x213   : > { %v1511_v19 = vsel %vm1468_vm9, %v1342_v9, 0  ;;  %v1345_v20 = vpack.i.b16 %v1344_v13, %v1343_v10  ;;  %v1192_v24 = vsel %vm1132_vm8, 0, %v1191_v15 }
 0x214   : > { %v1210_v16 = vrot.slane %v1209_v8, 4  ;;  %1520 = vmatpush.bf16.xpose.msrb.mxu0 %v1511_v19  ;;  %v1214_v23 = vpack.i.b16 %v1209_v8, %v1190_v3  ;;  %v1221_v27 = vshrl.u32 %v1192_v24, 16  ;;  %v1216_v30 = vshrl.u32 %v1209_v8, 16 }
 0x215   : > { %v1530_v22 = vsel %vm1468_vm9, %v1345_v20, 0  ;;  %v1357_v3 = vshrl.u32 %v1347_v52, 16 }
 0x216   : > { %v1211_v21 = vsel %vm1132_vm8, 0, %v1210_v16  ;;  %1539 = vmatpush.bf16.xpose.msrb.mxu1 %v1530_v22  ;;  %v1217_v32 = vpack.i.b16 %v1216_v30, %v1215_v31 }
 0x217   : > { %v1222_v25 = vshrl.u32 %v1211_v21, 16  ;;  %v1220_v26 = vpack.i.b16 %v1211_v21, %v1192_v24 }
 0x218   : > { %3075 = vmatmul.msk.bf16.vlgmr.msra.gmra.mxu3 %vm1468_vm9, %v1214_v23 }
 0x219   : > { %1501 = vmatpush.bf16.xpose.msrb.mxu3 %v1492_v14  ;;  %v1223_v29 = vpack.i.b16 %v1222_v25, %v1221_v27 }
 0x21b   : > { %3077 = vmatmul.msk.bf16.vlgmr.msrb.gmra.mxu0 %vm1468_vm9, %v1220_v26 }
 0x21d   : > { %3078 = vmatmul.msk.bf16.vlgmr.msrb.gmra.mxu1 %vm1468_vm9, %v1223_v29 }
 0x228   : > { %3076 = vmatmul.msk.bf16.vlgmr.msrb.gmra.mxu3 %vm1468_vm9, %v1217_v32 }
 0x298   : > { %v1522_v33 = vpop.f32.mrf.mxu0 }
 0x299   : > { %v1551_v34 = vsel %vm1468_vm9, %v1522_v33, -inf }
 0x29a   : > { %v1541_v36 = vpop.f32.mrf.mxu1  ;;  %1552 = vmax.xlane.f32.xlu1 %v1551_v34 }
 0x29b   : > { %v1484_v37 = vpop.f32.mrf.mxu3  ;;  %v1554_v38 = vsel %vm1468_vm9, %v1541_v36, -inf }
 0x29c   : > { %1555 = vmax.xlane.f32.xlu2 %v1554_v38  ;;  %v1545_v42 = vsel %vm1468_vm9, %v1484_v37, -inf }
 0x2a0   : > { %v1524_v39 = vpop.f32.mrf.mxu0 }
 0x2a2   : > { %v1543_v40 = vpop.f32.mrf.mxu1 }
 0x2a3   : > { %v1486_v41 = vpop.f32.mrf.mxu3 }
 0x2a4   : > { %1546 = vmax.xlane.f32.xlu2 %v1545_v42 }
 0x2ab   : > { %v1503_v43 = vpop.f32.mrf.mxu3 }
 0x2ac   : > { %v1548_v44 = vsel %vm1468_vm9, %v1503_v43, -inf }
 0x2ad   : > { %1549 = vmax.xlane.f32.xlu0 %v1548_v44 }
 0x2b3   : > { %v1505_v45 = vpop.f32.mrf.mxu3  ;;  %1350 = vrot.lane.b32.xlu1 %v4282_v12, %s3925_s28 }
 0x2bc   : > { %1348 = vrot.lane.b32.xlu2 %v4280_v11, %s3925_s28 }
 0x2c1   : > { %1352 = vrot.lane.b32.xlu0 %v4291_v28, %s3925_s28 }
 0x30d   : > { %v1553_v46 = vpop.xlane.xlu1 %1552 }
 0x30e   : > { %v1559_v47 = vsub.f32 %v1522_v33, %v1553_v46 }
 0x30f   : > { %v1556_v48 = vpop.xlane.xlu2 %1555 }
 0x310   : > { %v1565_v49 = vmul.f32 1.442695, %v1559_v47  ;;  %v1560_v12 = vsub.f32 %v1541_v36, %v1556_v48 }
 0x312   : > { %3387 = vpow2.f32 %v1565_v49  ;;  %v1567_v11 = vmul.f32 1.442695, %v1560_v12 }
 0x317   : > { %v1547_v50 = vpop.xlane.xlu2 %1546 }
 0x318   : > { %v4374_v51 = vpop.eup %3387  ;;  %v1557_v53 = vsub.f32 %v1484_v37, %v1547_v50 }
 0x319   : > { %v1575_v54 = vsel %vm1468_vm9, %v4374_v51, 0.0 }
 0x31a   : > { %v1561_v55 = vmul.f32 1.442695, %v1557_v53  ;;  %1576 = vadd.xlane.f32.xlu1 %v1575_v54 }
 0x31c   : > { %3389 = vpow2.f32 %v1561_v55 }
 0x31d   : > { %3391 = vpow2.f32 %v1567_v11 }
 0x31f   : > { %v1349_v61 = vpop.permute.xlu2 %1348 }
 0x320   : > { %v1550_v56 = vpop.xlane.xlu0 %1549  ;;  %v1358_v0 = vshrl.u32 %v1349_v61, 16  ;;  %v1356_v4 = vpack.i.b16 %v1349_v61, %v1347_v52 }
 0x321   : > { %v1558_v28 = vsub.f32 %v1503_v43, %v1550_v56 }
 0x322   : > { %v4378_v57 = vpop.eup %3389  ;;  %v1359_v5 = vpack.i.b16 %v1358_v0, %v1357_v3  ;;  %v1370_v7 = vperm.slane %v1356_v4, %v4285_v17 }
 0x323   : > { %v1563_v58 = vmul.f32 1.442695, %v1558_v28  ;;  %v1569_v59 = vsel %vm1468_vm9, %v4378_v57, 0.0  ;;  %v4382_v60 = vpop.eup %3391 }
 0x324   : > { %1570 = vadd.xlane.f32.xlu2 %v1569_v59  ;;  %v1578_v63 = vsel %vm1468_vm9, %v4382_v60, 0.0  ;;  %v1396_v9 = vperm.slane %v1359_v5, %v4285_v17  ;;  %v1378_v15 = vrot.slane %v1370_v7, 4 }
 0x325   : > { %3393 = vpow2.f32 %v1563_v58  ;;  %v1351_v6 = vpop.permute.xlu1 %1350 }
 0x326   : > { %v1363_v10 = vshrl.u32 %v1351_v6, 16  ;;  %v1404_v20 = vrot.slane %v1396_v9, 4 }
 0x32b   : > { %v4384_v62 = vpop.eup %3393 }
 0x32c   : > { %1579 = vadd.xlane.f32.xlu2 %v1578_v63  ;;  %v1572_v2 = vsel %vm1468_vm9, %v4384_v62, 0.0 }
 0x32d   : > { %1573 = vadd.xlane.f32.xlu0 %v1572_v2 }
 0x333   : > { %v1353_v8 = vpop.permute.xlu0 %1352 }
 0x334   : > { %v1362_v13 = vpack.i.b16 %v1353_v8, %v1351_v6  ;;  %v1364_v14 = vshrl.u32 %v1353_v8, 16 }
 0x336   : > { %v1365_v16 = vpack.i.b16 %v1364_v14, %v1363_v10  ;;  %v1375_v19 = vperm.slane %v1362_v13, %v4285_v17 }
 0x338   : > { %v1376_v21 = vrot.slane %v1375_v19, 4  ;;  %v1379_v22 = vsel %vm1132_vm8, %v1375_v19, %v1378_v15  ;;  %v1401_v23 = vperm.slane %v1365_v16, %v4285_v17 }
 0x339   : > { %v1387_v24 = vperm.slane %v1379_v22, %v4296_v35 }
 0x33a   : > { %v1377_v25 = vsel %vm1132_vm8, %v1376_v21, %v1370_v7  ;;  %v1402_v26 = vrot.slane %v1401_v23, 4  ;;  %v1405_v27 = vsel %vm1132_vm8, %v1401_v23, %v1404_v20 }
 0x33b   : > { %v1383_v29 = vperm.slane %v1377_v25, %v4296_v35  ;;  %v1390_v30 = vrot.slane %v1387_v24, 4  ;;  %v1413_v31 = vperm.slane %v1405_v27, %v4296_v35 }
 0x33c   : > { %v1403_v32 = vsel %vm1132_vm8, %v1402_v26, %v1396_v9 }
 0x33d   : > { %v1388_v33 = vrot.slane %v1383_v29, 4  ;;  %v1391_v34 = vsel %vm1132_vm8, 0, %v1390_v30  ;;  %v1409_v36 = vperm.slane %v1403_v32, %v4296_v35  ;;  %v1416_v37 = vrot.slane %v1413_v31, 4 }
 0x33e   : > { %v1423_v38 = vrot.slane %v1391_v34, 4  ;;  %v1418_v43 = vsel %vm1132_vm8, %v1390_v30, %v1383_v29 }
 0x33f   : > { %v1389_v39 = vsel %vm1132_vm8, 0, %v1388_v33  ;;  %v1414_v40 = vrot.slane %v1409_v36, 4  ;;  %v1417_v41 = vsel %vm1132_vm8, 0, %v1416_v37  ;;  %v1437_v47 = vsel %vm1132_vm8, %v1416_v37, %v1409_v36 }
 0x340   : > { %v1442_v42 = vrot.slane %v1417_v41, 4  ;;  %v1424_v44 = vsel %vm1132_vm8, %v1423_v38, %v1389_v39  ;;  %v1422_v49 = vperm.slane %v1418_v43, %v4285_v17  ;;  %v1441_v54 = vperm.slane %v1437_v47, %v4285_v17 }
 0x341   : > { %v1415_v45 = vsel %vm1132_vm8, 0, %v1414_v40  ;;  %v1428_v46 = vperm.slane %v1424_v44, %v4285_v17 }
 0x342   : > { %v1443_v48 = vsel %vm1132_vm8, %v1442_v42, %v1415_v45 }
 0x343   : > { %v1429_v50 = vrot.slane %v1428_v46, 4  ;;  %v1447_v52 = vperm.slane %v1443_v48, %v4285_v17 }
 0x345   : > { %v1430_v53 = vsel %vm1132_vm8, %v1429_v50, %v1422_v49  ;;  %v1448_v12 = vrot.slane %v1447_v52, 4 }
 0x346   : > { %v1434_v55 = vperm.slane %v1430_v53, %v4296_v35 }
 0x347   : > { %v1449_v11 = vsel %vm1132_vm8, %v1448_v12, %v1441_v54 }
 0x348   : > { %v1453_v56 = vperm.slane %v1449_v11, %v4296_v35  ;;  %v1435_v28 = vrot.slane %v1434_v55, 4  ;;  %v1459_v58 = vshrl.u32 %v1434_v55, 16 }
 0x34a   : > { %v1458_v59 = vpack.i.b16 %v1453_v56, %v1434_v55  ;;  %v1460_v61 = vshrl.u32 %v1453_v56, 16  ;;  %v1436_v63 = vsel %vm1132_vm8, 0, %v1435_v28  ;;  %v1454_v0 = vrot.slane %v1453_v56, 4 }
 0x34b   : > { %v1465_v6 = vshrl.u32 %v1436_v63, 16 }
 0x34c   : > { %v1598_v2 = vsel %vm1596_vm10, %v1458_v59, 0  ;;  %v1461_v3 = vpack.i.b16 %v1460_v61, %v1459_v58  ;;  %v1455_v4 = vsel %vm1132_vm8, 0, %v1454_v0 }
 0x34d   : > { %1607 = vmatpush.bf16.msra.mxu2 %v1598_v2  ;;  %v1464_v5 = vpack.i.b16 %v1455_v4, %v1436_v63  ;;  %v1466_v7 = vshrl.u32 %v1455_v4, 16 }
 0x34e   : > { %v1617_v8 = vsel %vm1596_vm10, %v1461_v3, 0 }
 0x34f   : > { %1626 = vmatpush.bf16.msra.mxu3 %v1617_v8  ;;  %v1636_v9 = vsel %vm1596_vm10, %v1464_v5, 0  ;;  %v1467_v10 = vpack.i.b16 %v1466_v7, %v1465_v6 }
 0x350   : > { %1645 = vmatpush.bf16.msra.mxu0 %v1636_v9 }
 0x351   : > { %v1655_v13 = vsel %vm1596_vm10, %v1467_v10, 0 }
 0x352   : > { %1664 = vmatpush.bf16.msra.mxu1 %v1655_v13 }
 0x38d   : > { %v1577_v14 = vpop.xlane.xlu1 %1576 }
 0x38e   : > { %3395 = vrcp.f32 %v1577_v14 }
 0x394   : > { %v3396_v15 = vpop.eup %3395 }
 0x395   : > { %v1587_v16 = vmul.f32 %v3396_v15, %v4374_v51 }
 0x397   : > { %v1591_v19 = vpack.c.bf16 %v1587_v16, %v1587_v16  ;;  %v1571_v20 = vpop.xlane.xlu2 %1570 }
 0x398   : > { %3397 = vrcp.f32 %v1571_v20 }
 0x399   : > { %3081 = vmatmul.msk.bf16.vlgmr.msra.gmra.mxu0 %vm1468_vm9, %v1591_v19 }
 0x39e   : > { %v3398_v21 = vpop.eup %3397 }
 0x39f   : > { %v1580_v22 = vpop.xlane.xlu2 %1579  ;;  %v1585_v23 = vmul.f32 %v3398_v21, %v4378_v57 }
 0x3a0   : > { %3399 = vrcp.f32 %v1580_v22  ;;  %v1574_v24 = vpop.xlane.xlu0 %1573 }
 0x3a1   : > { %3401 = vrcp.f32 %v1574_v24  ;;  %v1589_v25 = vpack.c.bf16 %v1585_v23, %v1585_v23 }
 0x3a3   : > { %3079 = vmatmul.msk.bf16.vlgmr.msra.gmra.mxu2 %vm1468_vm9, %v1589_v25 }
 0x3a6   : > { %v3400_v26 = vpop.eup %3399 }
 0x3a7   : > { %v3402_v27 = vpop.eup %3401  ;;  %v1588_v29 = vmul.f32 %v3400_v26, %v4382_v60 }
 0x3a8   : > { %v1586_v51 = vmul.f32 %v3402_v27, %v4384_v62 }
 0x3a9   : > { %v1592_v30 = vpack.c.bf16 %v1588_v29, %v1588_v29 }
 0x3aa   : > { %v1590_v31 = vpack.c.bf16 %v1586_v51, %v1586_v51 }
 0x3ab   : > { %3082 = vmatmul.msk.bf16.vlgmr.msra.gmra.mxu1 %vm1468_vm9, %v1592_v30 }
 0x3ac   : > { %3080 = vmatmul.msk.bf16.vlgmr.msra.gmra.mxu3 %vm1468_vm9, %v1590_v31 }
 0x416   : > { %v1647_v32 = vpop.f32.mrf.mxu0 }
 0x417   : > { %v1670_v34 = vrot.slane %v1647_v32, 4 }
 0x41e   : > { %v1649_v57 = vpop.f32.mrf.mxu0 }
 0x426   : > { %v1609_v33 = vpop.f32.mrf.mxu2 }
 0x427   : > { %v1673_v36 = vrot.slane %v1609_v33, 4  ;;  %v1672_v38 = vsel %vm1132_vm8, %v1670_v34, %v1609_v33 }
 0x428   : > { %v1666_v37 = vpop.f32.mrf.mxu1  ;;  %v1678_v60 = vperm.slane %v1672_v38, %v4285_v17 }
 0x429   : > { %v1674_v39 = vsel %vm1132_vm8, %v1647_v32, %v1673_v36  ;;  %v1683_v40 = vrot.slane %v1666_v37, 4 }
 0x42a   : > { %v1682_v41 = vperm.slane %v1674_v39, %v4285_v17  ;;  %v1697_v46 = vrot.slane %v1678_v60, 4 }
 0x42c   : > { %v1709_v49 = vrot.slane %v1682_v41, 4 }
 0x42e   : > { %v1611_v62 = vpop.f32.mrf.mxu2 }
 0x42f   : > { %v1628_v42 = vpop.f32.mrf.mxu3  ;;  %v3168_v62 = vld [vmem:[%s4780_s10 + $0x8] sm:$0xff] }
 0x430   : > { %v1684_v43 = vsel %vm1132_vm8, %v1683_v40, %v1628_v42  ;;  %v1685_v44 = vrot.slane %v1628_v42, 4  ;;  %v1668_v45 = vpop.f32.mrf.mxu1  ;;  %1828 = vmatpush.bf16.msrb.mxu2 %v3168_v62 }
 0x431   : > { %v1690_v47 = vperm.slane %v1684_v43, %v4285_v17 }
 0x432   : > { %v1686_v48 = vsel %vm1132_vm8, %v1666_v37, %v1685_v44 }
 0x433   : > { %v1694_v50 = vperm.slane %v1686_v48, %v4285_v17  ;;  %v1695_v52 = vrot.slane %v1690_v47, 4  ;;  %v1698_v53 = vsel %vm1132_vm8, %v1690_v47, %v1697_v46 }
 0x434   : > { %v1706_v54 = vperm.slane %v1698_v53, %v4296_v35 }
 0x435   : > { %v1696_v12 = vsel %vm1132_vm8, %v1695_v52, %v1678_v60  ;;  %v1707_v55 = vrot.slane %v1694_v50, 4  ;;  %v1710_v11 = vsel %vm1132_vm8, %v1694_v50, %v1709_v49  ;;  %v3372_v49 = vld [vmem:[#allocation5] ss:$0 sm:$0xff] }
 0x436   : > { %v1702_v56 = vperm.slane %v1696_v12, %v4296_v35  ;;  %v1718_v28 = vperm.slane %v1710_v11, %v4296_v35  ;;  %v1721_v58 = vrot.slane %v1706_v54, 4 }
 0x437   : > { %v1708_v59 = vsel %vm1132_vm8, %v1707_v55, %v1682_v41  ;;  %v1630_v61 = vpop.f32.mrf.mxu3  ;;  %v3167_v41 = vld [vmem:[%s4780_s10] sm:$0xff] }
 0x438   : > { %v1714_v63 = vperm.slane %v1708_v59, %v4296_v35  ;;  %v1719_v0 = vrot.slane %v1702_v56, 4  ;;  %v1722_v2 = vsel %vm1132_vm8, 0.0, %v1721_v58  ;;  %v1725_v3 = vrot.slane %v1718_v28, 4  ;;  %1829 = vmatpush.bf16.msrb.mxu2 %v3167_v41  ;;  %v3169_v59 = vld [vmem:[#allocation10] sm:$0xff] }
 0x439   : > { %v1727_v4 = vsel %vm1132_vm8, %v1721_v58, %v1702_v56  ;;  %v1732_v5 = vrot.slane %v1722_v2, 4  ;;  %v3170_v56 = vld [vmem:[#allocation10 + $0x8] sm:$0xff] }
 0x43a   : > { %v1720_v6 = vsel %vm1132_vm8, 0.0, %v1719_v0  ;;  %v1723_v7 = vrot.slane %v1714_v63, 4  ;;  %v1726_v8 = vsel %vm1132_vm8, 0.0, %v1725_v3  ;;  %v1731_v9 = vperm.slane %v1727_v4, %v4285_v17  ;;  %1901 = vmatpush.bf16.msrb.mxu3 %v3170_v56 }
 0x43b   : > { %v1743_v10 = vrot.slane %v1726_v8, 4  ;;  %v1733_v13 = vsel %vm1132_vm8, %v1732_v5, %v1720_v6  ;;  %v1738_v14 = vsel %vm1132_vm8, %v1725_v3, %v1714_v63 }
 0x43c   : > { %v1724_v15 = vsel %vm1132_vm8, 0.0, %v1723_v7  ;;  %v1737_v16 = vperm.slane %v1733_v13, %v4285_v17  ;;  %v1742_v19 = vperm.slane %v1738_v14, %v4285_v17  ;;  %v1751_v20 = vrot.slane %v1731_v9, 4  ;;  %v3373_v13 = vld [vmem:[#allocation7] ss:$0 sm:$0xff] }
 0x43d   : > { %v1744_v21 = vsel %vm1132_vm8, %v1743_v10, %v1724_v15 }
 0x43e   : > { %v1748_v22 = vperm.slane %v1744_v21, %v4285_v17  ;;  %v1752_v23 = vsel %vm1132_vm8, %v1737_v16, %v1751_v20  ;;  %v1763_v24 = vrot.slane %v1742_v19, 4  ;;  %v1749_v25 = vrot.slane %v1737_v16, 4  ;;  %1902 = vmatpush.bf16.msrb.mxu3 %v3169_v59  ;;  %v3374_v16 = vld [vmem:[#allocation8] ss:$0 sm:$0xff] }
 0x43f   : > { %v1760_v26 = vperm.slane %v1752_v23, %v4296_v35 }
 0x440   : > { %v1764_v27 = vsel %vm1132_vm8, %v1748_v22, %v1763_v24  ;;  %v1750_v29 = vsel %vm1132_vm8, %v1749_v25, %v1731_v9  ;;  %v1761_v51 = vrot.slane %v1748_v22, 4  ;;  %v3375_v22 = vld [vmem:[#allocation11] ss:$0 sm:$0xff] }
 0x441   : > { %v1772_v30 = vperm.slane %v1764_v27, %v4296_v35  ;;  %v1779_v31 = vrot.slane %v1760_v26, 4  ;;  %v1756_v32 = vperm.slane %v1750_v29, %v4296_v35 }
 0x442   : > { %v1762_v57 = vsel %vm1132_vm8, %v1761_v51, %v1742_v19 }
 0x443   : > { %v1780_v33 = vsel %vm1132_vm8, %v1772_v30, %v1779_v31  ;;  %v1777_v34 = vrot.slane %v1772_v30, 4  ;;  %v1768_v36 = vperm.slane %v1762_v57, %v4296_v35  ;;  %v1775_v37 = vrot.slane %v1756_v32, 4 }
 0x444   : > { %1790 = vrot.lane.b32.xlu2 %v1780_v33, %s3929_s30 }
 0x445   : > { %v1778_v38 = vsel %vm1132_vm8, %v1777_v34, %v1760_v26  ;;  %v1773_v39 = vrot.slane %v1768_v36, 4  ;;  %v1776_v60 = vsel %vm1132_vm8, %v1768_v36, %v1775_v37 }
 0x446   : > { %1786 = vrot.lane.b32.xlu1 %v1778_v38, %s3930_s13  ;;  %1782 = vrot.lane.b32.xlu0 %v1776_v60, %s3931_s15 }
 0x447   : > { %v1774_v40 = vsel %vm1132_vm8, %v1773_v39, %v1756_v32 }
 0x49e   : > { %v1791_v45 = vpop.permute.xlu2 %1790 }
 0x4b8   : > { %v1787_v42 = vpop.permute.xlu1 %1786  ;;  %v1783_v43 = vpop.permute.xlu0 %1782 }
 0x4b9   : > { %v1793_v44 = vsel %vm1468_vm9, %v1774_v40, %v1783_v43 }
 0x4ba   : > { %v1795_v46 = vsel %vm1794_vm11, %v1793_v44, %v1787_v42 }
 0x4bb   : > { %v1797_v47 = vsel %vm1796_vm12, %v1795_v46, %v1791_v45 }
 0x4bc   : > { %v1798_v48 = vpack.c.bf16 %v1797_v47, %v1797_v47 }
 0x4be   : > { %3091 = vmatmul.msk.bf16.vlgmr.msrb.gmra.mxu2 %vm950_vm0, %v1798_v48 }
 0x541   : > { %v1831_v50 = vpop.f32.mrf.mxu2 }
 0x542   : > { %v1832_v52 = vadd.f32 %v3372_v49, %v1831_v50 }
 0x544   : > { %v4486_v53 = vadd.f32 %v1832_v52, %v4224_v1 }
 0x546   : > { %v1838_v54 = vsel %vm950_vm0, %v4486_v53, 0.0  ;;  %v1842_v12 = vmul.f32 %v4486_v53, %v4486_v53 }
 0x547   : > { %1839 = vadd.xlane.f32.xlu0 %v1838_v54 }
 0x548   : > { %v1843_v55 = vsel %vm950_vm0, %v1842_v12, 0.0 }
 0x549   : > { %v1833_v11 = vpop.f32.mrf.mxu2  ;;  %1844 = vadd.xlane.f32.xlu1 %v1843_v55 }
 0x5ba   : > { %v1840_v28 = vpop.xlane.xlu0 %1839 }
 0x5bb   : > { %v1841_v58 = vmul.f32 %v1840_v28, %v4242_v18 }
 0x5bc   : > { %v1845_v61 = vpop.xlane.xlu1 %1844 }
 0x5bd   : > { %v1847_v1 = vmul.f32 %v1841_v58, %v1841_v58  ;;  %v1846_v63 = vmul.f32 %v1845_v61, %v4242_v18  ;;  %v1850_v10 = vsub.f32 %v4486_v53, %v1841_v58 }
 0x5bf   : > { %v1848_v0 = vsub.f32 %v1846_v63, %v1847_v1 }
 0x5c1   : > { %v1849_v2 = vmax.f32 %v1848_v0, 0.0 }
 0x5c3   : > { %v1851_v3 = vadd.f32 1e-05, %v1849_v2 }
 0x5c5   : > { %3403 = vrsqrt.f32 %v1851_v3  ;;  %vm1858_vm14 = vweird.f32 %v1851_v3 }
 0x5cb   : > { %v3404_v4 = vpop.eup %3403 }
 0x5cc   : > { %v1853_v5 = vmul.f32 %v3404_v4, %v1851_v3  ;;  %vm1859_vm13 = vweird.f32 %v3404_v4 }
 0x5cd   : > { %vm1860_vm15 = vmor %vm1858_vm14, %vm1859_vm13 }
 0x5ce   : > { %v1854_v6 = vmul.f32 %v3404_v4, %v1853_v5 }
 0x5d0   : > { %v1855_v7 = vmul.f32 0.5, %v1854_v6 }
 0x5d2   : > { %v1856_v8 = vsub.f32 1.5, %v1855_v7 }
 0x5d4   : > { %v1857_v9 = vmul.f32 %v3404_v4, %v1856_v8 }
 0x5d6   : > { %v1861_v14 = vsel %vm1860_vm15, %v3404_v4, %v1857_v9 }
 0x5d7   : > { %v1862_v15 = vmul.f32 %v1861_v14, %v1850_v10 }
 0x5d9   : > { %v1866_v19 = vmul.f32 %v3373_v13, %v1862_v15 }
 0x5db   : > { %v1870_v20 = vadd.f32 %v3374_v16, %v1866_v19 }
 0x5dd   : > { %v1871_v21 = vpack.c.bf16 %v1870_v20, %v1870_v20 }
 0x5df   : > { %3100 = vmatmul.msk.bf16.vlgmr.msrb.gmra.mxu3 %vm950_vm0, %v1871_v21 }
 0x662   : > { %v1904_v23 = vpop.f32.mrf.mxu3 }
 0x663   : > { %v1905_v24 = vadd.f32 %v3375_v22, %v1904_v23 }
 0x665   : > { %v2031_v25 = vpack.c.bf16 %v1905_v24, %v1905_v24  ;;  %v1908_v29 = vmul.f32 0.35355338, %v1905_v24 }
 0x667   : > { %2033 = vrot.lane.b32.xlu2 %v2031_v25, %s3924_s1  ;;  %v1909_v51 = vpack.c.bf16 %v1908_v29, %v1908_v29 }
 0x669   : > { %v1920_v38 = vshrl.u32 %v1909_v51, 16 }
 0x66a   : > { %v1906_v26 = vpop.f32.mrf.mxu3 }
 0x66f   : > { %2035 = vrot.lane.b32.xlu2 %v2031_v25, %s3926_s0 }
 0x677   : > { %2037 = vrot.lane.b32.xlu2 %v2031_v25, %s3923_s29 }
 0x67f   : > { %2039 = vrot.lane.b32.xlu2 %v2031_v25, %s3925_s28 }
 0x6c1   : > { %v4501_v27 = vpop.permute.xlu2 %2033 }
 0x6c2   : > { %2041 = vrot.lane.b32.xlu0 %v4501_v27, %s3925_s28 }
 0x6c9   : > { %v4505_v30 = vpop.permute.xlu2 %2035 }
 0x6ca   : > { %2043 = vrot.lane.b32.xlu2 %v4505_v30, %s3925_s28  ;;  %1915 = vrot.lane.b32.xlu0 %v1909_v51, %s3923_s29  ;;  %s3160_s29 = sshll.u32 %s4079_s6, 3 }
 0x6d1   : > { %v4510_v31 = vpop.permute.xlu2 %2037 }
 0x6d2   : > { %2045 = vrot.lane.b32.xlu1 %v4510_v31, %s3925_s28  ;;  %2161 = vrot.lane.b32.xlu0 %v2031_v25, %s3932_s9 }
 0x6d3   : > { %1911 = vrot.lane.b32.xlu2 %v1909_v51, %s3924_s1 }
 0x6d9   : > { %v2040_v32 = vpop.permute.xlu2 %2039 }
 0x6da   : > { %v2050_v49 = vshrl.u32 %v2040_v32, 16 }
 0x6db   : > { %1913 = vrot.lane.b32.xlu2 %v1909_v51, %s3926_s0 }
 0x724   : > { %v2044_v57 = vpop.permute.xlu2 %2043 }
 0x725   : > { %v2056_v3 = vshrl.u32 %v2044_v57, 16 }
 0x72d   : > { %v1912_v33 = vpop.permute.xlu2 %1911 }
 0x72e   : > { %v1921_v36 = vshrl.u32 %v1912_v33, 16  ;;  %v1919_v37 = vpack.i.b16 %v1912_v33, %v1909_v51 }
 0x730   : > { %v1922_v39 = vpack.i.b16 %v1921_v36, %v1920_v38  ;;  %v1933_v40 = vperm.slane %v1919_v37, %v4285_v17 }
 0x732   : > { %v1959_v41 = vperm.slane %v1922_v39, %v4285_v17  ;;  %v1941_v46 = vrot.slane %v1933_v40, 4 }
 0x734   : > { %v2042_v34 = vpop.permute.xlu0 %2041  ;;  %v1967_v52 = vrot.slane %v1959_v41, 4 }
 0x735   : > { %v1914_v60 = vpop.permute.xlu2 %1913  ;;  %v2051_v45 = vshrl.u32 %v2042_v34, 16  ;;  %v2049_v50 = vpack.i.b16 %v2042_v34, %v2040_v32 }
 0x736   : > { %v1926_v42 = vshrl.u32 %v1914_v60, 16 }
 0x737   : > { %v2052_v11 = vpack.i.b16 %v2051_v45, %v2050_v49  ;;  %v2063_v61 = vperm.slane %v2049_v50, %v4285_v17 }
 0x739   : > { %v2089_v7 = vperm.slane %v2052_v11, %v4285_v17  ;;  %v2071_v16 = vrot.slane %v2063_v61, 4 }
 0x73b   : > { %v2097_v23 = vrot.slane %v2089_v7, 4 }
 0x73c   : > { %v1916_v62 = vpop.permute.xlu0 %1915 }
 0x73d   : > { %v1925_v43 = vpack.i.b16 %v1916_v62, %v1914_v60  ;;  %v1927_v44 = vshrl.u32 %v1916_v62, 16 }
 0x73f   : > { %v1928_v47 = vpack.i.b16 %v1927_v44, %v1926_v42  ;;  %v1938_v48 = vperm.slane %v1925_v43, %v4285_v17 }
 0x741   : > { %v1939_v54 = vrot.slane %v1938_v48, 4  ;;  %v1942_v12 = vsel %vm1132_vm8, %v1938_v48, %v1941_v46  ;;  %v1964_v55 = vperm.slane %v1928_v47, %v4285_v17 }
 0x742   : > { %v1950_v56 = vperm.slane %v1942_v12, %v4296_v35 }
 0x743   : > { %v1940_v28 = vsel %vm1132_vm8, %v1939_v54, %v1933_v40  ;;  %v1965_v58 = vrot.slane %v1964_v55, 4  ;;  %v1968_v59 = vsel %vm1132_vm8, %v1964_v55, %v1967_v52 }
 0x744   : > { %v1946_v1 = vperm.slane %v1940_v28, %v4296_v35  ;;  %v1953_v63 = vrot.slane %v1950_v56, 4  ;;  %v1976_v0 = vperm.slane %v1968_v59, %v4296_v35  ;;  %v2046_v2 = vpop.permute.xlu1 %2045 }
 0x745   : > { %v1966_v4 = vsel %vm1132_vm8, %v1965_v58, %v1959_v41  ;;  %v2055_v5 = vpack.i.b16 %v2046_v2, %v2044_v57  ;;  %v2057_v6 = vshrl.u32 %v2046_v2, 16 }
 0x746   : > { %v1972_v8 = vperm.slane %v1966_v4, %v4296_v35  ;;  %v1979_v9 = vrot.slane %v1976_v0, 4  ;;  %v1951_v10 = vrot.slane %v1946_v1, 4  ;;  %v1954_v13 = vsel %vm1132_vm8, 0, %v1953_v63 }
 0x747   : > { %v2058_v14 = vpack.i.b16 %v2057_v6, %v2056_v3  ;;  %v2068_v15 = vperm.slane %v2055_v5, %v4285_v17  ;;  %v1986_v25 = vrot.slane %v1954_v13, 4  ;;  %v1981_v55 = vsel %vm1132_vm8, %v1953_v63, %v1946_v1 }
 0x748   : > { %v1977_v19 = vrot.slane %v1972_v8, 4  ;;  %v1980_v20 = vsel %vm1132_vm8, 0, %v1979_v9  ;;  %v1952_v29 = vsel %vm1132_vm8, 0, %v1951_v10  ;;  %v2000_v50 = vsel %vm1132_vm8, %v1979_v9, %v1972_v8 }
 0x749   : > { %v2005_v21 = vrot.slane %v1980_v20, 4  ;;  %v2069_v22 = vrot.slane %v2068_v15, 4  ;;  %v2072_v26 = vsel %vm1132_vm8, %v2068_v15, %v2071_v16  ;;  %v2094_v57 = vperm.slane %v2058_v14, %v4285_v17 }
 0x74a   : > { %v1978_v24 = vsel %vm1132_vm8, 0, %v1977_v19  ;;  %v2080_v32 = vperm.slane %v2072_v26, %v4296_v35  ;;  %v1987_v39 = vsel %vm1132_vm8, %v1986_v25, %v1952_v29  ;;  %v2004_v0 = vperm.slane %v2000_v50, %v4285_v17 }
 0x74b   : > { %v2070_v51 = vsel %vm1132_vm8, %v2069_v22, %v2063_v61  ;;  %v2006_v34 = vsel %vm1132_vm8, %v2005_v21, %v1978_v24  ;;  %v2095_v37 = vrot.slane %v2094_v57, 4  ;;  %v2098_v38 = vsel %vm1132_vm8, %v2094_v57, %v2097_v23 }
 0x74c   : > { %v2076_v33 = vperm.slane %v2070_v51, %v4296_v35  ;;  %v2083_v36 = vrot.slane %v2080_v32, 4  ;;  %v2106_v40 = vperm.slane %v2098_v38, %v4296_v35  ;;  %v2010_v42 = vperm.slane %v2006_v34, %v4285_v17 }
 0x74d   : > { %v2096_v41 = vsel %vm1132_vm8, %v2095_v37, %v2089_v7  ;;  %v1991_v46 = vperm.slane %v1987_v39, %v4285_v17  ;;  %v1985_v5 = vperm.slane %v1981_v55, %v4285_v17 }
 0x74e   : > { %v2081_v60 = vrot.slane %v2076_v33, 4  ;;  %v2084_v62 = vsel %vm1132_vm8, 0, %v2083_v36  ;;  %v2102_v44 = vperm.slane %v2096_v41, %v4296_v35  ;;  %v2109_v45 = vrot.slane %v2106_v40, 4 }
 0x74f   : > { %v2116_v47 = vrot.slane %v2084_v62, 4  ;;  %v2111_v52 = vsel %vm1132_vm8, %v2083_v36, %v2076_v33  ;;  %v2011_v11 = vrot.slane %v2010_v42, 4  ;;  %v1992_v58 = vrot.slane %v1991_v46, 4 }
 0x750   : > { %v2082_v43 = vsel %vm1132_vm8, 0, %v2081_v60  ;;  %v2107_v48 = vrot.slane %v2102_v44, 4  ;;  %v2110_v49 = vsel %vm1132_vm8, 0, %v2109_v45  ;;  %v2130_v59 = vsel %vm1132_vm8, %v2109_v45, %v2102_v44 }
 0x751   : > { %v2117_v54 = vsel %vm1132_vm8, %v2116_v47, %v2082_v43  ;;  %v2135_v12 = vrot.slane %v2110_v49, 4  ;;  %v2115_v2 = vperm.slane %v2111_v52, %v4285_v17  ;;  %v2134_v63 = vperm.slane %v2130_v59, %v4285_v17 }
 0x752   : > { %v2108_v56 = vsel %vm1132_vm8, 0, %v2107_v48  ;;  %v2121_v28 = vperm.slane %v2117_v54, %v4285_v17  ;;  %v2012_v7 = vsel %vm1132_vm8, %v2011_v11, %v2004_v0  ;;  %v1993_v9 = vsel %vm1132_vm8, %v1992_v58, %v1985_v5 }
 0x753   : > { %v2136_v61 = vsel %vm1132_vm8, %v2135_v12, %v2108_v56  ;;  %v2016_v15 = vperm.slane %v2012_v7, %v4296_v35  ;;  %v1997_v19 = vperm.slane %v1993_v9, %v4296_v35 }
 0x754   : > { %v2122_v3 = vrot.slane %v2121_v28, 4  ;;  %v2140_v4 = vperm.slane %v2136_v61, %v4285_v17 }
 0x755   : > { %v2017_v29 = vrot.slane %v2016_v15, 4  ;;  %v1998_v34 = vrot.slane %v1997_v19, 4  ;;  %v2023_v38 = vshrl.u32 %v2016_v15, 16  ;;  %v2021_v40 = vpack.i.b16 %v2016_v15, %v1997_v19 }
 0x756   : > { %v2123_v1 = vsel %vm1132_vm8, %v2122_v3, %v2115_v2  ;;  %v2141_v6 = vrot.slane %v2140_v4, 4  ;;  %v2022_v62 = vshrl.u32 %v1997_v19, 16  ;;  %v2162_v2 = vpop.permute.xlu0 %2161 }
 0x757   : > { %v2127_v8 = vperm.slane %v2123_v1, %v4296_v35  ;;  %v2018_v39 = vsel %vm1132_vm8, 0, %v2017_v29  ;;  %v1999_v41 = vsel %vm1132_vm8, 0, %v1998_v34  ;;  %v2172_v19 = vshrl.u32 %v2162_v2, 16 }
 0x758   : > { %v2142_v10 = vsel %vm1132_vm8, %v2141_v6, %v2134_v63  ;;  %v2029_v42 = vshrl.u32 %v2018_v39, 16  ;;  %v2024_v43 = vpack.i.b16 %v2023_v38, %v2022_v62  ;;  %v2027_v44 = vpack.i.b16 %v2018_v39, %v1999_v41 }
 0x759   : > { %v2146_v13 = vperm.slane %v2142_v10, %v4296_v35  ;;  %v2128_v14 = vrot.slane %v2127_v8, 4  ;;  %v2152_v16 = vshrl.u32 %v2127_v8, 16  ;;  %v2028_v45 = vshrl.u32 %v1999_v41, 16 }
 0x75b   : > { %v2151_v20 = vpack.i.b16 %v2146_v13, %v2127_v8  ;;  %v2153_v21 = vshrl.u32 %v2146_v13, 16  ;;  %v2129_v22 = vsel %vm1132_vm8, 0, %v2128_v14  ;;  %v2147_v23 = vrot.slane %v2146_v13, 4 }
 0x75c   : > { %v2158_v32 = vshrl.u32 %v2129_v22, 16  ;;  %v2030_v46 = vpack.i.b16 %v2029_v42, %v2028_v45 }
 0x75d   : > { %v2287_v24 = vsel %vm1468_vm9, %v2151_v20, 0  ;;  %v2154_v25 = vpack.i.b16 %v2153_v21, %v2152_v16  ;;  %v2148_v26 = vsel %vm1132_vm8, 0, %v2147_v23 }
 0x75e   : > { %2296 = vmatpush.bf16.xpose.msrb.mxu0 %v2287_v24  ;;  %v2157_v51 = vpack.i.b16 %v2148_v26, %v2129_v22  ;;  %v2159_v57 = vshrl.u32 %v2148_v26, 16 }
 0x75f   : > { %v2306_v33 = vsel %vm1468_vm9, %v2154_v25, 0 }
 0x760   : > { %2315 = vmatpush.bf16.xpose.msrb.mxu1 %v2306_v33  ;;  %v2325_v36 = vsel %vm1468_vm9, %v2157_v51, 0  ;;  %v2160_v37 = vpack.i.b16 %v2159_v57, %v2158_v32 }
 0x761   : > { %2334 = vmatpush.bf16.xpose.msra.mxu2 %v2325_v36 }
 0x762   : > { %v2344_v60 = vsel %vm1468_vm9, %v2160_v37, 0 }
 0x763   : > { %2353 = vmatpush.bf16.xpose.msra.mxu3 %v2344_v60 }
 0x765   : > { %3101 = vmatmul.msk.bf16.vlgmr.msrb.gmra.mxu0 %vm1468_vm9, %v2021_v40 }
 0x767   : > { %3102 = vmatmul.msk.bf16.vlgmr.msrb.gmra.mxu1 %vm1468_vm9, %v2024_v43 }
 0x768   : > { %3103 = vmatmul.msk.bf16.vlgmr.msra.gmra.mxu2 %vm1468_vm9, %v2027_v44 }
 0x76a   : > { %3104 = vmatmul.msk.bf16.vlgmr.msra.gmra.mxu3 %vm1468_vm9, %v2030_v46 }
 0x7e2   : > { %v2298_v47 = vpop.f32.mrf.mxu0 }
 0x7e3   : > { %v2359_v48 = vsel %vm1468_vm9, %v2298_v47, -inf }
 0x7e4   : > { %v2317_v49 = vpop.f32.mrf.mxu1  ;;  %2360 = vmax.xlane.f32.xlu1 %v2359_v48 }
 0x7e5   : > { %v2362_v50 = vsel %vm1468_vm9, %v2317_v49, -inf }
 0x7e6   : > { %2363 = vmax.xlane.f32.xlu2 %v2362_v50 }
 0x7ea   : > { %v2300_v52 = vpop.f32.mrf.mxu0 }
 0x7eb   : > { %v2336_v54 = vpop.f32.mrf.mxu2 }
 0x7ec   : > { %v2319_v12 = vpop.f32.mrf.mxu1  ;;  %v2365_v55 = vsel %vm1468_vm9, %v2336_v54, -inf }
 0x7ed   : > { %v2355_v11 = vpop.f32.mrf.mxu3 }
 0x7ee   : > { %2366 = vmax.xlane.f32.xlu2 %v2365_v55  ;;  %v2368_v56 = vsel %vm1468_vm9, %v2355_v11, -inf }
 0x7ef   : > { %2369 = vmax.xlane.f32.xlu0 %v2368_v56 }
 0x7f3   : > { %v2338_v28 = vpop.f32.mrf.mxu2 }
 0x7f5   : > { %v2357_v58 = vpop.f32.mrf.mxu3 }
 0x7fd   : > { %2165 = vrot.lane.b32.xlu1 %v4505_v30, %s3932_s9 }
 0x803   : > { %2167 = vrot.lane.b32.xlu0 %v4510_v31, %s3932_s9 }
 0x806   : > { %2163 = vrot.lane.b32.xlu2 %v4501_v27, %s3932_s9 }
 0x857   : > { %v2361_v59 = vpop.xlane.xlu1 %2360 }
 0x858   : > { %v2371_v61 = vsub.f32 %v2298_v47, %v2361_v59 }
 0x859   : > { %v2364_v0 = vpop.xlane.xlu2 %2363 }
 0x85a   : > { %v2375_v3 = vmul.f32 1.442695, %v2371_v61  ;;  %v2372_v7 = vsub.f32 %v2317_v49, %v2364_v0 }
 0x85c   : > { %3405 = vpow2.f32 %v2375_v3  ;;  %v2377_v27 = vmul.f32 1.442695, %v2372_v7 }
 0x861   : > { %v2367_v4 = vpop.xlane.xlu2 %2366 }
 0x862   : > { %v4595_v5 = vpop.eup %3405  ;;  %v2373_v1 = vsub.f32 %v2336_v54, %v2367_v4  ;;  %v2370_v63 = vpop.xlane.xlu0 %2369 }
 0x863   : > { %v2374_v6 = vsub.f32 %v2355_v11, %v2370_v63  ;;  %v2383_v30 = vsel %vm1468_vm9, %v4595_v5, 0.0 }
 0x864   : > { %v2379_v31 = vmul.f32 1.442695, %v2373_v1  ;;  %2384 = vadd.xlane.f32.xlu1 %v2383_v30 }
 0x865   : > { %v2381_v8 = vmul.f32 1.442695, %v2374_v6 }
 0x866   : > { %3407 = vpow2.f32 %v2379_v31 }
 0x867   : > { %3409 = vpow2.f32 %v2381_v8 }
 0x868   : > { %3411 = vpow2.f32 %v2377_v27 }
 0x869   : > { %v2164_v9 = vpop.permute.xlu2 %2163 }
 0x86a   : > { %v2173_v15 = vshrl.u32 %v2164_v9, 16  ;;  %v2171_v20 = vpack.i.b16 %v2164_v9, %v2162_v2 }
 0x86c   : > { %v4599_v10 = vpop.eup %3407  ;;  %v2174_v22 = vpack.i.b16 %v2173_v15, %v2172_v19  ;;  %v2185_v24 = vperm.slane %v2171_v20, %v4285_v17 }
 0x86d   : > { %v4601_v13 = vpop.eup %3409  ;;  %v2389_v14 = vsel %vm1468_vm9, %v4599_v10, 0.0 }
 0x86e   : > { %2390 = vadd.xlane.f32.xlu2 %v2389_v14  ;;  %v2392_v16 = vsel %vm1468_vm9, %v4601_v13, 0.0  ;;  %v4607_v21 = vpop.eup %3411  ;;  %v2211_v29 = vperm.slane %v2174_v22, %v4285_v17  ;;  %v2193_v33 = vrot.slane %v2185_v24, 4 }
 0x86f   : > { %2393 = vadd.xlane.f32.xlu0 %v2392_v16  ;;  %v2166_v23 = vpop.permute.xlu1 %2165  ;;  %v2386_v26 = vsel %vm1468_vm9, %v4607_v21, 0.0 }
 0x870   : > { %v2178_v51 = vshrl.u32 %v2166_v23, 16  ;;  %v2219_v37 = vrot.slane %v2211_v29, 4 }
 0x875   : > { %v2168_v25 = vpop.permute.xlu0 %2167 }
 0x876   : > { %v2177_v32 = vpack.i.b16 %v2168_v25, %v2166_v23  ;;  %v2179_v57 = vshrl.u32 %v2168_v25, 16  ;;  %2387 = vadd.xlane.f32.xlu2 %v2386_v26 }
 0x878   : > { %v2180_v34 = vpack.i.b16 %v2179_v57, %v2178_v51  ;;  %v2190_v36 = vperm.slane %v2177_v32, %v4285_v17 }
 0x87a   : > { %v2191_v38 = vrot.slane %v2190_v36, 4  ;;  %v2194_v39 = vsel %vm1132_vm8, %v2190_v36, %v2193_v33  ;;  %v2216_v60 = vperm.slane %v2180_v34, %v4285_v17 }
 0x87b   : > { %v2202_v40 = vperm.slane %v2194_v39, %v4296_v35 }
 0x87c   : > { %v2192_v62 = vsel %vm1132_vm8, %v2191_v38, %v2185_v24  ;;  %v2217_v41 = vrot.slane %v2216_v60, 4  ;;  %v2220_v42 = vsel %vm1132_vm8, %v2216_v60, %v2219_v37 }
 0x87d   : > { %v2198_v43 = vperm.slane %v2192_v62, %v4296_v35  ;;  %v2205_v44 = vrot.slane %v2202_v40, 4  ;;  %v2228_v45 = vperm.slane %v2220_v42, %v4296_v35 }
 0x87e   : > { %v2218_v46 = vsel %vm1132_vm8, %v2217_v41, %v2211_v29 }
 0x87f   : > { %v2203_v47 = vrot.slane %v2198_v43, 4  ;;  %v2206_v48 = vsel %vm1132_vm8, 0, %v2205_v44  ;;  %v2224_v49 = vperm.slane %v2218_v46, %v4296_v35  ;;  %v2231_v50 = vrot.slane %v2228_v45, 4 }
 0x880   : > { %v2238_v52 = vrot.slane %v2206_v48, 4  ;;  %v2233_v11 = vsel %vm1132_vm8, %v2205_v44, %v2198_v43 }
 0x881   : > { %v2204_v54 = vsel %vm1132_vm8, 0, %v2203_v47  ;;  %v2229_v12 = vrot.slane %v2224_v49, 4  ;;  %v2232_v55 = vsel %vm1132_vm8, 0, %v2231_v50  ;;  %v2252_v61 = vsel %vm1132_vm8, %v2231_v50, %v2224_v49 }
 0x882   : > { %v2239_v56 = vsel %vm1132_vm8, %v2238_v52, %v2204_v54  ;;  %v2257_v28 = vrot.slane %v2232_v55, 4  ;;  %v2237_v2 = vperm.slane %v2233_v11, %v4285_v17  ;;  %v2256_v63 = vperm.slane %v2252_v61, %v4285_v17 }
 0x883   : > { %v2230_v58 = vsel %vm1132_vm8, 0, %v2229_v12  ;;  %v2243_v59 = vperm.slane %v2239_v56, %v4285_v17 }
 0x884   : > { %v2258_v0 = vsel %vm1132_vm8, %v2257_v28, %v2230_v58 }
 0x885   : > { %v2244_v3 = vrot.slane %v2243_v59, 4  ;;  %v2262_v4 = vperm.slane %v2258_v0, %v4285_v17 }
 0x887   : > { %v2245_v1 = vsel %vm1132_vm8, %v2244_v3, %v2237_v2  ;;  %v2263_v6 = vrot.slane %v2262_v4, 4 }
 0x888   : > { %v2249_v30 = vperm.slane %v2245_v1, %v4296_v35 }
 0x889   : > { %v2264_v7 = vsel %vm1132_vm8, %v2263_v6, %v2256_v63 }
 0x88a   : > { %v2268_v31 = vperm.slane %v2264_v7, %v4296_v35  ;;  %v2250_v8 = vrot.slane %v2249_v30, 4  ;;  %v2274_v27 = vshrl.u32 %v2249_v30, 16 }
 0x88c   : > { %v2273_v9 = vpack.i.b16 %v2268_v31, %v2249_v30  ;;  %v2275_v14 = vshrl.u32 %v2268_v31, 16  ;;  %v2251_v15 = vsel %vm1132_vm8, 0, %v2250_v8  ;;  %v2269_v16 = vrot.slane %v2268_v31, 4 }
 0x88d   : > { %v2280_v24 = vshrl.u32 %v2251_v15, 16 }
 0x88e   : > { %v2411_v19 = vsel %vm1596_vm10, %v2273_v9, 0  ;;  %v2276_v20 = vpack.i.b16 %v2275_v14, %v2274_v27  ;;  %v2270_v22 = vsel %vm1132_vm8, 0, %v2269_v16 }
 0x88f   : > { %2420 = vmatpush.bf16.msra.mxu0 %v2411_v19  ;;  %v2279_v23 = vpack.i.b16 %v2270_v22, %v2251_v15  ;;  %v2281_v25 = vshrl.u32 %v2270_v22, 16 }
 0x890   : > { %v2430_v26 = vsel %vm1596_vm10, %v2276_v20, 0 }
 0x891   : > { %2439 = vmatpush.bf16.msra.mxu1 %v2430_v26  ;;  %v2449_v29 = vsel %vm1596_vm10, %v2279_v23, 0  ;;  %v2282_v51 = vpack.i.b16 %v2281_v25, %v2280_v24 }
 0x892   : > { %2458 = vmatpush.bf16.msrb.mxu2 %v2449_v29 }
 0x893   : > { %v2468_v32 = vsel %vm1596_vm10, %v2282_v51, 0 }
 0x894   : > { %2477 = vmatpush.bf16.msrb.mxu3 %v2468_v32 }
 0x8d7   : > { %v2385_v57 = vpop.xlane.xlu1 %2384 }
 0x8d8   : > { %3413 = vrcp.f32 %v2385_v57 }
 0x8de   : > { %v3414_v33 = vpop.eup %3413 }
 0x8df   : > { %v2399_v34 = vmul.f32 %v3414_v33, %v4595_v5 }
 0x8e1   : > { %v2403_v36 = vpack.c.bf16 %v2399_v34, %v2399_v34  ;;  %v2391_v37 = vpop.xlane.xlu2 %2390 }
 0x8e2   : > { %3415 = vrcp.f32 %v2391_v37  ;;  %v2394_v38 = vpop.xlane.xlu0 %2393 }
 0x8e3   : > { %3417 = vrcp.f32 %v2394_v38  ;;  %3105 = vmatmul.msk.bf16.vlgmr.msra.gmra.mxu0 %vm1468_vm9, %v2403_v36 }
 0x8e8   : > { %v3416_v39 = vpop.eup %3415 }
 0x8e9   : > { %v3418_v60 = vpop.eup %3417  ;;  %v2401_v40 = vmul.f32 %v3416_v39, %v4599_v10  ;;  %v2388_v62 = vpop.xlane.xlu2 %2387 }
 0x8ea   : > { %v2402_v41 = vmul.f32 %v3418_v60, %v4601_v13  ;;  %3419 = vrcp.f32 %v2388_v62 }
 0x8eb   : > { %v2405_v42 = vpack.c.bf16 %v2401_v40, %v2401_v40 }
 0x8ec   : > { %v2406_v43 = vpack.c.bf16 %v2402_v41, %v2402_v41 }
 0x8ed   : > { %3107 = vmatmul.msk.bf16.vlgmr.msrb.gmra.mxu2 %vm1468_vm9, %v2405_v42 }
 0x8ee   : > { %3108 = vmatmul.msk.bf16.vlgmr.msrb.gmra.mxu3 %vm1468_vm9, %v2406_v43 }
 0x8f0   : > { %v3420_v5 = vpop.eup %3419 }
 0x8f1   : > { %v2400_v44 = vmul.f32 %v3420_v5, %v4607_v21 }
 0x8f3   : > { %v2404_v45 = vpack.c.bf16 %v2400_v44, %v2400_v44 }
 0x8f5   : > { %3106 = vmatmul.msk.bf16.vlgmr.msra.gmra.mxu1 %vm1468_vm9, %v2404_v45 }
 0x960   : > { %v2422_v46 = vpop.f32.mrf.mxu0 }
 0x961   : > { %v2485_v48 = vrot.slane %v2422_v46, 4 }
 0x968   : > { %v2424_v47 = vpop.f32.mrf.mxu0 }
 0x970   : > { %v2460_v10 = vpop.f32.mrf.mxu2 }
 0x971   : > { %v2483_v49 = vrot.slane %v2460_v10, 4  ;;  %v2486_v13 = vsel %vm1132_vm8, %v2460_v10, %v2485_v48  ;;  %v2479_v50 = vpop.f32.mrf.mxu3 }
 0x972   : > { %v2494_v52 = vperm.slane %v2486_v13, %v4285_v17  ;;  %v2495_v54 = vrot.slane %v2479_v50, 4  ;;  %v2441_v12 = vpop.f32.mrf.mxu1 }
 0x973   : > { %v2484_v55 = vsel %vm1132_vm8, %v2483_v49, %v2422_v46  ;;  %v2497_v11 = vrot.slane %v2441_v12, 4 }
 0x974   : > { %v2490_v21 = vperm.slane %v2484_v55, %v4285_v17  ;;  %v2496_v56 = vsel %vm1132_vm8, %v2495_v54, %v2441_v12  ;;  %v2521_v61 = vrot.slane %v2494_v52, 4  ;;  %v3172_v12 = vld [vmem:[#allocation13 + $0x8] sm:$0xff] }
 0x975   : > { %v2498_v28 = vsel %vm1132_vm8, %v2479_v50, %v2497_v11  ;;  %v2502_v58 = vperm.slane %v2496_v56, %v4285_v17  ;;  %2638 = vmatpush.bf16.msrb.mxu0 %v3172_v12 }
 0x976   : > { %v2509_v59 = vrot.slane %v2490_v21, 4  ;;  %v2506_v0 = vperm.slane %v2498_v28, %v4285_v17 }
 0x977   : > { %v2507_v2 = vrot.slane %v2502_v58, 4 }
 0x978   : > { %v2510_v3 = vsel %vm1132_vm8, %v2502_v58, %v2509_v59  ;;  %v2519_v4 = vrot.slane %v2506_v0, 4  ;;  %v2522_v1 = vsel %vm1132_vm8, %v2506_v0, %v2521_v61  ;;  %v2462_v63 = vpop.f32.mrf.mxu2  ;;  %v3376_v61 = vld [vmem:[#allocation14] ss:$0 sm:$0xff] }
 0x979   : > { %v2508_v6 = vsel %vm1132_vm8, %v2507_v2, %v2490_v21  ;;  %v2518_v30 = vperm.slane %v2510_v3, %v4296_v35  ;;  %v2530_v7 = vperm.slane %v2522_v1, %v4296_v35  ;;  %v2481_v31 = vpop.f32.mrf.mxu3 }
 0x97a   : > { %v2514_v8 = vperm.slane %v2508_v6, %v4296_v35  ;;  %v2520_v27 = vsel %vm1132_vm8, %v2519_v4, %v2494_v52  ;;  %v2443_v9 = vpop.f32.mrf.mxu1  ;;  %v3173_v31 = vld [vmem:[#allocation19] sm:$0xff] }
 0x97b   : > { %v2526_v14 = vperm.slane %v2520_v27, %v4296_v35  ;;  %v2533_v15 = vrot.slane %v2518_v30, 4  ;;  %v2537_v16 = vrot.slane %v2530_v7, 4  ;;  %v3174_v30 = vld [vmem:[#allocation19 + $0x8] sm:$0xff] }
 0x97c   : > { %v2531_v19 = vrot.slane %v2514_v8, 4  ;;  %2711 = vmatpush.bf16.msrb.mxu1 %v3174_v30 }
 0x97d   : > { %v2534_v20 = vsel %vm1132_vm8, 0.0, %v2533_v15  ;;  %v2535_v22 = vrot.slane %v2526_v14, 4  ;;  %v2538_v23 = vsel %vm1132_vm8, 0.0, %v2537_v16  ;;  %v2539_v24 = vsel %vm1132_vm8, %v2533_v15, %v2514_v8  ;;  %v3182_v15 = vld [vmem:[%s4792_s22 + $0x38] sm:$0xff] }
 0x97e   : > { %v2532_v25 = vsel %vm1132_vm8, 0.0, %v2531_v19  ;;  %v2543_v26 = vperm.slane %v2539_v24, %v4285_v17  ;;  %v2544_v29 = vrot.slane %v2534_v20, 4  ;;  %v2555_v51 = vrot.slane %v2538_v23, 4  ;;  %2796 = vmatpush.bf16.msra.mxu2 %v3182_v15 }
 0x97f   : > { %v2536_v32 = vsel %vm1132_vm8, 0.0, %v2535_v22  ;;  %v2550_v57 = vsel %vm1132_vm8, %v2537_v16, %v2526_v14 }
 0x980   : > { %v2545_v33 = vsel %vm1132_vm8, %v2544_v29, %v2532_v25  ;;  %v2554_v34 = vperm.slane %v2550_v57, %v4285_v17  ;;  %v2556_v36 = vsel %vm1132_vm8, %v2555_v51, %v2536_v32  ;;  %v2563_v37 = vrot.slane %v2543_v26, 4  ;;  %2712 = vmatpush.bf16.msrb.mxu1 %v3173_v31  ;;  %v3377_v29 = vld [vmem:[#allocation16] ss:$0 sm:$0xff]  ;;  %v3378_v57 = vld [vmem:[#allocation17] ss:$0 sm:$0xff] }
 0x981   : > { %v2549_v38 = vperm.slane %v2545_v33, %v4285_v17  ;;  %v2560_v39 = vperm.slane %v2556_v36, %v4285_v17 }
 0x982   : > { %v2575_v60 = vrot.slane %v2554_v34, 4 }
 0x983   : > { %v2564_v40 = vsel %vm1132_vm8, %v2549_v38, %v2563_v37  ;;  %v2561_v62 = vrot.slane %v2549_v38, 4  ;;  %v2573_v41 = vrot.slane %v2560_v39, 4  ;;  %v3181_v37 = vld [vmem:[%s4792_s22 + $0x30] sm:$0xff]  ;;  %v3180_v38 = vld [vmem:[%s4792_s22 + $0x28] sm:$0xff] }
 0x984   : > { %v2572_v42 = vperm.slane %v2564_v40, %v4296_v35  ;;  %v2576_v43 = vsel %vm1132_vm8, %v2560_v39, %v2575_v60  ;;  %2797 = vmatpush.bf16.msra.mxu2 %v3181_v37  ;;  %v3179_v39 = vld [vmem:[%s4792_s22 + $0x20] sm:$0xff]  ;;  %v3178_v60 = vld [vmem:[%s4792_s22 + $0x18] sm:$0xff]  ;;  %v3177_v40 = vld [vmem:[%s4792_s22 + $0x10] sm:$0xff] }
 0x985   : > { %v2584_v5 = vperm.slane %v2576_v43, %v4296_v35  ;;  %v2562_v44 = vsel %vm1132_vm8, %v2561_v62, %v2543_v26  ;;  %v2574_v45 = vsel %vm1132_vm8, %v2573_v41, %v2554_v34  ;;  %v3176_v62 = vld [vmem:[%s4792_s22 + $0x8] sm:$0xff]  ;;  %v3175_v41 = vld [vmem:[%s4792_s22] sm:$0xff] }
 0x986   : > { %v2591_v46 = vrot.slane %v2572_v42, 4  ;;  %v2568_v47 = vperm.slane %v2562_v44, %v4296_v35  ;;  %v2580_v17 = vperm.slane %v2574_v45, %v4296_v35  ;;  %v3171_v35 = vld [vmem:[#allocation13] sm:$0xff] }
 0x987   : > { %v2589_v48 = vrot.slane %v2584_v5, 4  ;;  %2639 = vmatpush.bf16.msrb.mxu0 %v3171_v35 }
 0x988   : > { %v2592_v10 = vsel %vm1132_vm8, %v2584_v5, %v2591_v46  ;;  %v2585_v49 = vrot.slane %v2580_v17, 4  ;;  %v2587_v13 = vrot.slane %v2568_v47, 4  ;;  %2798 = vmatpush.bf16.msra.mxu2 %v3180_v38 }
 0x989   : > { %2602 = vrot.lane.b32.xlu2 %v2592_v10, %s3929_s30  ;;  %v2590_v50 = vsel %vm1132_vm8, %v2589_v48, %v2572_v42  ;;  %v3379_v42 = vld [vmem:[#allocation20] ss:$0 sm:$0xff]  ;;  %s2822_s30 = scalar_lea.hbm %s4794_s24, %s3160_s29 }
 0x98a   : > { %2598 = vrot.lane.b32.xlu1 %v2590_v50, %s3930_s13  ;;  %v2588_v52 = vsel %vm1132_vm8, %v2580_v17, %v2587_v13  ;;  %v2586_v54 = vsel %vm1132_vm8, %v2585_v49, %v2568_v47  ;;  %s936_s13 = scalar_lea.vmem [#allocation23], %s3054_s4  ;;  %s2826_s3 = sshll.u32 %s2822_s30, 4  ;;  %s2827_s3 = int_to_ptr.hbm [resolvable:$true] %s2826_s3 }
 0x98b   : > { %2594 = vrot.lane.b32.xlu0 %v2588_v52, %s3931_s15  ;;  %s2824_s15 = sshll.u32 %s936_s13, 4  ;;  %s3829_s11 = sshra.s32 %s2827_s3, 4  ;;  %s2825_s15 = int_to_ptr.vmem [resolvable:$true] %s2824_s15  ;;  %s3830_s11 = int_to_ptr.hbm [resolvable:$true] %s3829_s11 }
 0x98c   : > { %2799 = vmatpush.bf16.msra.mxu2 %v3179_v39  ;;  %s3831_s6 = scalar_lea.hbm %s3830_s11, 8  ;;  %p3836_p3 = scmp.lt.s32.totalorder %s3830_s11, %s4794_s24 }
 0x98d   : > { %p3832_p0 = scmp.ne.s32.totalorder %s3830_s11, %s3831_s6  ;;  %p3837_p4 = scmp.lt.s32.totalorder %s3835_s25, %s3831_s6 }
 0x98f   : > { %p3833_p1 = pnand %p3832_p0, %p4096_p5  ;;  %p3838_p7 = por %p3837_p4, %p3836_p3 }
 0x990   : > { %2800 = vmatpush.bf16.msra.mxu2 %v3178_v60 }
 0x991   : > { %p3834_p2 = pneg %p3833_p1 }
 0x993   : > { %p3839_p8 = pnand %p3838_p7, %p3834_p2 }
 0x994   : > { %2801 = vmatpush.bf16.msra.mxu2 %v3177_v40 }
 0x998   : > { %2802 = vmatpush.bf16.msra.mxu2 %v3176_v62 }
 0x99c   : > { %2803 = vmatpush.bf16.msra.mxu2 %v3175_v41 }
 0x9e3   : > { %v2603_v56 = vpop.permute.xlu2 %2602 }
 0x9fc   : > { %v2599_v11 = vpop.permute.xlu1 %2598 }
 0x9fd   : > { %v2595_v55 = vpop.permute.xlu0 %2594 }
 0x9fe   : > { %v2605_v21 = vsel %vm1468_vm9, %v2586_v54, %v2595_v55  ;;  %v3380_v54 = vld [vmem:[#allocation22] ss:$0 sm:$0xff] }
 0x9ff   : > { %v2606_v28 = vsel %vm1794_vm11, %v2605_v21, %v2599_v11 }
 0xa00   : > { %v2607_v58 = vsel %vm1796_vm12, %v2606_v28, %v2603_v56 }
 0xa01   : > { %v2608_v59 = vpack.c.bf16 %v2607_v58, %v2607_v58 }
 0xa03   : > { %3117 = vmatmul.msk.bf16.vlgmr.msrb.gmra.mxu0 %vm950_vm0, %v2608_v59 }
 0xa80   : > { %v2641_v0 = vpop.f32.mrf.mxu0 }
 0xa81   : > { %v2642_v2 = vadd.f32 %v3376_v61, %v2641_v0 }
 0xa83   : > { %v4701_v3 = vadd.f32 %v2642_v2, %v4486_v53 }
 0xa85   : > { %v2648_v4 = vsel %vm950_vm0, %v4701_v3, 0.0  ;;  %v2652_v1 = vmul.f32 %v4701_v3, %v4701_v3 }
 0xa86   : > { %2649 = vadd.xlane.f32.xlu0 %v2648_v4 }
 0xa87   : > { %v2653_v63 = vsel %vm950_vm0, %v2652_v1, 0.0 }
 0xa88   : > { %v2643_v6 = vpop.f32.mrf.mxu0  ;;  %2654 = vadd.xlane.f32.xlu1 %v2653_v63 }
 0xaf9   : > { %v2650_v7 = vpop.xlane.xlu0 %2649 }
 0xafa   : > { %v2651_v8 = vmul.f32 %v2650_v7, %v4242_v18 }
 0xafb   : > { %v2655_v27 = vpop.xlane.xlu1 %2654 }
 0xafc   : > { %v2657_v53 = vmul.f32 %v2651_v8, %v2651_v8  ;;  %v2656_v9 = vmul.f32 %v2655_v27, %v4242_v18  ;;  %v2660_v18 = vsub.f32 %v4701_v3, %v2651_v8 }
 0xafe   : > { %v2658_v14 = vsub.f32 %v2656_v9, %v2657_v53 }
 0xb00   : > { %v2659_v16 = vmax.f32 %v2658_v14, 0.0 }
 0xb02   : > { %v2661_v19 = vadd.f32 1e-05, %v2659_v16 }
 0xb04   : > { %3421 = vrsqrt.f32 %v2661_v19  ;;  %vm2668_vm2 = vweird.f32 %v2661_v19 }
 0xb0a   : > { %v3422_v20 = vpop.eup %3421 }
 0xb0b   : > { %v2663_v22 = vmul.f32 %v3422_v20, %v2661_v19  ;;  %vm2669_vm1 = vweird.f32 %v3422_v20 }
 0xb0c   : > { %vm2670_vm3 = vmor %vm2668_vm2, %vm2669_vm1 }
 0xb0d   : > { %v2664_v23 = vmul.f32 %v3422_v20, %v2663_v22 }
 0xb0f   : > { %v2665_v24 = vmul.f32 0.5, %v2664_v23 }
 0xb11   : > { %v2666_v25 = vsub.f32 1.5, %v2665_v24 }
 0xb13   : > { %v2667_v26 = vmul.f32 %v3422_v20, %v2666_v25 }
 0xb15   : > { %v2671_v51 = vsel %vm2670_vm3, %v3422_v20, %v2667_v26 }
 0xb16   : > { %v2672_v32 = vmul.f32 %v2671_v51, %v2660_v18 }
 0xb18   : > { %v2676_v33 = vmul.f32 %v3377_v29, %v2672_v32 }
 0xb1a   : > { %v2680_v34 = vadd.f32 %v3378_v57, %v2676_v33 }
 0xb1c   : > { %v2681_v36 = vpack.c.bf16 %v2680_v34, %v2680_v34 }
 0xb1e   : > { %3126 = vmatmul.msk.bf16.vlgmr.msrb.gmra.mxu1 %vm950_vm0, %v2681_v36 }
 0xb9b   : > { %v2714_v43 = vpop.f32.mrf.mxu1 }
 0xb9c   : > { %v2715_v5 = vadd.f32 %v3379_v42, %v2714_v43 }
 0xb9e   : > { %v2718_v44 = vmul.f32 %v2715_v5, %v2715_v5 }
 0xba0   : > { %v2719_v45 = vmul.f32 %v2718_v44, %v2715_v5 }
 0xba2   : > { %v2720_v46 = vmul.f32 0.044715, %v2719_v45 }
 0xba3   : > { %v2716_v47 = vpop.f32.mrf.mxu1 }
 0xba4   : > { %v2721_v17 = vadd.f32 %v2720_v46, %v2715_v5 }
 0xba6   : > { %v2722_v48 = vmul.f32 0.7978846, %v2721_v17 }
 0xba8   : > { %3423 = vtanh.f32 %v2722_v48 }
 0xbae   : > { %v3424_v10 = vpop.eup %3423 }
 0xbaf   : > { %v2724_v49 = vadd.f32 1.0, %v3424_v10 }
 0xbb1   : > { %v2725_v13 = vmul.f32 0.5, %v2724_v49 }
 0xbb3   : > { %v2726_v50 = vmul.f32 %v2725_v13, %v2715_v5 }
 0xbb5   : > { %v2727_v52 = vpack.c.bf16 %v2726_v50, %v2726_v50 }
 0xbb7   : > { %2804 = vmatmul.bf16.vlgmr.msra.gmra.mxu2 %v2727_v52 }
 0xc3a   : > { %v2805_v12 = vpop.f32.mrf.mxu2 }
 0xc3b   : > { %v2806_v35 = vadd.f32 %v3380_v54, %v2805_v12 }
 0xc3d   : > { %v2809_v55 = vadd.f32 %v2806_v35, %v4701_v3 }
 0xc3f   : > { %2810 = vst.msk [vmem:[%s936_s13] sm:$0xff] %vm950_vm0, %v2809_v55 }
 0xc40   : > { %3842 = shalt.err (!%p3839_p8)
}
 0xc41   : > { %3235 = dma.vmem_to_hbm [thread:$0]  (%p4096_p5), %s2825_s15, 128, %s2827_s3, %s2812_s27  }
 0xc42   : > { %v2807_v11 = vpop.f32.mrf.mxu2 }
 0xc43 PF: > { %s4844_s8 = sld [smem:[#allocation34_spill]] }
 0xc44   : > { %s4845_s1 = sld [smem:[#allocation32_spill]] }
 0xc49   : > { %p3307_p9 = scmp.ge.s32.totalorder %s4844_s8, 2 }
 0xc4a   : > { %s2838_s30 = sand.u32 1, %s4845_s1  }
 0xc4b   : > { %p3278_p10 = pnand %p3307_p9, %p4100_p6  ;;  %s2839_s13 = scalar_lea.sflag [#allocation4], %s2838_s30 }
 0xc4d   : > { %p3279_p11 = pneg %p3278_p10 }
 0xc4f   : > { %3888 = dma.done.wait (%p3279_p11), %s2839_s13, 128  }
 0xc50   : > { %3890 = vsyncadd (%p3279_p11), %s2839_s13, 4294967168  ;;  %s4847_s28 = sld [smem:[#allocation35_spill]]  ;;  %s4850_s5 = smov %s3897_s26 }
 0xc51   : > { %s4848_s11 = sld [smem:[#allocation33_spill]] }
 0xc52   : > { %s4849_s27 = sld [smem:[#allocation36_spill]] }
 0xc56   : > { %p41_p12 = scmp.ge.s32.totalorder %s4847_s28, 4  }
 0xc57   : > { %s4851_s26 = smov %s4848_s11 }
 0xc58   :  { %43 = sbr.rel (!%p41_p12) target bundleno = 24 (0x18), region = 207 }
 0xc5d   :  { %2845 = vsyncpa [#allocation3], 1 }
 0xc5e   :  { %2847 = vsyncpa [#allocation3 + $0x1], 1 }
 0xc5f   :  { %2848 = vsyncpa [#allocation6], 1 }
 0xc60   :  { %2849 = vsyncpa [#allocation9], 1 }
 0xc61   :  { %2850 = vsyncpa [#allocation12], 1 }
 0xc62   :  { %2851 = vsyncpa [#allocation15], 1 }
 0xc63   :  { %2852 = vsyncpa [#allocation18], 1 }
 0xc64   :  { %2853 = vsyncpa [#allocation21], 1 }
 0xc65   :  { %2854 = vsyncpa [#allocation4], 1 }
 0xc66   :  { %2856 = vsyncpa [#allocation4 + $0x1], 1 }

// kernel: tpu_custom_call.1
= control target key start
LH: loop header
LB: loop body
LE: loop exit
PB: predicated region body
PF: predicated region fallthrough
CT: control target
= control target key end

     0   :  { %s4770_s0 = inlined_call_operand.vmem [shape: f32[2,8,32], index: 0, kind: input, shape index: {}]   ;;  %s4771_s1 = inlined_call_operand.vmem [shape: f32[2,8,32], index: 1, kind: input, shape index: {}]   ;;  %s4772_s2 = inlined_call_operand.vmem [shape: f32[1,32], index: 2, kind: input, shape index: {}]   ;;  %s4773_s3 = inlined_call_operand.vmem [shape: f32[1,32], index: 3, kind: input, shape index: {}]   ;;  %s4774_s4 = inlined_call_operand.vmem [shape: f32[1,32], index: 4, kind: input, shape index: {}]   ;;  %s4775_s5 = inlined_call_operand.vmem [shape: f32[1,32], index: 5, kind: input, shape index: {}]   ;;  %s4776_s6 = inlined_call_operand.vmem [shape: bf16[32,32], index: 6, kind: input, shape index: {}]   ;;  %s4777_s7 = inlined_call_operand.vmem [shape: f32[1,32], index: 7, kind: input, shape index: {}]   ;;  %s4778_s8 = inlined_call_operand.vmem [shape: bf16[32,64], index: 8, kind: input, shape index: {}]   ;;  %s4779_s9 = inlined_call_operand.hbm [shape: f32[1,64], index: 9, kind: input, shape index: {}]   ;;  %s4780_s10 = inlined_call_operand.vmem [shape: bf16[32,32], index: 10, kind: input, shape index: {}]   ;;  %s4781_s11 = inlined_call_operand.hbm [shape: f32[1,32], index: 11, kind: input, shape index: {}]   ;;  %s4782_s12 = inlined_call_operand.hbm [shape: f32[1,32], index: 12, kind: input, shape index: {}]   ;;  %s4783_s13 = inlined_call_operand.hbm [shape: f32[1,32], index: 13, kind: input, shape index: {}]   ;;  %s4784_s14 = inlined_call_operand.hbm [shape: bf16[32,96], index: 14, kind: input, shape index: {}]   ;;  %s4785_s15 = inlined_call_operand.hbm [shape: f32[1,96], index: 15, kind: input, shape index: {}]   ;;  %s4786_s16 = inlined_call_operand.hbm [shape: bf16[32,32], index: 16, kind: input, shape index: {}]   ;;  %s4787_s17 = inlined_call_operand.hbm [shape: f32[1,32], index: 17, kind: input, shape index: {}]   ;;  %s4788_s18 = inlined_call_operand.hbm [shape: f32[1,32], index: 18, kind: input, shape index: {}]   ;;  %s4789_s19 = inlined_call_operand.hbm [shape: f32[1,32], index: 19, kind: input, shape index: {}]   ;;  %s4790_s20 = inlined_call_operand.hbm [shape: bf16[32,128], index: 20, kind: input, shape index: {}]   ;;  %s4791_s21 = inlined_call_operand.hbm [shape: f32[1,128], index: 21, kind: input, shape index: {}]   ;;  %s4792_s22 = inlined_call_operand.vmem [shape: bf16[128,32], index: 22, kind: input, shape index: {}]   ;;  %s4793_s23 = inlined_call_operand.hbm [shape: f32[1,32], index: 23, kind: input, shape index: {}]   ;;  %s4794_s24 = inlined_call_operand.hbm [shape: f32[2,8,32], index: 24, kind: output, shape index: {}]  }
   0x1   :  { %4805 = sst [smem:[#allocation39_spill]] %s4770_s0 }
   0x2   :  { %4806 = sst [smem:[#allocation40_spill]] %s4771_s1 }
   0x3   :  { %4807 = sst [smem:[#allocation41_spill]] %s4772_s2 }
   0x4   :  { %4808 = sst [smem:[#allocation42_spill]] %s4773_s3 }
   0x5   :  { %4809 = sst [smem:[#allocation43_spill]] %s4774_s4 }
   0x6   :  { %4810 = sst [smem:[#allocation44_spill]] %s4775_s5 }
   0x7   :  { %4811 = sst [smem:[#allocation45_spill]] %s4776_s6 }
   0x8   :  { %4812 = sst [smem:[#allocation46_spill]] %s4777_s7 }
   0x9   :  { %4813 = sst [smem:[#allocation47_spill]] %s4778_s8 }
   0xa   :  { %4814 = sst [smem:[#allocation48_spill]] %s4779_s9 }
   0xb   :  { %4815 = sst [smem:[#allocation49_spill]] %s4781_s11 }
   0xc   :  { %4816 = sst [smem:[#allocation50_spill]] %s4783_s13 }
   0xd   :  { %4817 = sst [smem:[#allocation51_spill]] %s4785_s15 }
   0xe   :  { %29 = vsyncpa [#allocation3], 0 }
   0xf   :  { %30 = vsyncpa [#allocation6], 0 }
  0x10   :  { %31 = vsyncpa [#allocation9], 0 }
  0x11   :  { %32 = vsyncpa [#allocation12], 0 }
  0x12   :  { %33 = vsyncpa [#allocation15], 0 }
  0x13   :  { %34 = vsyncpa [#allocation18], 0 }
  0x14   :  { %35 = vsyncpa [#allocation21], 0 }
  0x15   :  { %36 = vsyncpa [#allocation4], 0 }
  0x16   :  { %38 = vsyncpa [#allocation4 + $0x1], 0  ;;  %s4058_s5 = smov 0   ;;  %s4060_s26 = smov 0  }
  0x17   :  { %s4062_s27 = smov 0   ;;  %s4064_s28 = smov 0  }
  0x18 LB: > { %4818 = sst [smem:[#allocation32_spill]] %s3893_s5  ;;  %s4079_s6 = sadd.s32 4294967295, %s3905_s28   ;;  %s3905_s28 = sphi %s4064_s28, %s4847_s28   ;;  %s3901_s27 = sphi %s4062_s27, %s4849_s27   ;;  %s3897_s26 = sphi %s4060_s26, %s4851_s26   ;;  %s3893_s5 = sphi %s4058_s5, %s4850_s5  }
  0x19   : > { %4819 = sst [smem:[#allocation33_spill]] %s3901_s27  ;;  %s3024_s2 = sadd.s32 4294967294, %s3905_s28  }
  0x1a   : > { %4820 = sst [smem:[#allocation34_spill]] %s3905_s28  ;;  %s4083_s29 = sadd.s32 1, %s3905_s28  }
  0x1b   : > { %4821 = sst [smem:[#allocation35_spill]] %s4083_s29  ;;  %s565_s0 = sadd.s32 1, %s3901_s27 }
  0x1c   : > { %s562_s7 = ssub.s32 %s3905_s28, %s4083_s29  ;;  %p575_p0 = scmp.ne.s32.totalorder %s3901_s27, %s3897_s26 }
  0x1d   : > { %p563_p1 = scmp.eq.s32.totalorder %s562_s7, 0  ;;  %p576_p2 = scmp.eq.s32.totalorder %s4079_s6, 1 }
  0x1e   : > { %p581_p3 = scmp.ne.s32.totalorder %s3897_s26, %s3893_s5  ;;  %p582_p4 = scmp.eq.s32.totalorder %s3024_s2, 1 }
  0x1f   : > { %s4094_s30 = scalar_select %p563_p1, %s3901_s27, %s565_s0  }
  0x20   : > { %p4096_p5 = por %p576_p2, %p575_p0  ;;  %p4100_p6 = por %p582_p4, %p581_p3 }
  0x21   : > { %4822 = sst [smem:[#allocation36_spill]] %s4094_s30  ;;  %p3025_p7 = scmp.ge.s32.totalorder %s3905_s28, 1 }
  0x22   : > { %s4823_s3 = scalar_select %p4096_p5, 1, 0 }
  0x23   : > { %s4825_s25 = scalar_select %p4100_p6, 1, 0 }
  0x24   : > { %4824 = sst [smem:[#allocation37_spill]] %s4823_s3  ;;  %p589_p8 = scmp.lt.s32.totalorder %s3905_s28, 3 }
  0x25   : > { %4826 = sst [smem:[#allocation38_spill]] %s4825_s25  ;;  %p3281_p9 = scmp.eq.s32.totalorder %s4079_s6, 0 }
  0x26   : > { %p4107_p10 = pnand %p3025_p7, %p589_p8  ;;  %s4828_s11 = sld [smem:[#allocation49_spill]] }
  0x27   : > { %s3907_s0 = smov [#allocation5]   ;;  %s4829_s13 = sld [smem:[#allocation50_spill]] }
  0x28   : > { %p3237_p11 = pneg %p4107_p10  ;;  %s639_s7 = sshll.u32 %s3907_s0, 4  ;;  %s640_s7 = int_to_ptr.vmem [resolvable:$true] %s639_s7 }
  0x29   : > { %s4831_s15 = sld [smem:[#allocation51_spill]]  ;;  %s3908_s5 = smov [#allocation8]  }
  0x2a   : > { %p4121_p12 = pnand %p3281_p9, %p3237_p11  ;;  %s663_s0 = sshll.u32 %s3908_s5, 4  ;;  %s664_s0 = int_to_ptr.vmem [resolvable:$true] %s663_s0 }
  0x2b   : > { %s3909_s28 = smov [#allocation11]   ;;  %s3910_s4 = smov [#allocation14]  }
  0x2c   : > { %s637_s2 = sshll.u32 %s4828_s11, 4  ;;  %s689_s3 = sshll.u32 %s3909_s28, 4  ;;  %s638_s2 = int_to_ptr.hbm [resolvable:$true] %s637_s2  ;;  %s690_s3 = int_to_ptr.vmem [resolvable:$true] %s689_s3 }
  0x2d   : > { %s661_s29 = sshll.u32 %s4829_s13, 4  ;;  %s713_s13 = sshll.u32 %s4787_s17, 4  ;;  %s662_s29 = int_to_ptr.hbm [resolvable:$true] %s661_s29  ;;  %s714_s13 = int_to_ptr.hbm [resolvable:$true] %s713_s13 }
  0x2e   : > { %3243 = dma.hbm_to_vmem [thread:$0]  (!%p4121_p12), %s638_s2, 16, %s640_s7, [#allocation6]  }
  0x2f   : > { %s687_s11 = sshll.u32 %s4831_s15, 4  ;;  %s715_s5 = sshll.u32 %s3910_s4, 4  ;;  %s688_s11 = int_to_ptr.hbm [resolvable:$true] %s687_s11  ;;  %s716_s5 = int_to_ptr.vmem [resolvable:$true] %s715_s5 }
  0x30   : > { %3249 = dma.hbm_to_vmem [thread:$0]  (!%p4121_p12), %s662_s29, 16, %s664_s0, [#allocation9]  }
  0x31   : > { %3255 = dma.hbm_to_vmem [thread:$0]  (!%p4121_p12), %s688_s11, 16, %s690_s3, [#allocation12]  }
  0x32   : > { %s737_s2 = sshll.u32 %s4789_s19, 4  ;;  %s763_s0 = sshll.u32 %s4791_s21, 4  ;;  %s738_s2 = int_to_ptr.hbm [resolvable:$true] %s737_s2  ;;  %s764_s0 = int_to_ptr.hbm [resolvable:$true] %s763_s0 }
  0x33   : > { %3261 = dma.hbm_to_vmem [thread:$0]  (!%p4121_p12), %s714_s13, 16, %s716_s5, [#allocation15]  }
  0x34   : > { %s3911_s28 = smov [#allocation17]   ;;  %s3912_s11 = smov [#allocation20]  }
  0x35   : > { %s739_s27 = sshll.u32 %s3911_s28, 4  ;;  %s765_s3 = sshll.u32 %s3912_s11, 4  ;;  %s740_s27 = int_to_ptr.vmem [resolvable:$true] %s739_s27  ;;  %s766_s3 = int_to_ptr.vmem [resolvable:$true] %s765_s3 }
  0x36   : > { %3267 = dma.hbm_to_vmem [thread:$0]  (!%p4121_p12), %s738_s2, 16, %s740_s27, [#allocation18]  }
  0x37   : > { %s4832_s9 = sld [smem:[#allocation48_spill]]  ;;  %s649_s1 = sshll.u32 %s4782_s12, 4  ;;  %s650_s1 = int_to_ptr.hbm [resolvable:$true] %s649_s1 }
  0x38   : > { %3273 = dma.hbm_to_vmem [thread:$0]  (!%p4121_p12), %s764_s0, 16, %s766_s3, [#allocation21]  }
  0x39   : > { %s3913_s29 = smov [#allocation2]   ;;  %s3914_s2 = smov [#allocation7]  }
  0x3a   : > { %s624_s7 = sshll.u32 %s3913_s29, 4  ;;  %s651_s28 = sshll.u32 %s3914_s2, 4  ;;  %s625_s7 = int_to_ptr.vmem [resolvable:$true] %s624_s7  ;;  %s652_s28 = int_to_ptr.vmem [resolvable:$true] %s651_s28 }
  0x3b   : > { %s672_s15 = sshll.u32 %s4784_s14, 4  ;;  %s3915_s0 = smov [#allocation10]   ;;  %s673_s15 = int_to_ptr.hbm [resolvable:$true] %s672_s15 }
  0x3c   : > { %3246 = dma.hbm_to_vmem [thread:$0]  (!%p4121_p12), %s650_s1, 16, %s652_s28, [#allocation6]  }
  0x3d   : > { %s622_s4 = sshll.u32 %s4832_s9, 4  ;;  %s674_s3 = sshll.u32 %s3915_s0, 4  ;;  %s623_s4 = int_to_ptr.hbm [resolvable:$true] %s622_s4  ;;  %s675_s3 = int_to_ptr.vmem [resolvable:$true] %s674_s3 }
  0x3e   : > { %3240 = dma.hbm_to_vmem [thread:$0]  (!%p4121_p12), %s623_s4, 16, %s625_s7, [#allocation3]  }
  0x3f   : > { %s698_s5 = sshll.u32 %s4786_s16, 4  ;;  %s3916_s4 = smov 64   ;;  %s699_s5 = int_to_ptr.hbm [resolvable:$true] %s698_s5 }
  0x40   : > { %s3917_s29 = smov 4   ;;  %s3918_s7 = smov [#allocation13]  }
  0x41   : > { %3252 = dma.hbm_to_vmem [thread:$0]  (!%p4121_p12), %s673_s15, 256, %s675_s3, [#allocation9], %s3916_s4, %s3916_s4, %s3917_s29  }
  0x42   : > { %s700_s2 = sshll.u32 %s3918_s7, 4  ;;  %s725_s1 = sshll.u32 %s4788_s18, 4  ;;  %s701_s2 = int_to_ptr.vmem [resolvable:$true] %s700_s2  ;;  %s726_s1 = int_to_ptr.hbm [resolvable:$true] %s725_s1 }
  0x43   : > { %3258 = dma.hbm_to_vmem [thread:$0]  (!%p4121_p12), %s699_s5, 256, %s701_s2, [#allocation12], %s3916_s4, %s3916_s4, %s3917_s29  }
  0x44   : > { %s748_s30 = sshll.u32 %s4790_s20, 4  ;;  %s3919_s13 = smov [#allocation16]   ;;  %s749_s30 = int_to_ptr.hbm [resolvable:$true] %s748_s30 }
  0x45   : > { %s727_s9 = sshll.u32 %s3919_s13, 4  ;;  %s3920_s15 = smov [#allocation19]   ;;  %s728_s9 = int_to_ptr.vmem [resolvable:$true] %s727_s9 }
  0x46   : > { %3264 = dma.hbm_to_vmem [thread:$0]  (!%p4121_p12), %s726_s1, 16, %s728_s9, [#allocation15]  }
  0x47   : > { %s750_s3 = sshll.u32 %s3920_s15, 4  ;;  %s778_s11 = sshll.u32 %s4793_s23, 4  ;;  %s751_s3 = int_to_ptr.vmem [resolvable:$true] %s750_s3  ;;  %s779_s11 = int_to_ptr.hbm [resolvable:$true] %s778_s11 }
  0x48   : > { %3270 = dma.hbm_to_vmem [thread:$0]  (!%p4121_p12), %s749_s30, 256, %s751_s3, [#allocation18], %s3916_s4, %s3916_s4, %s3917_s29  }
  0x49   : > { %s3921_s5 = smov [#allocation22]   ;;  %807 = sbr.rel (%p4107_p10) target bundleno = 3139 (0xc43), region = 116 }
  0x4a   : > { %s780_s2 = sshll.u32 %s3921_s5, 4  ;;  %s781_s2 = int_to_ptr.vmem [resolvable:$true] %s780_s2 }
  0x4b   : > { %3276 = dma.hbm_to_vmem [thread:$0]  (!%p4121_p12), %s779_s11, 16, %s781_s2, [#allocation21]  }
  0x4e   : > { %3860 = dma.done.wait (%p3281_p9), [#allocation3], 16  }
  0x4f   : > { %3862 = vsyncadd (%p3281_p9), [#allocation3], 4294967280 }
  0x50   : > { %3864 = dma.done.wait (%p3281_p9), [#allocation6], 32  }
  0x51   : > { %3866 = vsyncadd (%p3281_p9), [#allocation6], 4294967264 }
  0x52   : > { %3868 = dma.done.wait (%p3281_p9), [#allocation9], 272  }
  0x53   : > { %3870 = vsyncadd (%p3281_p9), [#allocation9], 4294967024 }
  0x54   : > { %3872 = dma.done.wait (%p3281_p9), [#allocation12], 272  }
  0x55   : > { %3874 = vsyncadd (%p3281_p9), [#allocation12], 4294967024 }
  0x56   : > { %3876 = dma.done.wait (%p3281_p9), [#allocation15], 32  }
  0x57   : > { %3878 = vsyncadd (%p3281_p9), [#allocation15], 4294967264 }
  0x58   : > { %3880 = dma.done.wait (%p3281_p9), [#allocation18], 272  }
  0x59   : > { %3882 = vsyncadd (%p3281_p9), [#allocation18], 4294967024 }
  0x5a   : > { %3884 = dma.done.wait (%p3281_p9), [#allocation21], 32  }
  0x5b   : > { %3886 = vsyncadd (%p3281_p9), [#allocation21], 4294967264  ;;  %p937_p13 = scmp.lt.s32.totalorder %s4079_s6, 1  ;;  %s4833_s29 = sld [smem:[#allocation40_spill]]  ;;  %vm950_vm0 = vcmask 261120   ;;  %v3922_v8 = vmov 32.0  }
  0x5c   : > { %s4834_s30 = sld [smem:[#allocation39_spill]]  ;;  %3381 = vrcp.f32 %v3922_v8  ;;  %v3371_v63 = vld [vmem:[#allocation2] ss:$0 sm:$0xff]  ;;  %s3926_s0 = smov 112   ;;  %vm1132_vm8 = vcmask 1047556   ;;  %vm1468_vm9 = vcmask 64512  }
  0x5d   : > { %s938_s9 = scalar_select %p937_p13, %s4079_s6, 1  ;;  %vm1596_vm10 = vcmask 1043456   ;;  %vm1794_vm11 = vcmask 130048   ;;  %vm1796_vm12 = vcmask 195584  }
  0x5e   : > { %s4835_s7 = sld [smem:[#allocation45_spill]]  ;;  %s3931_s15 = smov 8  }
  0x5f   : > { %s3055_s25 = sshll.u32 %s938_s9, 3  ;;  %s4836_s5 = sld [smem:[#allocation47_spill]] }
  0x60   : > { %s4838_s28 = sld [smem:[#allocation43_spill]]  ;;  %s934_s8 = sand.u32 1, %s3897_s26  }
  0x61   : > { %s944_s1 = scalar_lea.vmem %s4833_s29, %s3055_s25  ;;  %s4840_s27 = sld [smem:[#allocation44_spill]] }
  0x62   : > { %s940_s13 = scalar_lea.vmem %s4834_s30, %s3055_s25  ;;  %v4222_v0 = vld [vmem:[%s944_s1] sm:$0xff]  ;;  %v3382_v9 = vpop.eup %3381  ;;  %s4841_s9 = sld [smem:[#allocation42_spill]] }
  0x63   : > { %v4224_v1 = vld [vmem:[%s940_s13] sm:$0xff]  ;;  %v993_v2 = vsel %vm950_vm0, %v4222_v0, 0.0  ;;  %v997_v4 = vmul.f32 %v4222_v0, %v4222_v0  ;;  %v955_v10 = vmul.f32 32.0, %v3382_v9  ;;  %vm959_vm1 = vweird.f32 %v3382_v9  ;;  %s4839_s13 = sld [smem:[#allocation41_spill]]  ;;  %s3923_s29 = smov 104  }
  0x64   : > { %v951_v3 = vsel %vm950_vm0, %v4224_v1, 0.0  ;;  %994 = vadd.xlane.f32.xlu0 %v993_v2  ;;  %v962_v5 = vmul.f32 %v4224_v1, %v4224_v1  ;;  %v3164_v16 = vld [vmem:[%s4835_s7 + $0x8] sm:$0xff]  ;;  %v3163_v19 = vld [vmem:[%s4835_s7] sm:$0xff]  ;;  %s4842_s4 = sld [smem:[#allocation46_spill]]  ;;  %s3924_s1 = smov 120  }
  0x65   : > { %952 = vadd.xlane.f32.xlu1 %v951_v3  ;;  %v998_v6 = vsel %vm950_vm0, %v997_v4, 0.0  ;;  %v956_v11 = vsub.f32 1.0, %v955_v10  ;;  %s4837_s2 = smov %s4836_s5  ;;  %v3166_v17 = vld [vmem:[%s4836_s5 + $0x8] sm:$0xff]  ;;  %1056 = vmatpush.bf16.msra.mxu0 %v3164_v16  ;;  %s3929_s30 = smov 24  }
  0x66   : > { %v963_v7 = vsel %vm950_vm0, %v962_v5, 0.0  ;;  %1094 = vmatpush.bf16.msra.mxu1 %v3166_v17  ;;  %v3165_v20 = vld [vmem:[%s4837_s2] sm:$0xff]  ;;  %s3835_s25 = scalar_lea.hbm %s4794_s24, 16 }
  0x67   : > { %v957_v12 = vmul.f32 %v3382_v9, %v956_v11  ;;  %v3368_v48 = vld [vmem:[%s4838_s28] ss:$0 sm:$0xff]  ;;  %s3925_s28 = smov 96  }
  0x68   : > { %v3369_v54 = vld [vmem:[%s4840_s27] ss:$0 sm:$0xff]  ;;  %s2812_s27 = scalar_lea.sflag [#allocation4], %s934_s8 }
  0x69   : > { %v958_v13 = vadd.f32 %v3382_v9, %v957_v12  ;;  %1057 = vmatpush.bf16.msra.mxu0 %v3163_v19  ;;  %v3366_v50 = vld [vmem:[%s4839_s13] ss:$0 sm:$0xff]  ;;  %s3930_s13 = smov 16  }
  0x6a   : > { %1095 = vmatpush.bf16.msra.mxu1 %v3165_v20  ;;  %v3367_v56 = vld [vmem:[%s4841_s9] ss:$0 sm:$0xff]  ;;  %s3932_s9 = smov 64  }
  0x6b   : > { %v4242_v18 = vsel %vm959_vm1, %v3382_v9, %v958_v13  ;;  %v3927_v13 = vmov 1983009808  }
  0x6c   : > { %999 = vadd.xlane.f32.xlu0 %v998_v6 }
  0x6d   : > { %964 = vadd.xlane.f32.xlu1 %v963_v7 }
  0xd7   : > { %v995_v14 = vpop.xlane.xlu0 %994 }
  0xd8   : > { %v953_v15 = vpop.xlane.xlu1 %952  ;;  %v996_v21 = vmul.f32 %v995_v14, %v4242_v18  ;;  %v1123_v14 = vunpack.c.l.s4 %v3927_v13 }
  0xd9   : > { %v961_v22 = vmul.f32 %v4242_v18, %v953_v15 }
  0xda   : > { %v1002_v25 = vmul.f32 %v996_v21, %v996_v21  ;;  %v1005_v46 = vsub.f32 %v4222_v0, %v996_v21  ;;  %v3370_v0 = vld [vmem:[%s4842_s4] ss:$0 sm:$0xff]  ;;  %v4285_v17 = vunpack.c.0.s8 %v1123_v14  ;;  %s3054_s4 = sshll.u32 %s934_s8, 3 }
  0xdb   : > { %v967_v26 = vmul.f32 %v961_v22, %v961_v22  ;;  %v970_v49 = vsub.f32 %v4224_v1, %v961_v22 }
  0xdf   : > { %v1000_v23 = vpop.xlane.xlu0 %999 }
  0xe0   : > { %v965_v24 = vpop.xlane.xlu1 %964  ;;  %v1001_v27 = vmul.f32 %v1000_v23, %v4242_v18  ;;  %v3928_v23 = vmov 1934713408  }
  0xe1   : > { %v966_v28 = vmul.f32 %v965_v24, %v4242_v18  ;;  %v1137_v24 = vunpack.c.l.s4 %v3928_v23 }
  0xe2   : > { %v1003_v29 = vsub.f32 %v1001_v27, %v1002_v25 }
  0xe3   : > { %v968_v30 = vsub.f32 %v966_v28, %v967_v26 }
  0xe4   : > { %v1004_v31 = vmax.f32 %v1003_v29, 0.0 }
  0xe5   : > { %v969_v32 = vmax.f32 %v968_v30, 0.0 }
  0xe6   : > { %v1006_v33 = vadd.f32 1e-05, %v1004_v31 }
  0xe7   : > { %v971_v34 = vadd.f32 1e-05, %v969_v32 }
  0xe8   : > { %3383 = vrsqrt.f32 %v1006_v33  ;;  %vm1013_vm4 = vweird.f32 %v1006_v33 }
  0xe9   : > { %3385 = vrsqrt.f32 %v971_v34  ;;  %vm978_vm6 = vweird.f32 %v971_v34 }
  0xee   : > { %v3384_v35 = vpop.eup %3383 }
  0xef   : > { %v3386_v36 = vpop.eup %3385  ;;  %v1008_v37 = vmul.f32 %v3384_v35, %v1006_v33  ;;  %vm1014_vm2 = vweird.f32 %v3384_v35 }
  0xf0   : > { %v973_v38 = vmul.f32 %v3386_v36, %v971_v34  ;;  %vm979_vm3 = vweird.f32 %v3386_v36  ;;  %vm1015_vm5 = vmor %vm1013_vm4, %vm1014_vm2 }
  0xf1   : > { %v1009_v39 = vmul.f32 %v3384_v35, %v1008_v37  ;;  %vm980_vm7 = vmor %vm978_vm6, %vm979_vm3 }
  0xf2   : > { %v974_v40 = vmul.f32 %v3386_v36, %v973_v38 }
  0xf3   : > { %v1010_v41 = vmul.f32 0.5, %v1009_v39 }
  0xf4   : > { %v975_v42 = vmul.f32 0.5, %v974_v40 }
  0xf5   : > { %v1011_v43 = vsub.f32 1.5, %v1010_v41 }
  0xf6   : > { %v976_v44 = vsub.f32 1.5, %v975_v42 }
  0xf7   : > { %v1012_v45 = vmul.f32 %v3384_v35, %v1011_v43 }
  0xf8   : > { %v977_v47 = vmul.f32 %v3386_v36, %v976_v44 }
  0xf9   : > { %v1016_v51 = vsel %vm1015_vm5, %v3384_v35, %v1012_v45  ;;  %v4296_v35 = vunpack.c.0.s8 %v1137_v24 }
  0xfa   : > { %v981_v52 = vsel %vm980_vm7, %v3386_v36, %v977_v47  ;;  %v1017_v53 = vmul.f32 %v1016_v51, %v1005_v46 }
  0xfb   : > { %v982_v55 = vmul.f32 %v981_v52, %v970_v49 }
  0xfc   : > { %v1021_v57 = vmul.f32 %v3368_v48, %v1017_v53 }
  0xfd   : > { %v986_v58 = vmul.f32 %v3366_v50, %v982_v55 }
  0xfe   : > { %v1025_v59 = vadd.f32 %v3369_v54, %v1021_v57 }
  0xff   : > { %v990_v60 = vadd.f32 %v3367_v56, %v986_v58 }
 0x100   : > { %v1064_v61 = vpack.c.bf16 %v1025_v59, %v1025_v59 }
 0x101   : > { %v1026_v62 = vpack.c.bf16 %v990_v60, %v990_v60 }
 0x102   : > { %3074 = vmatmul.msk.bf16.vlgmr.msra.gmra.mxu1 %vm950_vm0, %v1064_v61 }
 0x103   : > { %3065 = vmatmul.msk.bf16.vlgmr.msra.gmra.mxu0 %vm950_vm0, %v1026_v62 }
 0x17f   : > { %v1097_v2 = vpop.f32.mrf.mxu1 }
 0x180   : > { %v1059_v3 = vpop.f32.mrf.mxu0  ;;  %v1098_v4 = vadd.f32 %v3371_v63, %v1097_v2 }
 0x181   : > { %v1060_v5 = vadd.f32 %v3370_v0, %v1059_v3 }
 0x182   : > { %v1224_v6 = vpack.c.bf16 %v1098_v4, %v1098_v4 }
 0x183   : > { %v1063_v7 = vmul.f32 0.35355338, %v1060_v5 }
 0x184   : > { %1230 = vrot.lane.b32.xlu0 %v1224_v6, %s3923_s29  ;;  %1226 = vrot.lane.b32.xlu2 %v1224_v6, %s3924_s1  ;;  %v1235_v20 = vshrl.u32 %v1224_v6, 16 }
 0x185   : > { %v1101_v8 = vpack.c.bf16 %v1063_v7, %v1063_v7 }
 0x187   : > { %1103 = vrot.lane.b32.xlu1 %v1101_v8, %s3924_s1  ;;  %v1099_v9 = vpop.f32.mrf.mxu1  ;;  %v1112_v43 = vshrl.u32 %v1101_v8, 16 }
 0x188   : > { %v1061_v10 = vpop.f32.mrf.mxu0 }
 0x18c   : > { %1346 = vrot.lane.b32.xlu0 %v1224_v6, %s3925_s28  ;;  %1228 = vrot.lane.b32.xlu2 %v1224_v6, %s3926_s0 }
 0x194   : > { %1105 = vrot.lane.b32.xlu2 %v1101_v8, %s3926_s0 }
 0x19c   : > { %1107 = vrot.lane.b32.xlu2 %v1101_v8, %s3923_s29 }
 0x1de   : > { %v4280_v11 = vpop.permute.xlu2 %1226 }
 0x1df   : > { %v1236_v15 = vshrl.u32 %v4280_v11, 16  ;;  %v1234_v19 = vpack.i.b16 %v4280_v11, %v1224_v6 }
 0x1e1   : > { %v1237_v21 = vpack.i.b16 %v1236_v15, %v1235_v20  ;;  %v1248_v22 = vperm.slane %v1234_v19, %v4285_v17 }
 0x1e3   : > { %v1274_v25 = vperm.slane %v1237_v21, %v4285_v17  ;;  %v1256_v34 = vrot.slane %v1248_v22, 4 }
 0x1e5   : > { %v1282_v41 = vrot.slane %v1274_v25, 4 }
 0x1e6   : > { %v4282_v12 = vpop.permute.xlu2 %1228 }
 0x1e7   : > { %v1241_v26 = vshrl.u32 %v4282_v12, 16 }
 0x1ee   : > { %v1106_v16 = vpop.permute.xlu2 %1105 }
 0x1ef   : > { %v1118_v27 = vshrl.u32 %v1106_v16, 16 }
 0x1f6   : > { %v4291_v28 = vpop.permute.xlu0 %1230  ;;  %v1108_v29 = vpop.permute.xlu2 %1107 }
 0x1f7   : > { %v1240_v30 = vpack.i.b16 %v4291_v28, %v4282_v12  ;;  %v1242_v31 = vshrl.u32 %v4291_v28, 16  ;;  %v1117_v32 = vpack.i.b16 %v1108_v29, %v1106_v16  ;;  %v1119_v33 = vshrl.u32 %v1108_v29, 16 }
 0x1f9   : > { %v1243_v36 = vpack.i.b16 %v1242_v31, %v1241_v26  ;;  %v1253_v37 = vperm.slane %v1240_v30, %v4285_v17  ;;  %v1120_v38 = vpack.i.b16 %v1119_v33, %v1118_v27  ;;  %v1130_v39 = vperm.slane %v1117_v32, %v4285_v17  ;;  %v1104_v40 = vpop.permute.xlu1 %1103 }
 0x1fa   : > { %v1111_v42 = vpack.i.b16 %v1104_v40, %v1101_v8  ;;  %v1113_v44 = vshrl.u32 %v1104_v40, 16 }
 0x1fb   : > { %v1254_v45 = vrot.slane %v1253_v37, 4  ;;  %v1257_v46 = vsel %vm1132_vm8, %v1253_v37, %v1256_v34  ;;  %v1279_v47 = vperm.slane %v1243_v36, %v4285_v17  ;;  %v1131_v48 = vrot.slane %v1130_v39, 4 }
 0x1fc   : > { %v1265_v49 = vperm.slane %v1257_v46, %v4296_v35  ;;  %v1157_v50 = vperm.slane %v1120_v38, %v4285_v17  ;;  %v1114_v51 = vpack.i.b16 %v1113_v44, %v1112_v43  ;;  %v1125_v52 = vperm.slane %v1111_v42, %v4285_v17 }
 0x1fd   : > { %v1255_v53 = vsel %vm1132_vm8, %v1254_v45, %v1248_v22  ;;  %v1280_v54 = vrot.slane %v1279_v47, 4  ;;  %v1283_v55 = vsel %vm1132_vm8, %v1279_v47, %v1282_v41 }
 0x1fe   : > { %v1261_v56 = vperm.slane %v1255_v53, %v4296_v35  ;;  %v1268_v57 = vrot.slane %v1265_v49, 4  ;;  %v1291_v58 = vperm.slane %v1283_v55, %v4296_v35  ;;  %v1158_v59 = vrot.slane %v1157_v50, 4 }
 0x1ff   : > { %v1281_v60 = vsel %vm1132_vm8, %v1280_v54, %v1274_v25  ;;  %v1133_v61 = vsel %vm1132_vm8, %v1131_v48, %v1125_v52  ;;  %v1134_v62 = vrot.slane %v1125_v52, 4  ;;  %v1152_v63 = vperm.slane %v1114_v51, %v4285_v17 }
 0x200   : > { %v1266_v0 = vrot.slane %v1261_v56, 4  ;;  %v1269_v2 = vsel %vm1132_vm8, 0, %v1268_v57  ;;  %v1287_v3 = vperm.slane %v1281_v60, %v4296_v35  ;;  %v1294_v4 = vrot.slane %v1291_v58, 4 }
 0x201   : > { %v1301_v5 = vrot.slane %v1269_v2, 4  ;;  %v1135_v6 = vsel %vm1132_vm8, %v1130_v39, %v1134_v62  ;;  %v1139_v7 = vperm.slane %v1133_v61, %v4296_v35  ;;  %v1159_v8 = vsel %vm1132_vm8, %v1158_v59, %v1152_v63 }
 0x202   : > { %v1292_v9 = vrot.slane %v1287_v3, 4  ;;  %v1295_v10 = vsel %vm1132_vm8, 0, %v1294_v4  ;;  %v1143_v13 = vperm.slane %v1135_v6, %v4296_v35  ;;  %v1160_v14 = vrot.slane %v1152_v63, 4 }
 0x203   : > { %v1320_v15 = vrot.slane %v1295_v10, 4  ;;  %v1165_v16 = vperm.slane %v1159_v8, %v4296_v35  ;;  %v1144_v19 = vrot.slane %v1139_v7, 4  ;;  %v1267_v22 = vsel %vm1132_vm8, 0, %v1266_v0 }
 0x204   : > { %v1146_v20 = vrot.slane %v1143_v13, 4  ;;  %v1161_v21 = vsel %vm1132_vm8, %v1157_v50, %v1160_v14  ;;  %v1293_v24 = vsel %vm1132_vm8, 0, %v1292_v9  ;;  %v1296_v27 = vsel %vm1132_vm8, %v1268_v57, %v1261_v56 }
 0x205   : > { %v1169_v23 = vperm.slane %v1161_v21, %v4296_v35  ;;  %v1170_v26 = vrot.slane %v1165_v16, 4  ;;  %v1302_v29 = vsel %vm1132_vm8, %v1301_v5, %v1267_v22  ;;  %v1145_v33 = vsel %vm1132_vm8, 0, %v1144_v19 }
 0x206   : > { %v1147_v25 = vsel %vm1132_vm8, 0, %v1146_v20  ;;  %v1306_v32 = vperm.slane %v1302_v29, %v4285_v17  ;;  %v1315_v34 = vsel %vm1132_vm8, %v1294_v4, %v1287_v3  ;;  %v1321_v36 = vsel %vm1132_vm8, %v1320_v15, %v1293_v24 }
 0x207   : > { %v1172_v30 = vrot.slane %v1169_v23, 4  ;;  %v1179_v31 = vrot.slane %v1147_v25, 4  ;;  %v1300_v38 = vperm.slane %v1296_v27, %v4285_v17  ;;  %v1325_v40 = vperm.slane %v1321_v36, %v4285_v17 }
 0x208   : > { %v1307_v39 = vrot.slane %v1306_v32, 4  ;;  %v1171_v41 = vsel %vm1132_vm8, 0, %v1170_v26  ;;  %v1174_v42 = vsel %vm1132_vm8, %v1146_v20, %v1139_v7  ;;  %v1319_v46 = vperm.slane %v1315_v34, %v4285_v17 }
 0x209   : > { %v1173_v37 = vsel %vm1132_vm8, 0, %v1172_v30  ;;  %v1180_v44 = vsel %vm1132_vm8, %v1179_v31, %v1145_v33  ;;  %v1326_v47 = vrot.slane %v1325_v40, 4  ;;  %v1193_v50 = vsel %vm1132_vm8, %v1172_v30, %v1165_v16 }
 0x20a   : > { %v1198_v43 = vrot.slane %v1173_v37, 4  ;;  %v1308_v45 = vsel %vm1132_vm8, %v1307_v39, %v1300_v38  ;;  %v1184_v48 = vperm.slane %v1180_v44, %v4285_v17  ;;  %v1178_v53 = vperm.slane %v1174_v42, %v4285_v17 }
 0x20b   : > { %v1312_v49 = vperm.slane %v1308_v45, %v4296_v35  ;;  %v1327_v52 = vsel %vm1132_vm8, %v1326_v47, %v1319_v46  ;;  %v1197_v60 = vperm.slane %v1193_v50, %v4285_v17 }
 0x20c   : > { %v1199_v51 = vsel %vm1132_vm8, %v1198_v43, %v1171_v41  ;;  %v1185_v54 = vrot.slane %v1184_v48, 4  ;;  %v1331_v56 = vperm.slane %v1327_v52, %v4296_v35  ;;  %v1347_v52 = vpop.permute.xlu0 %1346 }
 0x20d   : > { %v1203_v55 = vperm.slane %v1199_v51, %v4285_v17  ;;  %v1313_v57 = vrot.slane %v1312_v49, 4  ;;  %v1337_v58 = vshrl.u32 %v1312_v49, 16 }
 0x20e   : > { %v1186_v59 = vsel %vm1132_vm8, %v1185_v54, %v1178_v53  ;;  %v1336_v62 = vpack.i.b16 %v1331_v56, %v1312_v49  ;;  %v1338_v63 = vshrl.u32 %v1331_v56, 16  ;;  %v1332_v2 = vrot.slane %v1331_v56, 4 }
 0x20f   : > { %v1204_v61 = vrot.slane %v1203_v55, 4  ;;  %v1314_v0 = vsel %vm1132_vm8, 0, %v1313_v57  ;;  %v1190_v3 = vperm.slane %v1186_v59, %v4296_v35 }
 0x210   : > { %v1473_v5 = vsel %vm1468_vm9, %v1336_v62, 0  ;;  %v1339_v6 = vpack.i.b16 %v1338_v63, %v1337_v58  ;;  %v1333_v7 = vsel %vm1132_vm8, 0, %v1332_v2  ;;  %v1343_v10 = vshrl.u32 %v1314_v0, 16 }
 0x211   : > { %v1205_v4 = vsel %vm1132_vm8, %v1204_v61, %v1197_v60  ;;  %1482 = vmatpush.bf16.xpose.msra.mxu3 %v1473_v5  ;;  %v1342_v9 = vpack.i.b16 %v1333_v7, %v1314_v0  ;;  %v1344_v13 = vshrl.u32 %v1333_v7, 16  ;;  %v1191_v15 = vrot.slane %v1190_v3, 4 }
 0x212   : > { %v1209_v8 = vperm.slane %v1205_v4, %v4296_v35  ;;  %v1492_v14 = vsel %vm1468_vm9, %v1339_v6, 0  ;;  %v1215_v31 = vshrl.u32 %v1190_v3, 16 }
 0x213   : > { %v1511_v19 = vsel %vm1468_vm9, %v1342_v9, 0  ;;  %v1345_v20 = vpack.i.b16 %v1344_v13, %v1343_v10  ;;  %v1192_v24 = vsel %vm1132_vm8, 0, %v1191_v15 }
 0x214   : > { %v1210_v16 = vrot.slane %v1209_v8, 4  ;;  %1520 = vmatpush.bf16.xpose.msrb.mxu0 %v1511_v19  ;;  %v1214_v23 = vpack.i.b16 %v1209_v8, %v1190_v3  ;;  %v1221_v27 = vshrl.u32 %v1192_v24, 16  ;;  %v1216_v30 = vshrl.u32 %v1209_v8, 16 }
 0x215   : > { %v1530_v22 = vsel %vm1468_vm9, %v1345_v20, 0  ;;  %v1357_v3 = vshrl.u32 %v1347_v52, 16 }
 0x216   : > { %v1211_v21 = vsel %vm1132_vm8, 0, %v1210_v16  ;;  %1539 = vmatpush.bf16.xpose.msrb.mxu1 %v1530_v22  ;;  %v1217_v32 = vpack.i.b16 %v1216_v30, %v1215_v31 }
 0x217   : > { %v1222_v25 = vshrl.u32 %v1211_v21, 16  ;;  %v1220_v26 = vpack.i.b16 %v1211_v21, %v1192_v24 }
 0x218   : > { %3075 = vmatmul.msk.bf16.vlgmr.msra.gmra.mxu3 %vm1468_vm9, %v1214_v23 }
 0x219   : > { %1501 = vmatpush.bf16.xpose.msrb.mxu3 %v1492_v14  ;;  %v1223_v29 = vpack.i.b16 %v1222_v25, %v1221_v27 }
 0x21b   : > { %3077 = vmatmul.msk.bf16.vlgmr.msrb.gmra.mxu0 %vm1468_vm9, %v1220_v26 }
 0x21d   : > { %3078 = vmatmul.msk.bf16.vlgmr.msrb.gmra.mxu1 %vm1468_vm9, %v1223_v29 }
 0x228   : > { %3076 = vmatmul.msk.bf16.vlgmr.msrb.gmra.mxu3 %vm1468_vm9, %v1217_v32 }
 0x298   : > { %v1522_v33 = vpop.f32.mrf.mxu0 }
 0x299   : > { %v1551_v34 = vsel %vm1468_vm9, %v1522_v33, -inf }
 0x29a   : > { %v1541_v36 = vpop.f32.mrf.mxu1  ;;  %1552 = vmax.xlane.f32.xlu1 %v1551_v34 }
 0x29b   : > { %v1484_v37 = vpop.f32.mrf.mxu3  ;;  %v1554_v38 = vsel %vm1468_vm9, %v1541_v36, -inf }
 0x29c   : > { %1555 = vmax.xlane.f32.xlu2 %v1554_v38  ;;  %v1545_v42 = vsel %vm1468_vm9, %v1484_v37, -inf }
 0x2a0   : > { %v1524_v39 = vpop.f32.mrf.mxu0 }
 0x2a2   : > { %v1543_v40 = vpop.f32.mrf.mxu1 }
 0x2a3   : > { %v1486_v41 = vpop.f32.mrf.mxu3 }
 0x2a4   : > { %1546 = vmax.xlane.f32.xlu2 %v1545_v42 }
 0x2ab   : > { %v1503_v43 = vpop.f32.mrf.mxu3 }
 0x2ac   : > { %v1548_v44 = vsel %vm1468_vm9, %v1503_v43, -inf }
 0x2ad   : > { %1549 = vmax.xlane.f32.xlu0 %v1548_v44 }
 0x2b3   : > { %v1505_v45 = vpop.f32.mrf.mxu3  ;;  %1350 = vrot.lane.b32.xlu1 %v4282_v12, %s3925_s28 }
 0x2bc   : > { %1348 = vrot.lane.b32.xlu2 %v4280_v11, %s3925_s28 }
 0x2c1   : > { %1352 = vrot.lane.b32.xlu0 %v4291_v28, %s3925_s28 }
 0x30d   : > { %v1553_v46 = vpop.xlane.xlu1 %1552 }
 0x30e   : > { %v1559_v47 = vsub.f32 %v1522_v33, %v1553_v46 }
 0x30f   : > { %v1556_v48 = vpop.xlane.xlu2 %1555 }
 0x310   : > { %v1565_v49 = vmul.f32 1.442695, %v1559_v47  ;;  %v1560_v12 = vsub.f32 %v1541_v36, %v1556_v48 }
 0x312   : > { %3387 = vpow2.f32 %v1565_v49  ;;  %v1567_v11 = vmul.f32 1.442695, %v1560_v12 }
 0x317   : > { %v1547_v50 = vpop.xlane.xlu2 %1546 }
 0x318   : > { %v4374_v51 = vpop.eup %3387  ;;  %v1557_v53 = vsub.f32 %v1484_v37, %v1547_v50 }
 0x319   : > { %v1575_v54 = vsel %vm1468_vm9, %v4374_v51, 0.0 }
 0x31a   : > { %v1561_v55 = vmul.f32 1.442695, %v1557_v53  ;;  %1576 = vadd.xlane.f32.xlu1 %v1575_v54 }
 0x31c   : > { %3389 = vpow2.f32 %v1561_v55 }
 0x31d   : > { %3391 = vpow2.f32 %v1567_v11 }
 0x31f   : > { %v1349_v61 = vpop.permute.xlu2 %1348 }
 0x320   : > { %v1550_v56 = vpop.xlane.xlu0 %1549  ;;  %v1358_v0 = vshrl.u32 %v1349_v61, 16  ;;  %v1356_v4 = vpack.i.b16 %v1349_v61, %v1347_v52 }
 0x321   : > { %v1558_v28 = vsub.f32 %v1503_v43, %v1550_v56 }
 0x322   : > { %v4378_v57 = vpop.eup %3389  ;;  %v1359_v5 = vpack.i.b16 %v1358_v0, %v1357_v3  ;;  %v1370_v7 = vperm.slane %v1356_v4, %v4285_v17 }
 0x323   : > { %v1563_v58 = vmul.f32 1.442695, %v1558_v28  ;;  %v1569_v59 = vsel %vm1468_vm9, %v4378_v57, 0.0  ;;  %v4382_v60 = vpop.eup %3391 }
 0x324   : > { %1570 = vadd.xlane.f32.xlu2 %v1569_v59  ;;  %v1578_v63 = vsel %vm1468_vm9, %v4382_v60, 0.0  ;;  %v1396_v9 = vperm.slane %v1359_v5, %v4285_v17  ;;  %v1378_v15 = vrot.slane %v1370_v7, 4 }
 0x325   : > { %3393 = vpow2.f32 %v1563_v58  ;;  %v1351_v6 = vpop.permute.xlu1 %1350 }
 0x326   : > { %v1363_v10 = vshrl.u32 %v1351_v6, 16  ;;  %v1404_v20 = vrot.slane %v1396_v9, 4 }
 0x32b   : > { %v4384_v62 = vpop.eup %3393 }
 0x32c   : > { %1579 = vadd.xlane.f32.xlu2 %v1578_v63  ;;  %v1572_v2 = vsel %vm1468_vm9, %v4384_v62, 0.0 }
 0x32d   : > { %1573 = vadd.xlane.f32.xlu0 %v1572_v2 }
 0x333   : > { %v1353_v8 = vpop.permute.xlu0 %1352 }
 0x334   : > { %v1362_v13 = vpack.i.b16 %v1353_v8, %v1351_v6  ;;  %v1364_v14 = vshrl.u32 %v1353_v8, 16 }
 0x336   : > { %v1365_v16 = vpack.i.b16 %v1364_v14, %v1363_v10  ;;  %v1375_v19 = vperm.slane %v1362_v13, %v4285_v17 }
 0x338   : > { %v1376_v21 = vrot.slane %v1375_v19, 4  ;;  %v1379_v22 = vsel %vm1132_vm8, %v1375_v19, %v1378_v15  ;;  %v1401_v23 = vperm.slane %v1365_v16, %v4285_v17 }
 0x339   : > { %v1387_v24 = vperm.slane %v1379_v22, %v4296_v35 }
 0x33a   : > { %v1377_v25 = vsel %vm1132_vm8, %v1376_v21, %v1370_v7  ;;  %v1402_v26 = vrot.slane %v1401_v23, 4  ;;  %v1405_v27 = vsel %vm1132_vm8, %v1401_v23, %v1404_v20 }
 0x33b   : > { %v1383_v29 = vperm.slane %v1377_v25, %v4296_v35  ;;  %v1390_v30 = vrot.slane %v1387_v24, 4  ;;  %v1413_v31 = vperm.slane %v1405_v27, %v4296_v35 }
 0x33c   : > { %v1403_v32 = vsel %vm1132_vm8, %v1402_v26, %v1396_v9 }
 0x33d   : > { %v1388_v33 = vrot.slane %v1383_v29, 4  ;;  %v1391_v34 = vsel %vm1132_vm8, 0, %v1390_v30  ;;  %v1409_v36 = vperm.slane %v1403_v32, %v4296_v35  ;;  %v1416_v37 = vrot.slane %v1413_v31, 4 }
 0x33e   : > { %v1423_v38 = vrot.slane %v1391_v34, 4  ;;  %v1418_v43 = vsel %vm1132_vm8, %v1390_v30, %v1383_v29 }
 0x33f   : > { %v1389_v39 = vsel %vm1132_vm8, 0, %v1388_v33  ;;  %v1414_v40 = vrot.slane %v1409_v36, 4  ;;  %v1417_v41 = vsel %vm1132_vm8, 0, %v1416_v37  ;;  %v1437_v47 = vsel %vm1132_vm8, %v1416_v37, %v1409_v36 }
 0x340   : > { %v1442_v42 = vrot.slane %v1417_v41, 4  ;;  %v1424_v44 = vsel %vm1132_vm8, %v1423_v38, %v1389_v39  ;;  %v1422_v49 = vperm.slane %v1418_v43, %v4285_v17  ;;  %v1441_v54 = vperm.slane %v1437_v47, %v4285_v17 }
 0x341   : > { %v1415_v45 = vsel %vm1132_vm8, 0, %v1414_v40  ;;  %v1428_v46 = vperm.slane %v1424_v44, %v4285_v17 }
 0x342   : > { %v1443_v48 = vsel %vm1132_vm8, %v1442_v42, %v1415_v45 }
 0x343   : > { %v1429_v50 = vrot.slane %v1428_v46, 4  ;;  %v1447_v52 = vperm.slane %v1443_v48, %v4285_v17 }
 0x345   : > { %v1430_v53 = vsel %vm1132_vm8, %v1429_v50, %v1422_v49  ;;  %v1448_v12 = vrot.slane %v1447_v52, 4 }
 0x346   : > { %v1434_v55 = vperm.slane %v1430_v53, %v4296_v35 }
 0x347   : > { %v1449_v11 = vsel %vm1132_vm8, %v1448_v12, %v1441_v54 }
 0x348   : > { %v1453_v56 = vperm.slane %v1449_v11, %v4296_v35  ;;  %v1435_v28 = vrot.slane %v1434_v55, 4  ;;  %v1459_v58 = vshrl.u32 %v1434_v55, 16 }
 0x34a   : > { %v1458_v59 = vpack.i.b16 %v1453_v56, %v1434_v55  ;;  %v1460_v61 = vshrl.u32 %v1453_v56, 16  ;;  %v1436_v63 = vsel %vm1132_vm8, 0, %v1435_v28  ;;  %v1454_v0 = vrot.slane %v1453_v56, 4 }
 0x34b   : > { %v1465_v6 = vshrl.u32 %v1436_v63, 16 }
 0x34c   : > { %v1598_v2 = vsel %vm1596_vm10, %v1458_v59, 0  ;;  %v1461_v3 = vpack.i.b16 %v1460_v61, %v1459_v58  ;;  %v1455_v4 = vsel %vm1132_vm8, 0, %v1454_v0 }
 0x34d   : > { %1607 = vmatpush.bf16.msra.mxu2 %v1598_v2  ;;  %v1464_v5 = vpack.i.b16 %v1455_v4, %v1436_v63  ;;  %v1466_v7 = vshrl.u32 %v1455_v4, 16 }
 0x34e   : > { %v1617_v8 = vsel %vm1596_vm10, %v1461_v3, 0 }
 0x34f   : > { %1626 = vmatpush.bf16.msra.mxu3 %v1617_v8  ;;  %v1636_v9 = vsel %vm1596_vm10, %v1464_v5, 0  ;;  %v1467_v10 = vpack.i.b16 %v1466_v7, %v1465_v6 }
 0x350   : > { %1645 = vmatpush.bf16.msra.mxu0 %v1636_v9 }
 0x351   : > { %v1655_v13 = vsel %vm1596_vm10, %v1467_v10, 0 }
 0x352   : > { %1664 = vmatpush.bf16.msra.mxu1 %v1655_v13 }
 0x38d   : > { %v1577_v14 = vpop.xlane.xlu1 %1576 }
 0x38e   : > { %3395 = vrcp.f32 %v1577_v14 }
 0x394   : > { %v3396_v15 = vpop.eup %3395 }
 0x395   : > { %v1587_v16 = vmul.f32 %v3396_v15, %v4374_v51 }
 0x397   : > { %v1591_v19 = vpack.c.bf16 %v1587_v16, %v1587_v16  ;;  %v1571_v20 = vpop.xlane.xlu2 %1570 }
 0x398   : > { %3397 = vrcp.f32 %v1571_v20 }
 0x399   : > { %3081 = vmatmul.msk.bf16.vlgmr.msra.gmra.mxu0 %vm1468_vm9, %v1591_v19 }
 0x39e   : > { %v3398_v21 = vpop.eup %3397 }
 0x39f   : > { %v1580_v22 = vpop.xlane.xlu2 %1579  ;;  %v1585_v23 = vmul.f32 %v3398_v21, %v4378_v57 }
 0x3a0   : > { %3399 = vrcp.f32 %v1580_v22  ;;  %v1574_v24 = vpop.xlane.xlu0 %1573 }
 0x3a1   : > { %3401 = vrcp.f32 %v1574_v24  ;;  %v1589_v25 = vpack.c.bf16 %v1585_v23, %v1585_v23 }
 0x3a3   : > { %3079 = vmatmul.msk.bf16.vlgmr.msra.gmra.mxu2 %vm1468_vm9, %v1589_v25 }
 0x3a6   : > { %v3400_v26 = vpop.eup %3399 }
 0x3a7   : > { %v3402_v27 = vpop.eup %3401  ;;  %v1588_v29 = vmul.f32 %v3400_v26, %v4382_v60 }
 0x3a8   : > { %v1586_v51 = vmul.f32 %v3402_v27, %v4384_v62 }
 0x3a9   : > { %v1592_v30 = vpack.c.bf16 %v1588_v29, %v1588_v29 }
 0x3aa   : > { %v1590_v31 = vpack.c.bf16 %v1586_v51, %v1586_v51 }
 0x3ab   : > { %3082 = vmatmul.msk.bf16.vlgmr.msra.gmra.mxu1 %vm1468_vm9, %v1592_v30 }
 0x3ac   : > { %3080 = vmatmul.msk.bf16.vlgmr.msra.gmra.mxu3 %vm1468_vm9, %v1590_v31 }
 0x416   : > { %v1647_v32 = vpop.f32.mrf.mxu0 }
 0x417   : > { %v1670_v34 = vrot.slane %v1647_v32, 4 }
 0x41e   : > { %v1649_v57 = vpop.f32.mrf.mxu0 }
 0x426   : > { %v1609_v33 = vpop.f32.mrf.mxu2 }
 0x427   : > { %v1673_v36 = vrot.slane %v1609_v33, 4  ;;  %v1672_v38 = vsel %vm1132_vm8, %v1670_v34, %v1609_v33 }
 0x428   : > { %v1666_v37 = vpop.f32.mrf.mxu1  ;;  %v1678_v60 = vperm.slane %v1672_v38, %v4285_v17 }
 0x429   : > { %v1674_v39 = vsel %vm1132_vm8, %v1647_v32, %v1673_v36  ;;  %v1683_v40 = vrot.slane %v1666_v37, 4 }
 0x42a   : > { %v1682_v41 = vperm.slane %v1674_v39, %v4285_v17  ;;  %v1697_v46 = vrot.slane %v1678_v60, 4 }
 0x42c   : > { %v1709_v49 = vrot.slane %v1682_v41, 4 }
 0x42e   : > { %v1611_v62 = vpop.f32.mrf.mxu2 }
 0x42f   : > { %v1628_v42 = vpop.f32.mrf.mxu3  ;;  %v3168_v62 = vld [vmem:[%s4780_s10 + $0x8] sm:$0xff] }
 0x430   : > { %v1684_v43 = vsel %vm1132_vm8, %v1683_v40, %v1628_v42  ;;  %v1685_v44 = vrot.slane %v1628_v42, 4  ;;  %v1668_v45 = vpop.f32.mrf.mxu1  ;;  %1828 = vmatpush.bf16.msrb.mxu2 %v3168_v62 }
 0x431   : > { %v1690_v47 = vperm.slane %v1684_v43, %v4285_v17 }
 0x432   : > { %v1686_v48 = vsel %vm1132_vm8, %v1666_v37, %v1685_v44 }
 0x433   : > { %v1694_v50 = vperm.slane %v1686_v48, %v4285_v17  ;;  %v1695_v52 = vrot.slane %v1690_v47, 4  ;;  %v1698_v53 = vsel %vm1132_vm8, %v1690_v47, %v1697_v46 }
 0x434   : > { %v1706_v54 = vperm.slane %v1698_v53, %v4296_v35 }
 0x435   : > { %v1696_v12 = vsel %vm1132_vm8, %v1695_v52, %v1678_v60  ;;  %v1707_v55 = vrot.slane %v1694_v50, 4  ;;  %v1710_v11 = vsel %vm1132_vm8, %v1694_v50, %v1709_v49  ;;  %v3372_v49 = vld [vmem:[#allocation5] ss:$0 sm:$0xff] }
 0x436   : > { %v1702_v56 = vperm.slane %v1696_v12, %v4296_v35  ;;  %v1718_v28 = vperm.slane %v1710_v11, %v4296_v35  ;;  %v1721_v58 = vrot.slane %v1706_v54, 4 }
 0x437   : > { %v1708_v59 = vsel %vm1132_vm8, %v1707_v55, %v1682_v41  ;;  %v1630_v61 = vpop.f32.mrf.mxu3  ;;  %v3167_v41 = vld [vmem:[%s4780_s10] sm:$0xff] }
 0x438   : > { %v1714_v63 = vperm.slane %v1708_v59, %v4296_v35  ;;  %v1719_v0 = vrot.slane %v1702_v56, 4  ;;  %v1722_v2 = vsel %vm1132_vm8, 0.0, %v1721_v58  ;;  %v1725_v3 = vrot.slane %v1718_v28, 4  ;;  %1829 = vmatpush.bf16.msrb.mxu2 %v3167_v41  ;;  %v3169_v59 = vld [vmem:[#allocation10] sm:$0xff] }
 0x439   : > { %v1727_v4 = vsel %vm1132_vm8, %v1721_v58, %v1702_v56  ;;  %v1732_v5 = vrot.slane %v1722_v2, 4  ;;  %v3170_v56 = vld [vmem:[#allocation10 + $0x8] sm:$0xff] }
 0x43a   : > { %v1720_v6 = vsel %vm1132_vm8, 0.0, %v1719_v0  ;;  %v1723_v7 = vrot.slane %v1714_v63, 4  ;;  %v1726_v8 = vsel %vm1132_vm8, 0.0, %v1725_v3  ;;  %v1731_v9 = vperm.slane %v1727_v4, %v4285_v17  ;;  %1901 = vmatpush.bf16.msrb.mxu3 %v3170_v56 }
 0x43b   : > { %v1743_v10 = vrot.slane %v1726_v8, 4  ;;  %v1733_v13 = vsel %vm1132_vm8, %v1732_v5, %v1720_v6  ;;  %v1738_v14 = vsel %vm1132_vm8, %v1725_v3, %v1714_v63 }
 0x43c   : > { %v1724_v15 = vsel %vm1132_vm8, 0.0, %v1723_v7  ;;  %v1737_v16 = vperm.slane %v1733_v13, %v4285_v17  ;;  %v1742_v19 = vperm.slane %v1738_v14, %v4285_v17  ;;  %v1751_v20 = vrot.slane %v1731_v9, 4  ;;  %v3373_v13 = vld [vmem:[#allocation7] ss:$0 sm:$0xff] }
 0x43d   : > { %v1744_v21 = vsel %vm1132_vm8, %v1743_v10, %v1724_v15 }
 0x43e   : > { %v1748_v22 = vperm.slane %v1744_v21, %v4285_v17  ;;  %v1752_v23 = vsel %vm1132_vm8, %v1737_v16, %v1751_v20  ;;  %v1763_v24 = vrot.slane %v1742_v19, 4  ;;  %v1749_v25 = vrot.slane %v1737_v16, 4  ;;  %1902 = vmatpush.bf16.msrb.mxu3 %v3169_v59  ;;  %v3374_v16 = vld [vmem:[#allocation8] ss:$0 sm:$0xff] }
 0x43f   : > { %v1760_v26 = vperm.slane %v1752_v23, %v4296_v35 }
 0x440   : > { %v1764_v27 = vsel %vm1132_vm8, %v1748_v22, %v1763_v24  ;;  %v1750_v29 = vsel %vm1132_vm8, %v1749_v25, %v1731_v9  ;;  %v1761_v51 = vrot.slane %v1748_v22, 4  ;;  %v3375_v22 = vld [vmem:[#allocation11] ss:$0 sm:$0xff] }
 0x441   : > { %v1772_v30 = vperm.slane %v1764_v27, %v4296_v35  ;;  %v1779_v31 = vrot.slane %v1760_v26, 4  ;;  %v1756_v32 = vperm.slane %v1750_v29, %v4296_v35 }
 0x442   : > { %v1762_v57 = vsel %vm1132_vm8, %v1761_v51, %v1742_v19 }
 0x443   : > { %v1780_v33 = vsel %vm1132_vm8, %v1772_v30, %v1779_v31  ;;  %v1777_v34 = vrot.slane %v1772_v30, 4  ;;  %v1768_v36 = vperm.slane %v1762_v57, %v4296_v35  ;;  %v1775_v37 = vrot.slane %v1756_v32, 4 }
 0x444   : > { %1790 = vrot.lane.b32.xlu2 %v1780_v33, %s3929_s30 }
 0x445   : > { %v1778_v38 = vsel %vm1132_vm8, %v1777_v34, %v1760_v26  ;;  %v1773_v39 = vrot.slane %v1768_v36, 4  ;;  %v1776_v60 = vsel %vm1132_vm8, %v1768_v36, %v1775_v37 }
 0x446   : > { %1786 = vrot.lane.b32.xlu1 %v1778_v38, %s3930_s13  ;;  %1782 = vrot.lane.b32.xlu0 %v1776_v60, %s3931_s15 }
 0x447   : > { %v1774_v40 = vsel %vm1132_vm8, %v1773_v39, %v1756_v32 }
 0x49e   : > { %v1791_v45 = vpop.permute.xlu2 %1790 }
 0x4b8   : > { %v1787_v42 = vpop.permute.xlu1 %1786  ;;  %v1783_v43 = vpop.permute.xlu0 %1782 }
 0x4b9   : > { %v1793_v44 = vsel %vm1468_vm9, %v1774_v40, %v1783_v43 }
 0x4ba   : > { %v1795_v46 = vsel %vm1794_vm11, %v1793_v44, %v1787_v42 }
 0x4bb   : > { %v1797_v47 = vsel %vm1796_vm12, %v1795_v46, %v1791_v45 }
 0x4bc   : > { %v1798_v48 = vpack.c.bf16 %v1797_v47, %v1797_v47 }
 0x4be   : > { %3091 = vmatmul.msk.bf16.vlgmr.msrb.gmra.mxu2 %vm950_vm0, %v1798_v48 }
 0x541   : > { %v1831_v50 = vpop.f32.mrf.mxu2 }
 0x542   : > { %v1832_v52 = vadd.f32 %v3372_v49, %v1831_v50 }
 0x544   : > { %v4486_v53 = vadd.f32 %v1832_v52, %v4224_v1 }
 0x546   : > { %v1838_v54 = vsel %vm950_vm0, %v4486_v53, 0.0  ;;  %v1842_v12 = vmul.f32 %v4486_v53, %v4486_v53 }
 0x547   : > { %1839 = vadd.xlane.f32.xlu0 %v1838_v54 }
 0x548   : > { %v1843_v55 = vsel %vm950_vm0, %v1842_v12, 0.0 }
 0x549   : > { %v1833_v11 = vpop.f32.mrf.mxu2  ;;  %1844 = vadd.xlane.f32.xlu1 %v1843_v55 }
 0x5ba   : > { %v1840_v28 = vpop.xlane.xlu0 %1839 }
 0x5bb   : > { %v1841_v58 = vmul.f32 %v1840_v28, %v4242_v18 }
 0x5bc   : > { %v1845_v61 = vpop.xlane.xlu1 %1844 }
 0x5bd   : > { %v1847_v1 = vmul.f32 %v1841_v58, %v1841_v58  ;;  %v1846_v63 = vmul.f32 %v1845_v61, %v4242_v18  ;;  %v1850_v10 = vsub.f32 %v4486_v53, %v1841_v58 }
 0x5bf   : > { %v1848_v0 = vsub.f32 %v1846_v63, %v1847_v1 }
 0x5c1   : > { %v1849_v2 = vmax.f32 %v1848_v0, 0.0 }
 0x5c3   : > { %v1851_v3 = vadd.f32 1e-05, %v1849_v2 }
 0x5c5   : > { %3403 = vrsqrt.f32 %v1851_v3  ;;  %vm1858_vm14 = vweird.f32 %v1851_v3 }
 0x5cb   : > { %v3404_v4 = vpop.eup %3403 }
 0x5cc   : > { %v1853_v5 = vmul.f32 %v3404_v4, %v1851_v3  ;;  %vm1859_vm13 = vweird.f32 %v3404_v4 }
 0x5cd   : > { %vm1860_vm15 = vmor %vm1858_vm14, %vm1859_vm13 }
 0x5ce   : > { %v1854_v6 = vmul.f32 %v3404_v4, %v1853_v5 }
 0x5d0   : > { %v1855_v7 = vmul.f32 0.5, %v1854_v6 }
 0x5d2   : > { %v1856_v8 = vsub.f32 1.5, %v1855_v7 }
 0x5d4   : > { %v1857_v9 = vmul.f32 %v3404_v4, %v1856_v8 }
 0x5d6   : > { %v1861_v14 = vsel %vm1860_vm15, %v3404_v4, %v1857_v9 }
 0x5d7   : > { %v1862_v15 = vmul.f32 %v1861_v14, %v1850_v10 }
 0x5d9   : > { %v1866_v19 = vmul.f32 %v3373_v13, %v1862_v15 }
 0x5db   : > { %v1870_v20 = vadd.f32 %v3374_v16, %v1866_v19 }
 0x5dd   : > { %v1871_v21 = vpack.c.bf16 %v1870_v20, %v1870_v20 }
 0x5df   : > { %3100 = vmatmul.msk.bf16.vlgmr.msrb.gmra.mxu3 %vm950_vm0, %v1871_v21 }
 0x662   : > { %v1904_v23 = vpop.f32.mrf.mxu3 }
 0x663   : > { %v1905_v24 = vadd.f32 %v3375_v22, %v1904_v23 }
 0x665   : > { %v2031_v25 = vpack.c.bf16 %v1905_v24, %v1905_v24  ;;  %v1908_v29 = vmul.f32 0.35355338, %v1905_v24 }
 0x667   : > { %2033 = vrot.lane.b32.xlu2 %v2031_v25, %s3924_s1  ;;  %v1909_v51 = vpack.c.bf16 %v1908_v29, %v1908_v29 }
 0x669   : > { %v1920_v38 = vshrl.u32 %v1909_v51, 16 }
 0x66a   : > { %v1906_v26 = vpop.f32.mrf.mxu3 }
 0x66f   : > { %2035 = vrot.lane.b32.xlu2 %v2031_v25, %s3926_s0 }
 0x677   : > { %2037 = vrot.lane.b32.xlu2 %v2031_v25, %s3923_s29 }
 0x67f   : > { %2039 = vrot.lane.b32.xlu2 %v2031_v25, %s3925_s28 }
 0x6c1   : > { %v4501_v27 = vpop.permute.xlu2 %2033 }
 0x6c2   : > { %2041 = vrot.lane.b32.xlu0 %v4501_v27, %s3925_s28 }
 0x6c9   : > { %v4505_v30 = vpop.permute.xlu2 %2035 }
 0x6ca   : > { %2043 = vrot.lane.b32.xlu2 %v4505_v30, %s3925_s28  ;;  %1915 = vrot.lane.b32.xlu0 %v1909_v51, %s3923_s29  ;;  %s3160_s29 = sshll.u32 %s4079_s6, 3 }
 0x6d1   : > { %v4510_v31 = vpop.permute.xlu2 %2037 }
 0x6d2   : > { %2045 = vrot.lane.b32.xlu1 %v4510_v31, %s3925_s28  ;;  %2161 = vrot.lane.b32.xlu0 %v2031_v25, %s3932_s9 }
 0x6d3   : > { %1911 = vrot.lane.b32.xlu2 %v1909_v51, %s3924_s1 }
 0x6d9   : > { %v2040_v32 = vpop.permute.xlu2 %2039 }
 0x6da   : > { %v2050_v49 = vshrl.u32 %v2040_v32, 16 }
 0x6db   : > { %1913 = vrot.lane.b32.xlu2 %v1909_v51, %s3926_s0 }
 0x724   : > { %v2044_v57 = vpop.permute.xlu2 %2043 }
 0x725   : > { %v2056_v3 = vshrl.u32 %v2044_v57, 16 }
 0x72d   : > { %v1912_v33 = vpop.permute.xlu2 %1911 }
 0x72e   : > { %v1921_v36 = vshrl.u32 %v1912_v33, 16  ;;  %v1919_v37 = vpack.i.b16 %v1912_v33, %v1909_v51 }
 0x730   : > { %v1922_v39 = vpack.i.b16 %v1921_v36, %v1920_v38  ;;  %v1933_v40 = vperm.slane %v1919_v37, %v4285_v17 }
 0x732   : > { %v1959_v41 = vperm.slane %v1922_v39, %v4285_v17  ;;  %v1941_v46 = vrot.slane %v1933_v40, 4 }
 0x734   : > { %v2042_v34 = vpop.permute.xlu0 %2041  ;;  %v1967_v52 = vrot.slane %v1959_v41, 4 }
 0x735   : > { %v1914_v60 = vpop.permute.xlu2 %1913  ;;  %v2051_v45 = vshrl.u32 %v2042_v34, 16  ;;  %v2049_v50 = vpack.i.b16 %v2042_v34, %v2040_v32 }
 0x736   : > { %v1926_v42 = vshrl.u32 %v1914_v60, 16 }
 0x737   : > { %v2052_v11 = vpack.i.b16 %v2051_v45, %v2050_v49  ;;  %v2063_v61 = vperm.slane %v2049_v50, %v4285_v17 }
 0x739   : > { %v2089_v7 = vperm.slane %v2052_v11, %v4285_v17  ;;  %v2071_v16 = vrot.slane %v2063_v61, 4 }
 0x73b   : > { %v2097_v23 = vrot.slane %v2089_v7, 4 }
 0x73c   : > { %v1916_v62 = vpop.permute.xlu0 %1915 }
 0x73d   : > { %v1925_v43 = vpack.i.b16 %v1916_v62, %v1914_v60  ;;  %v1927_v44 = vshrl.u32 %v1916_v62, 16 }
 0x73f   : > { %v1928_v47 = vpack.i.b16 %v1927_v44, %v1926_v42  ;;  %v1938_v48 = vperm.slane %v1925_v43, %v4285_v17 }
 0x741   : > { %v1939_v54 = vrot.slane %v1938_v48, 4  ;;  %v1942_v12 = vsel %vm1132_vm8, %v1938_v48, %v1941_v46  ;;  %v1964_v55 = vperm.slane %v1928_v47, %v4285_v17 }
 0x742   : > { %v1950_v56 = vperm.slane %v1942_v12, %v4296_v35 }
 0x743   : > { %v1940_v28 = vsel %vm1132_vm8, %v1939_v54, %v1933_v40  ;;  %v1965_v58 = vrot.slane %v1964_v55, 4  ;;  %v1968_v59 = vsel %vm1132_vm8, %v1964_v55, %v1967_v52 }
 0x744   : > { %v1946_v1 = vperm.slane %v1940_v28, %v4296_v35  ;;  %v1953_v63 = vrot.slane %v1950_v56, 4  ;;  %v1976_v0 = vperm.slane %v1968_v59, %v4296_v35  ;;  %v2046_v2 = vpop.permute.xlu1 %2045 }
 0x745   : > { %v1966_v4 = vsel %vm1132_vm8, %v1965_v58, %v1959_v41  ;;  %v2055_v5 = vpack.i.b16 %v2046_v2, %v2044_v57  ;;  %v2057_v6 = vshrl.u32 %v2046_v2, 16 }
 0x746   : > { %v1972_v8 = vperm.slane %v1966_v4, %v4296_v35  ;;  %v1979_v9 = vrot.slane %v1976_v0, 4  ;;  %v1951_v10 = vrot.slane %v1946_v1, 4  ;;  %v1954_v13 = vsel %vm1132_vm8, 0, %v1953_v63 }
 0x747   : > { %v2058_v14 = vpack.i.b16 %v2057_v6, %v2056_v3  ;;  %v2068_v15 = vperm.slane %v2055_v5, %v4285_v17  ;;  %v1986_v25 = vrot.slane %v1954_v13, 4  ;;  %v1981_v55 = vsel %vm1132_vm8, %v1953_v63, %v1946_v1 }
 0x748   : > { %v1977_v19 = vrot.slane %v1972_v8, 4  ;;  %v1980_v20 = vsel %vm1132_vm8, 0, %v1979_v9  ;;  %v1952_v29 = vsel %vm1132_vm8, 0, %v1951_v10  ;;  %v2000_v50 = vsel %vm1132_vm8, %v1979_v9, %v1972_v8 }
 0x749   : > { %v2005_v21 = vrot.slane %v1980_v20, 4  ;;  %v2069_v22 = vrot.slane %v2068_v15, 4  ;;  %v2072_v26 = vsel %vm1132_vm8, %v2068_v15, %v2071_v16  ;;  %v2094_v57 = vperm.slane %v2058_v14, %v4285_v17 }
 0x74a   : > { %v1978_v24 = vsel %vm1132_vm8, 0, %v1977_v19  ;;  %v2080_v32 = vperm.slane %v2072_v26, %v4296_v35  ;;  %v1987_v39 = vsel %vm1132_vm8, %v1986_v25, %v1952_v29  ;;  %v2004_v0 = vperm.slane %v2000_v50, %v4285_v17 }
 0x74b   : > { %v2070_v51 = vsel %vm1132_vm8, %v2069_v22, %v2063_v61  ;;  %v2006_v34 = vsel %vm1132_vm8, %v2005_v21, %v1978_v24  ;;  %v2095_v37 = vrot.slane %v2094_v57, 4  ;;  %v2098_v38 = vsel %vm1132_vm8, %v2094_v57, %v2097_v23 }
 0x74c   : > { %v2076_v33 = vperm.slane %v2070_v51, %v4296_v35  ;;  %v2083_v36 = vrot.slane %v2080_v32, 4  ;;  %v2106_v40 = vperm.slane %v2098_v38, %v4296_v35  ;;  %v2010_v42 = vperm.slane %v2006_v34, %v4285_v17 }
 0x74d   : > { %v2096_v41 = vsel %vm1132_vm8, %v2095_v37, %v2089_v7  ;;  %v1991_v46 = vperm.slane %v1987_v39, %v4285_v17  ;;  %v1985_v5 = vperm.slane %v1981_v55, %v4285_v17 }
 0x74e   : > { %v2081_v60 = vrot.slane %v2076_v33, 4  ;;  %v2084_v62 = vsel %vm1132_vm8, 0, %v2083_v36  ;;  %v2102_v44 = vperm.slane %v2096_v41, %v4296_v35  ;;  %v2109_v45 = vrot.slane %v2106_v40, 4 }
 0x74f   : > { %v2116_v47 = vrot.slane %v2084_v62, 4  ;;  %v2111_v52 = vsel %vm1132_vm8, %v2083_v36, %v2076_v33  ;;  %v2011_v11 = vrot.slane %v2010_v42, 4  ;;  %v1992_v58 = vrot.slane %v1991_v46, 4 }
 0x750   : > { %v2082_v43 = vsel %vm1132_vm8, 0, %v2081_v60  ;;  %v2107_v48 = vrot.slane %v2102_v44, 4  ;;  %v2110_v49 = vsel %vm1132_vm8, 0, %v2109_v45  ;;  %v2130_v59 = vsel %vm1132_vm8, %v2109_v45, %v2102_v44 }
 0x751   : > { %v2117_v54 = vsel %vm1132_vm8, %v2116_v47, %v2082_v43  ;;  %v2135_v12 = vrot.slane %v2110_v49, 4  ;;  %v2115_v2 = vperm.slane %v2111_v52, %v4285_v17  ;;  %v2134_v63 = vperm.slane %v2130_v59, %v4285_v17 }
 0x752   : > { %v2108_v56 = vsel %vm1132_vm8, 0, %v2107_v48  ;;  %v2121_v28 = vperm.slane %v2117_v54, %v4285_v17  ;;  %v2012_v7 = vsel %vm1132_vm8, %v2011_v11, %v2004_v0  ;;  %v1993_v9 = vsel %vm1132_vm8, %v1992_v58, %v1985_v5 }
 0x753   : > { %v2136_v61 = vsel %vm1132_vm8, %v2135_v12, %v2108_v56  ;;  %v2016_v15 = vperm.slane %v2012_v7, %v4296_v35  ;;  %v1997_v19 = vperm.slane %v1993_v9, %v4296_v35 }
 0x754   : > { %v2122_v3 = vrot.slane %v2121_v28, 4  ;;  %v2140_v4 = vperm.slane %v2136_v61, %v4285_v17 }
 0x755   : > { %v2017_v29 = vrot.slane %v2016_v15, 4  ;;  %v1998_v34 = vrot.slane %v1997_v19, 4  ;;  %v2023_v38 = vshrl.u32 %v2016_v15, 16  ;;  %v2021_v40 = vpack.i.b16 %v2016_v15, %v1997_v19 }
 0x756   : > { %v2123_v1 = vsel %vm1132_vm8, %v2122_v3, %v2115_v2  ;;  %v2141_v6 = vrot.slane %v2140_v4, 4  ;;  %v2022_v62 = vshrl.u32 %v1997_v19, 16  ;;  %v2162_v2 = vpop.permute.xlu0 %2161 }
 0x757   : > { %v2127_v8 = vperm.slane %v2123_v1, %v4296_v35  ;;  %v2018_v39 = vsel %vm1132_vm8, 0, %v2017_v29  ;;  %v1999_v41 = vsel %vm1132_vm8, 0, %v1998_v34  ;;  %v2172_v19 = vshrl.u32 %v2162_v2, 16 }
 0x758   : > { %v2142_v10 = vsel %vm1132_vm8, %v2141_v6, %v2134_v63  ;;  %v2029_v42 = vshrl.u32 %v2018_v39, 16  ;;  %v2024_v43 = vpack.i.b16 %v2023_v38, %v2022_v62  ;;  %v2027_v44 = vpack.i.b16 %v2018_v39, %v1999_v41 }
 0x759   : > { %v2146_v13 = vperm.slane %v2142_v10, %v4296_v35  ;;  %v2128_v14 = vrot.slane %v2127_v8, 4  ;;  %v2152_v16 = vshrl.u32 %v2127_v8, 16  ;;  %v2028_v45 = vshrl.u32 %v1999_v41, 16 }
 0x75b   : > { %v2151_v20 = vpack.i.b16 %v2146_v13, %v2127_v8  ;;  %v2153_v21 = vshrl.u32 %v2146_v13, 16  ;;  %v2129_v22 = vsel %vm1132_vm8, 0, %v2128_v14  ;;  %v2147_v23 = vrot.slane %v2146_v13, 4 }
 0x75c   : > { %v2158_v32 = vshrl.u32 %v2129_v22, 16  ;;  %v2030_v46 = vpack.i.b16 %v2029_v42, %v2028_v45 }
 0x75d   : > { %v2287_v24 = vsel %vm1468_vm9, %v2151_v20, 0  ;;  %v2154_v25 = vpack.i.b16 %v2153_v21, %v2152_v16  ;;  %v2148_v26 = vsel %vm1132_vm8, 0, %v2147_v23 }
 0x75e   : > { %2296 = vmatpush.bf16.xpose.msrb.mxu0 %v2287_v24  ;;  %v2157_v51 = vpack.i.b16 %v2148_v26, %v2129_v22  ;;  %v2159_v57 = vshrl.u32 %v2148_v26, 16 }
 0x75f   : > { %v2306_v33 = vsel %vm1468_vm9, %v2154_v25, 0 }
 0x760   : > { %2315 = vmatpush.bf16.xpose.msrb.mxu1 %v2306_v33  ;;  %v2325_v36 = vsel %vm1468_vm9, %v2157_v51, 0  ;;  %v2160_v37 = vpack.i.b16 %v2159_v57, %v2158_v32 }
 0x761   : > { %2334 = vmatpush.bf16.xpose.msra.mxu2 %v2325_v36 }
 0x762   : > { %v2344_v60 = vsel %vm1468_vm9, %v2160_v37, 0 }
 0x763   : > { %2353 = vmatpush.bf16.xpose.msra.mxu3 %v2344_v60 }
 0x765   : > { %3101 = vmatmul.msk.bf16.vlgmr.msrb.gmra.mxu0 %vm1468_vm9, %v2021_v40 }
 0x767   : > { %3102 = vmatmul.msk.bf16.vlgmr.msrb.gmra.mxu1 %vm1468_vm9, %v2024_v43 }
 0x768   : > { %3103 = vmatmul.msk.bf16.vlgmr.msra.gmra.mxu2 %vm1468_vm9, %v2027_v44 }
 0x76a   : > { %3104 = vmatmul.msk.bf16.vlgmr.msra.gmra.mxu3 %vm1468_vm9, %v2030_v46 }
 0x7e2   : > { %v2298_v47 = vpop.f32.mrf.mxu0 }
 0x7e3   : > { %v2359_v48 = vsel %vm1468_vm9, %v2298_v47, -inf }
 0x7e4   : > { %v2317_v49 = vpop.f32.mrf.mxu1  ;;  %2360 = vmax.xlane.f32.xlu1 %v2359_v48 }
 0x7e5   : > { %v2362_v50 = vsel %vm1468_vm9, %v2317_v49, -inf }
 0x7e6   : > { %2363 = vmax.xlane.f32.xlu2 %v2362_v50 }
 0x7ea   : > { %v2300_v52 = vpop.f32.mrf.mxu0 }
 0x7eb   : > { %v2336_v54 = vpop.f32.mrf.mxu2 }
 0x7ec   : > { %v2319_v12 = vpop.f32.mrf.mxu1  ;;  %v2365_v55 = vsel %vm1468_vm9, %v2336_v54, -inf }
 0x7ed   : > { %v2355_v11 = vpop.f32.mrf.mxu3 }
 0x7ee   : > { %2366 = vmax.xlane.f32.xlu2 %v2365_v55  ;;  %v2368_v56 = vsel %vm1468_vm9, %v2355_v11, -inf }
 0x7ef   : > { %2369 = vmax.xlane.f32.xlu0 %v2368_v56 }
 0x7f3   : > { %v2338_v28 = vpop.f32.mrf.mxu2 }
 0x7f5   : > { %v2357_v58 = vpop.f32.mrf.mxu3 }
 0x7fd   : > { %2165 = vrot.lane.b32.xlu1 %v4505_v30, %s3932_s9 }
 0x803   : > { %2167 = vrot.lane.b32.xlu0 %v4510_v31, %s3932_s9 }
 0x806   : > { %2163 = vrot.lane.b32.xlu2 %v4501_v27, %s3932_s9 }
 0x857   : > { %v2361_v59 = vpop.xlane.xlu1 %2360 }
 0x858   : > { %v2371_v61 = vsub.f32 %v2298_v47, %v2361_v59 }
 0x859   : > { %v2364_v0 = vpop.xlane.xlu2 %2363 }
 0x85a   : > { %v2375_v3 = vmul.f32 1.442695, %v2371_v61  ;;  %v2372_v7 = vsub.f32 %v2317_v49, %v2364_v0 }
 0x85c   : > { %3405 = vpow2.f32 %v2375_v3  ;;  %v2377_v27 = vmul.f32 1.442695, %v2372_v7 }
 0x861   : > { %v2367_v4 = vpop.xlane.xlu2 %2366 }
 0x862   : > { %v4595_v5 = vpop.eup %3405  ;;  %v2373_v1 = vsub.f32 %v2336_v54, %v2367_v4  ;;  %v2370_v63 = vpop.xlane.xlu0 %2369 }
 0x863   : > { %v2374_v6 = vsub.f32 %v2355_v11, %v2370_v63  ;;  %v2383_v30 = vsel %vm1468_vm9, %v4595_v5, 0.0 }
 0x864   : > { %v2379_v31 = vmul.f32 1.442695, %v2373_v1  ;;  %2384 = vadd.xlane.f32.xlu1 %v2383_v30 }
 0x865   : > { %v2381_v8 = vmul.f32 1.442695, %v2374_v6 }
 0x866   : > { %3407 = vpow2.f32 %v2379_v31 }
 0x867   : > { %3409 = vpow2.f32 %v2381_v8 }
 0x868   : > { %3411 = vpow2.f32 %v2377_v27 }
 0x869   : > { %v2164_v9 = vpop.permute.xlu2 %2163 }
 0x86a   : > { %v2173_v15 = vshrl.u32 %v2164_v9, 16  ;;  %v2171_v20 = vpack.i.b16 %v2164_v9, %v2162_v2 }
 0x86c   : > { %v4599_v10 = vpop.eup %3407  ;;  %v2174_v22 = vpack.i.b16 %v2173_v15, %v2172_v19  ;;  %v2185_v24 = vperm.slane %v2171_v20, %v4285_v17 }
 0x86d   : > { %v4601_v13 = vpop.eup %3409  ;;  %v2389_v14 = vsel %vm1468_vm9, %v4599_v10, 0.0 }
 0x86e   : > { %2390 = vadd.xlane.f32.xlu2 %v2389_v14  ;;  %v2392_v16 = vsel %vm1468_vm9, %v4601_v13, 0.0  ;;  %v4607_v21 = vpop.eup %3411  ;;  %v2211_v29 = vperm.slane %v2174_v22, %v4285_v17  ;;  %v2193_v33 = vrot.slane %v2185_v24, 4 }
 0x86f   : > { %2393 = vadd.xlane.f32.xlu0 %v2392_v16  ;;  %v2166_v23 = vpop.permute.xlu1 %2165  ;;  %v2386_v26 = vsel %vm1468_vm9, %v4607_v21, 0.0 }
 0x870   : > { %v2178_v51 = vshrl.u32 %v2166_v23, 16  ;;  %v2219_v37 = vrot.slane %v2211_v29, 4 }
 0x875   : > { %v2168_v25 = vpop.permute.xlu0 %2167 }
 0x876   : > { %v2177_v32 = vpack.i.b16 %v2168_v25, %v2166_v23  ;;  %v2179_v57 = vshrl.u32 %v2168_v25, 16  ;;  %2387 = vadd.xlane.f32.xlu2 %v2386_v26 }
 0x878   : > { %v2180_v34 = vpack.i.b16 %v2179_v57, %v2178_v51  ;;  %v2190_v36 = vperm.slane %v2177_v32, %v4285_v17 }
 0x87a   : > { %v2191_v38 = vrot.slane %v2190_v36, 4  ;;  %v2194_v39 = vsel %vm1132_vm8, %v2190_v36, %v2193_v33  ;;  %v2216_v60 = vperm.slane %v2180_v34, %v4285_v17 }
 0x87b   : > { %v2202_v40 = vperm.slane %v2194_v39, %v4296_v35 }
 0x87c   : > { %v2192_v62 = vsel %vm1132_vm8, %v2191_v38, %v2185_v24  ;;  %v2217_v41 = vrot.slane %v2216_v60, 4  ;;  %v2220_v42 = vsel %vm1132_vm8, %v2216_v60, %v2219_v37 }
 0x87d   : > { %v2198_v43 = vperm.slane %v2192_v62, %v4296_v35  ;;  %v2205_v44 = vrot.slane %v2202_v40, 4  ;;  %v2228_v45 = vperm.slane %v2220_v42, %v4296_v35 }
 0x87e   : > { %v2218_v46 = vsel %vm1132_vm8, %v2217_v41, %v2211_v29 }
 0x87f   : > { %v2203_v47 = vrot.slane %v2198_v43, 4  ;;  %v2206_v48 = vsel %vm1132_vm8, 0, %v2205_v44  ;;  %v2224_v49 = vperm.slane %v2218_v46, %v4296_v35  ;;  %v2231_v50 = vrot.slane %v2228_v45, 4 }
 0x880   : > { %v2238_v52 = vrot.slane %v2206_v48, 4  ;;  %v2233_v11 = vsel %vm1132_vm8, %v2205_v44, %v2198_v43 }
 0x881   : > { %v2204_v54 = vsel %vm1132_vm8, 0, %v2203_v47  ;;  %v2229_v12 = vrot.slane %v2224_v49, 4  ;;  %v2232_v55 = vsel %vm1132_vm8, 0, %v2231_v50  ;;  %v2252_v61 = vsel %vm1132_vm8, %v2231_v50, %v2224_v49 }
 0x882   : > { %v2239_v56 = vsel %vm1132_vm8, %v2238_v52, %v2204_v54  ;;  %v2257_v28 = vrot.slane %v2232_v55, 4  ;;  %v2237_v2 = vperm.slane %v2233_v11, %v4285_v17  ;;  %v2256_v63 = vperm.slane %v2252_v61, %v4285_v17 }
 0x883   : > { %v2230_v58 = vsel %vm1132_vm8, 0, %v2229_v12  ;;  %v2243_v59 = vperm.slane %v2239_v56, %v4285_v17 }
 0x884   : > { %v2258_v0 = vsel %vm1132_vm8, %v2257_v28, %v2230_v58 }
 0x885   : > { %v2244_v3 = vrot.slane %v2243_v59, 4  ;;  %v2262_v4 = vperm.slane %v2258_v0, %v4285_v17 }
 0x887   : > { %v2245_v1 = vsel %vm1132_vm8, %v2244_v3, %v2237_v2  ;;  %v2263_v6 = vrot.slane %v2262_v4, 4 }
 0x888   : > { %v2249_v30 = vperm.slane %v2245_v1, %v4296_v35 }
 0x889   : > { %v2264_v7 = vsel %vm1132_vm8, %v2263_v6, %v2256_v63 }
 0x88a   : > { %v2268_v31 = vperm.slane %v2264_v7, %v4296_v35  ;;  %v2250_v8 = vrot.slane %v2249_v30, 4  ;;  %v2274_v27 = vshrl.u32 %v2249_v30, 16 }
 0x88c   : > { %v2273_v9 = vpack.i.b16 %v2268_v31, %v2249_v30  ;;  %v2275_v14 = vshrl.u32 %v2268_v31, 16  ;;  %v2251_v15 = vsel %vm1132_vm8, 0, %v2250_v8  ;;  %v2269_v16 = vrot.slane %v2268_v31, 4 }
 0x88d   : > { %v2280_v24 = vshrl.u32 %v2251_v15, 16 }
 0x88e   : > { %v2411_v19 = vsel %vm1596_vm10, %v2273_v9, 0  ;;  %v2276_v20 = vpack.i.b16 %v2275_v14, %v2274_v27  ;;  %v2270_v22 = vsel %vm1132_vm8, 0, %v2269_v16 }
 0x88f   : > { %2420 = vmatpush.bf16.msra.mxu0 %v2411_v19  ;;  %v2279_v23 = vpack.i.b16 %v2270_v22, %v2251_v15  ;;  %v2281_v25 = vshrl.u32 %v2270_v22, 16 }
 0x890   : > { %v2430_v26 = vsel %vm1596_vm10, %v2276_v20, 0 }
 0x891   : > { %2439 = vmatpush.bf16.msra.mxu1 %v2430_v26  ;;  %v2449_v29 = vsel %vm1596_vm10, %v2279_v23, 0  ;;  %v2282_v51 = vpack.i.b16 %v2281_v25, %v2280_v24 }
 0x892   : > { %2458 = vmatpush.bf16.msrb.mxu2 %v2449_v29 }
 0x893   : > { %v2468_v32 = vsel %vm1596_vm10, %v2282_v51, 0 }
 0x894   : > { %2477 = vmatpush.bf16.msrb.mxu3 %v2468_v32 }
 0x8d7   : > { %v2385_v57 = vpop.xlane.xlu1 %2384 }
 0x8d8   : > { %3413 = vrcp.f32 %v2385_v57 }
 0x8de   : > { %v3414_v33 = vpop.eup %3413 }
 0x8df   : > { %v2399_v34 = vmul.f32 %v3414_v33, %v4595_v5 }
 0x8e1   : > { %v2403_v36 = vpack.c.bf16 %v2399_v34, %v2399_v34  ;;  %v2391_v37 = vpop.xlane.xlu2 %2390 }
 0x8e2   : > { %3415 = vrcp.f32 %v2391_v37  ;;  %v2394_v38 = vpop.xlane.xlu0 %2393 }
 0x8e3   : > { %3417 = vrcp.f32 %v2394_v38  ;;  %3105 = vmatmul.msk.bf16.vlgmr.msra.gmra.mxu0 %vm1468_vm9, %v2403_v36 }
 0x8e8   : > { %v3416_v39 = vpop.eup %3415 }
 0x8e9   : > { %v3418_v60 = vpop.eup %3417  ;;  %v2401_v40 = vmul.f32 %v3416_v39, %v4599_v10  ;;  %v2388_v62 = vpop.xlane.xlu2 %2387 }
 0x8ea   : > { %v2402_v41 = vmul.f32 %v3418_v60, %v4601_v13  ;;  %3419 = vrcp.f32 %v2388_v62 }
 0x8eb   : > { %v2405_v42 = vpack.c.bf16 %v2401_v40, %v2401_v40 }
 0x8ec   : > { %v2406_v43 = vpack.c.bf16 %v2402_v41, %v2402_v41 }
 0x8ed   : > { %3107 = vmatmul.msk.bf16.vlgmr.msrb.gmra.mxu2 %vm1468_vm9, %v2405_v42 }
 0x8ee   : > { %3108 = vmatmul.msk.bf16.vlgmr.msrb.gmra.mxu3 %vm1468_vm9, %v2406_v43 }
 0x8f0   : > { %v3420_v5 = vpop.eup %3419 }
 0x8f1   : > { %v2400_v44 = vmul.f32 %v3420_v5, %v4607_v21 }
 0x8f3   : > { %v2404_v45 = vpack.c.bf16 %v2400_v44, %v2400_v44 }
 0x8f5   : > { %3106 = vmatmul.msk.bf16.vlgmr.msra.gmra.mxu1 %vm1468_vm9, %v2404_v45 }
 0x960   : > { %v2422_v46 = vpop.f32.mrf.mxu0 }
 0x961   : > { %v2485_v48 = vrot.slane %v2422_v46, 4 }
 0x968   : > { %v2424_v47 = vpop.f32.mrf.mxu0 }
 0x970   : > { %v2460_v10 = vpop.f32.mrf.mxu2 }
 0x971   : > { %v2483_v49 = vrot.slane %v2460_v10, 4  ;;  %v2486_v13 = vsel %vm1132_vm8, %v2460_v10, %v2485_v48  ;;  %v2479_v50 = vpop.f32.mrf.mxu3 }
 0x972   : > { %v2494_v52 = vperm.slane %v2486_v13, %v4285_v17  ;;  %v2495_v54 = vrot.slane %v2479_v50, 4  ;;  %v2441_v12 = vpop.f32.mrf.mxu1 }
 0x973   : > { %v2484_v55 = vsel %vm1132_vm8, %v2483_v49, %v2422_v46  ;;  %v2497_v11 = vrot.slane %v2441_v12, 4 }
 0x974   : > { %v2490_v21 = vperm.slane %v2484_v55, %v4285_v17  ;;  %v2496_v56 = vsel %vm1132_vm8, %v2495_v54, %v2441_v12  ;;  %v2521_v61 = vrot.slane %v2494_v52, 4  ;;  %v3172_v12 = vld [vmem:[#allocation13 + $0x8] sm:$0xff] }
 0x975   : > { %v2498_v28 = vsel %vm1132_vm8, %v2479_v50, %v2497_v11  ;;  %v2502_v58 = vperm.slane %v2496_v56, %v4285_v17  ;;  %2638 = vmatpush.bf16.msrb.mxu0 %v3172_v12 }
 0x976   : > { %v2509_v59 = vrot.slane %v2490_v21, 4  ;;  %v2506_v0 = vperm.slane %v2498_v28, %v4285_v17 }
 0x977   : > { %v2507_v2 = vrot.slane %v2502_v58, 4 }
 0x978   : > { %v2510_v3 = vsel %vm1132_vm8, %v2502_v58, %v2509_v59  ;;  %v2519_v4 = vrot.slane %v2506_v0, 4  ;;  %v2522_v1 = vsel %vm1132_vm8, %v2506_v0, %v2521_v61  ;;  %v2462_v63 = vpop.f32.mrf.mxu2  ;;  %v3376_v61 = vld [vmem:[#allocation14] ss:$0 sm:$0xff] }
 0x979   : > { %v2508_v6 = vsel %vm1132_vm8, %v2507_v2, %v2490_v21  ;;  %v2518_v30 = vperm.slane %v2510_v3, %v4296_v35  ;;  %v2530_v7 = vperm.slane %v2522_v1, %v4296_v35  ;;  %v2481_v31 = vpop.f32.mrf.mxu3 }
 0x97a   : > { %v2514_v8 = vperm.slane %v2508_v6, %v4296_v35  ;;  %v2520_v27 = vsel %vm1132_vm8, %v2519_v4, %v2494_v52  ;;  %v2443_v9 = vpop.f32.mrf.mxu1  ;;  %v3173_v31 = vld [vmem:[#allocation19] sm:$0xff] }
 0x97b   : > { %v2526_v14 = vperm.slane %v2520_v27, %v4296_v35  ;;  %v2533_v15 = vrot.slane %v2518_v30, 4  ;;  %v2537_v16 = vrot.slane %v2530_v7, 4  ;;  %v3174_v30 = vld [vmem:[#allocation19 + $0x8] sm:$0xff] }
 0x97c   : > { %v2531_v19 = vrot.slane %v2514_v8, 4  ;;  %2711 = vmatpush.bf16.msrb.mxu1 %v3174_v30 }
 0x97d   : > { %v2534_v20 = vsel %vm1132_vm8, 0.0, %v2533_v15  ;;  %v2535_v22 = vrot.slane %v2526_v14, 4  ;;  %v2538_v23 = vsel %vm1132_vm8, 0.0, %v2537_v16  ;;  %v2539_v24 = vsel %vm1132_vm8, %v2533_v15, %v2514_v8  ;;  %v3182_v15 = vld [vmem:[%s4792_s22 + $0x38] sm:$0xff] }
 0x97e   : > { %v2532_v25 = vsel %vm1132_vm8, 0.0, %v2531_v19  ;;  %v2543_v26 = vperm.slane %v2539_v24, %v4285_v17  ;;  %v2544_v29 = vrot.slane %v2534_v20, 4  ;;  %v2555_v51 = vrot.slane %v2538_v23, 4  ;;  %2796 = vmatpush.bf16.msra.mxu2 %v3182_v15 }
 0x97f   : > { %v2536_v32 = vsel %vm1132_vm8, 0.0, %v2535_v22  ;;  %v2550_v57 = vsel %vm1132_vm8, %v2537_v16, %v2526_v14 }
 0x980   : > { %v2545_v33 = vsel %vm1132_vm8, %v2544_v29, %v2532_v25  ;;  %v2554_v34 = vperm.slane %v2550_v57, %v4285_v17  ;;  %v2556_v36 = vsel %vm1132_vm8, %v2555_v51, %v2536_v32  ;;  %v2563_v37 = vrot.slane %v2543_v26, 4  ;;  %2712 = vmatpush.bf16.msrb.mxu1 %v3173_v31  ;;  %v3377_v29 = vld [vmem:[#allocation16] ss:$0 sm:$0xff]  ;;  %v3378_v57 = vld [vmem:[#allocation17] ss:$0 sm:$0xff] }
 0x981   : > { %v2549_v38 = vperm.slane %v2545_v33, %v4285_v17  ;;  %v2560_v39 = vperm.slane %v2556_v36, %v4285_v17 }
 0x982   : > { %v2575_v60 = vrot.slane %v2554_v34, 4 }
 0x983   : > { %v2564_v40 = vsel %vm1132_vm8, %v2549_v38, %v2563_v37  ;;  %v2561_v62 = vrot.slane %v2549_v38, 4  ;;  %v2573_v41 = vrot.slane %v2560_v39, 4  ;;  %v3181_v37 = vld [vmem:[%s4792_s22 + $0x30] sm:$0xff]  ;;  %v3180_v38 = vld [vmem:[%s4792_s22 + $0x28] sm:$0xff] }
 0x984   : > { %v2572_v42 = vperm.slane %v2564_v40, %v4296_v35  ;;  %v2576_v43 = vsel %vm1132_vm8, %v2560_v39, %v2575_v60  ;;  %2797 = vmatpush.bf16.msra.mxu2 %v3181_v37  ;;  %v3179_v39 = vld [vmem:[%s4792_s22 + $0x20] sm:$0xff]  ;;  %v3178_v60 = vld [vmem:[%s4792_s22 + $0x18] sm:$0xff]  ;;  %v3177_v40 = vld [vmem:[%s4792_s22 + $0x10] sm:$0xff] }
 0x985   : > { %v2584_v5 = vperm.slane %v2576_v43, %v4296_v35  ;;  %v2562_v44 = vsel %vm1132_vm8, %v2561_v62, %v2543_v26  ;;  %v2574_v45 = vsel %vm1132_vm8, %v2573_v41, %v2554_v34  ;;  %v3176_v62 = vld [vmem:[%s4792_s22 + $0x8] sm:$0xff]  ;;  %v3175_v41 = vld [vmem:[%s4792_s22] sm:$0xff] }
 0x986   : > { %v2591_v46 = vrot.slane %v2572_v42, 4  ;;  %v2568_v47 = vperm.slane %v2562_v44, %v4296_v35  ;;  %v2580_v17 = vperm.slane %v2574_v45, %v4296_v35  ;;  %v3171_v35 = vld [vmem:[#allocation13] sm:$0xff] }
 0x987   : > { %v2589_v48 = vrot.slane %v2584_v5, 4  ;;  %2639 = vmatpush.bf16.msrb.mxu0 %v3171_v35 }
 0x988   : > { %v2592_v10 = vsel %vm1132_vm8, %v2584_v5, %v2591_v46  ;;  %v2585_v49 = vrot.slane %v2580_v17, 4  ;;  %v2587_v13 = vrot.slane %v2568_v47, 4  ;;  %2798 = vmatpush.bf16.msra.mxu2 %v3180_v38 }
 0x989   : > { %2602 = vrot.lane.b32.xlu2 %v2592_v10, %s3929_s30  ;;  %v2590_v50 = vsel %vm1132_vm8, %v2589_v48, %v2572_v42  ;;  %v3379_v42 = vld [vmem:[#allocation20] ss:$0 sm:$0xff]  ;;  %s2822_s30 = scalar_lea.hbm %s4794_s24, %s3160_s29 }
 0x98a   : > { %2598 = vrot.lane.b32.xlu1 %v2590_v50, %s3930_s13  ;;  %v2588_v52 = vsel %vm1132_vm8, %v2580_v17, %v2587_v13  ;;  %v2586_v54 = vsel %vm1132_vm8, %v2585_v49, %v2568_v47  ;;  %s936_s13 = scalar_lea.vmem [#allocation23], %s3054_s4  ;;  %s2826_s3 = sshll.u32 %s2822_s30, 4  ;;  %s2827_s3 = int_to_ptr.hbm [resolvable:$true] %s2826_s3 }
 0x98b   : > { %2594 = vrot.lane.b32.xlu0 %v2588_v52, %s3931_s15  ;;  %s2824_s15 = sshll.u32 %s936_s13, 4  ;;  %s3829_s11 = sshra.s32 %s2827_s3, 4  ;;  %s2825_s15 = int_to_ptr.vmem [resolvable:$true] %s2824_s15  ;;  %s3830_s11 = int_to_ptr.hbm [resolvable:$true] %s3829_s11 }
 0x98c   : > { %2799 = vmatpush.bf16.msra.mxu2 %v3179_v39  ;;  %s3831_s6 = scalar_lea.hbm %s3830_s11, 8  ;;  %p3836_p3 = scmp.lt.s32.totalorder %s3830_s11, %s4794_s24 }
 0x98d   : > { %p3832_p0 = scmp.ne.s32.totalorder %s3830_s11, %s3831_s6  ;;  %p3837_p4 = scmp.lt.s32.totalorder %s3835_s25, %s3831_s6 }
 0x98f   : > { %p3833_p1 = pnand %p3832_p0, %p4096_p5  ;;  %p3838_p7 = por %p3837_p4, %p3836_p3 }
 0x990   : > { %2800 = vmatpush.bf16.msra.mxu2 %v3178_v60 }
 0x991   : > { %p3834_p2 = pneg %p3833_p1 }
 0x993   : > { %p3839_p8 = pnand %p3838_p7, %p3834_p2 }
 0x994   : > { %2801 = vmatpush.bf16.msra.mxu2 %v3177_v40 }
 0x998   : > { %2802 = vmatpush.bf16.msra.mxu2 %v3176_v62 }
 0x99c   : > { %2803 = vmatpush.bf16.msra.mxu2 %v3175_v41 }
 0x9e3   : > { %v2603_v56 = vpop.permute.xlu2 %2602 }
 0x9fc   : > { %v2599_v11 = vpop.permute.xlu1 %2598 }
 0x9fd   : > { %v2595_v55 = vpop.permute.xlu0 %2594 }
 0x9fe   : > { %v2605_v21 = vsel %vm1468_vm9, %v2586_v54, %v2595_v55  ;;  %v3380_v54 = vld [vmem:[#allocation22] ss:$0 sm:$0xff] }
 0x9ff   : > { %v2606_v28 = vsel %vm1794_vm11, %v2605_v21, %v2599_v11 }
 0xa00   : > { %v2607_v58 = vsel %vm1796_vm12, %v2606_v28, %v2603_v56 }
 0xa01   : > { %v2608_v59 = vpack.c.bf16 %v2607_v58, %v2607_v58 }
 0xa03   : > { %3117 = vmatmul.msk.bf16.vlgmr.msrb.gmra.mxu0 %vm950_vm0, %v2608_v59 }
 0xa80   : > { %v2641_v0 = vpop.f32.mrf.mxu0 }
 0xa81   : > { %v2642_v2 = vadd.f32 %v3376_v61, %v2641_v0 }
 0xa83   : > { %v4701_v3 = vadd.f32 %v2642_v2, %v4486_v53 }
 0xa85   : > { %v2648_v4 = vsel %vm950_vm0, %v4701_v3, 0.0  ;;  %v2652_v1 = vmul.f32 %v4701_v3, %v4701_v3 }
 0xa86   : > { %2649 = vadd.xlane.f32.xlu0 %v2648_v4 }
 0xa87   : > { %v2653_v63 = vsel %vm950_vm0, %v2652_v1, 0.0 }
 0xa88   : > { %v2643_v6 = vpop.f32.mrf.mxu0  ;;  %2654 = vadd.xlane.f32.xlu1 %v2653_v63 }
 0xaf9   : > { %v2650_v7 = vpop.xlane.xlu0 %2649 }
 0xafa   : > { %v2651_v8 = vmul.f32 %v2650_v7, %v4242_v18 }
 0xafb   : > { %v2655_v27 = vpop.xlane.xlu1 %2654 }
 0xafc   : > { %v2657_v53 = vmul.f32 %v2651_v8, %v2651_v8  ;;  %v2656_v9 = vmul.f32 %v2655_v27, %v4242_v18  ;;  %v2660_v18 = vsub.f32 %v4701_v3, %v2651_v8 }
 0xafe   : > { %v2658_v14 = vsub.f32 %v2656_v9, %v2657_v53 }
 0xb00   : > { %v2659_v16 = vmax.f32 %v2658_v14, 0.0 }
 0xb02   : > { %v2661_v19 = vadd.f32 1e-05, %v2659_v16 }
 0xb04   : > { %3421 = vrsqrt.f32 %v2661_v19  ;;  %vm2668_vm2 = vweird.f32 %v2661_v19 }
 0xb0a   : > { %v3422_v20 = vpop.eup %3421 }
 0xb0b   : > { %v2663_v22 = vmul.f32 %v3422_v20, %v2661_v19  ;;  %vm2669_vm1 = vweird.f32 %v3422_v20 }
 0xb0c   : > { %vm2670_vm3 = vmor %vm2668_vm2, %vm2669_vm1 }
 0xb0d   : > { %v2664_v23 = vmul.f32 %v3422_v20, %v2663_v22 }
 0xb0f   : > { %v2665_v24 = vmul.f32 0.5, %v2664_v23 }
 0xb11   : > { %v2666_v25 = vsub.f32 1.5, %v2665_v24 }
 0xb13   : > { %v2667_v26 = vmul.f32 %v3422_v20, %v2666_v25 }
 0xb15   : > { %v2671_v51 = vsel %vm2670_vm3, %v3422_v20, %v2667_v26 }
 0xb16   : > { %v2672_v32 = vmul.f32 %v2671_v51, %v2660_v18 }
 0xb18   : > { %v2676_v33 = vmul.f32 %v3377_v29, %v2672_v32 }
 0xb1a   : > { %v2680_v34 = vadd.f32 %v3378_v57, %v2676_v33 }
 0xb1c   : > { %v2681_v36 = vpack.c.bf16 %v2680_v34, %v2680_v34 }
 0xb1e   : > { %3126 = vmatmul.msk.bf16.vlgmr.msrb.gmra.mxu1 %vm950_vm0, %v2681_v36 }
 0xb9b   : > { %v2714_v43 = vpop.f32.mrf.mxu1 }
 0xb9c   : > { %v2715_v5 = vadd.f32 %v3379_v42, %v2714_v43 }
 0xb9e   : > { %v2718_v44 = vmul.f32 %v2715_v5, %v2715_v5 }
 0xba0   : > { %v2719_v45 = vmul.f32 %v2718_v44, %v2715_v5 }
 0xba2   : > { %v2720_v46 = vmul.f32 0.044715, %v2719_v45 }
 0xba3   : > { %v2716_v47 = vpop.f32.mrf.mxu1 }
 0xba4   : > { %v2721_v17 = vadd.f32 %v2720_v46, %v2715_v5 }
 0xba6   : > { %v2722_v48 = vmul.f32 0.7978846, %v2721_v17 }
 0xba8   : > { %3423 = vtanh.f32 %v2722_v48 }
 0xbae   : > { %v3424_v10 = vpop.eup %3423 }
 0xbaf   : > { %v2724_v49 = vadd.f32 1.0, %v3424_v10 }
 0xbb1   : > { %v2725_v13 = vmul.f32 0.5, %v2724_v49 }
 0xbb3   : > { %v2726_v50 = vmul.f32 %v2725_v13, %v2715_v5 }
 0xbb5   : > { %v2727_v52 = vpack.c.bf16 %v2726_v50, %v2726_v50 }
 0xbb7   : > { %2804 = vmatmul.bf16.vlgmr.msra.gmra.mxu2 %v2727_v52 }
 0xc3a   : > { %v2805_v12 = vpop.f32.mrf.mxu2 }
 0xc3b   : > { %v2806_v35 = vadd.f32 %v3380_v54, %v2805_v12 }
 0xc3d   : > { %v2809_v55 = vadd.f32 %v2806_v35, %v4701_v3 }
 0xc3f   : > { %2810 = vst.msk [vmem:[%s936_s13] sm:$0xff] %vm950_vm0, %v2809_v55 }
 0xc40   : > { %3842 = shalt.err (!%p3839_p8)
}
 0xc41   : > { %3235 = dma.vmem_to_hbm [thread:$0]  (%p4096_p5), %s2825_s15, 128, %s2827_s3, %s2812_s27  }
 0xc42   : > { %v2807_v11 = vpop.f32.mrf.mxu2 }
 0xc43 PF: > { %s4844_s8 = sld [smem:[#allocation34_spill]] }
 0xc44   : > { %s4845_s1 = sld [smem:[#allocation32_spill]] }
 0xc49   : > { %p3307_p9 = scmp.ge.s32.totalorder %s4844_s8, 2 }
 0xc4a   : > { %s2838_s30 = sand.u32 1, %s4845_s1  }
 0xc4b   : > { %p3278_p10 = pnand %p3307_p9, %p4100_p6  ;;  %s2839_s13 = scalar_lea.sflag [#allocation4], %s2838_s30 }
 0xc4d   : > { %p3279_p11 = pneg %p3278_p10 }
 0xc4f   : > { %3888 = dma.done.wait (%p3279_p11), %s2839_s13, 128  }
 0xc50   : > { %3890 = vsyncadd (%p3279_p11), %s2839_s13, 4294967168  ;;  %s4847_s28 = sld [smem:[#allocation35_spill]]  ;;  %s4850_s5 = smov %s3897_s26 }
 0xc51   : > { %s4848_s11 = sld [smem:[#allocation33_spill]] }
 0xc52   : > { %s4849_s27 = sld [smem:[#allocation36_spill]] }
 0xc56   : > { %p41_p12 = scmp.ge.s32.totalorder %s4847_s28, 4  }
 0xc57   : > { %s4851_s26 = smov %s4848_s11 }
 0xc58   :  { %43 = sbr.rel (!%p41_p12) target bundleno = 24 (0x18), region = 207 }
 0xc5d   :  { %2845 = vsyncpa [#allocation3], 1 }
 0xc5e   :  { %2847 = vsyncpa [#allocation3 + $0x1], 1 }
 0xc5f   :  { %2848 = vsyncpa [#allocation6], 1 }
 0xc60   :  { %2849 = vsyncpa [#allocation9], 1 }
 0xc61   :  { %2850 = vsyncpa [#allocation12], 1 }
 0xc62   :  { %2851 = vsyncpa [#allocation15], 1 }
 0xc63   :  { %2852 = vsyncpa [#allocation18], 1 }
 0xc64   :  { %2853 = vsyncpa [#allocation21], 1 }
 0xc65   :  { %2854 = vsyncpa [#allocation4], 1 }
 0xc66   :  { %2856 = vsyncpa [#allocation4 + $0x1], 1 }

</bundles_post_ra>
